<compile_context>
chip_gen: v5e
topology: v5e:2x2
jax: 0.10.0
libtpu: 0.0.40
codegen_flags: <defaults>
</compile_context>

<pallas_src>
import jax
import jax.numpy as jnp
from jax.experimental import pallas as pl
from jax.experimental.pallas import tpu as pltpu


def _eic3_kernel(x_ref, w_ref, o_ref):
    """x_ref: (bt, 4096) natural layout; w_ref: (4, 1024, 256) block-diagonal;
    o_ref: (bt, 1024) with o[:, col*256 + row*64 + n]."""
    for col in range(4):  # static unroll; each iteration ends in a dense 256-lane store
        # Gather this column's inputs: x_col[:, l2*256 + p] = x[:, l2, col, p].
        # Four static slices, each 256 lanes wide and 256-lane aligned.
        x_col = jnp.concatenate(
            [x_ref[:, l2 * 1024 + col * 256: l2 * 1024 + (col + 1) * 256]
             for l2 in range(4)],
            axis=-1)                                                   # (bt, 1024)
        # One full-width MXU matmul computes all 4 row-cores of this column.
        y = jnp.dot(x_col, w_ref[col], preferred_element_type=jnp.float32)  # (bt, 256)
        # Per-core bias = -0.5 * max over that core's 64 outputs; the cheap maxes
        # are 64-wide, the EUP-heavy sigmoid runs on the full 256-lane slab.
        shifted = jnp.concatenate(
            [y[:, r * 64:(r + 1) * 64]
             - 0.5 * jnp.max(y[:, r * 64:(r + 1) * 64], axis=-1, keepdims=True)
             for r in range(4)],
            axis=-1)                                                   # (bt, 256)
        o_ref[:, col * 256:(col + 1) * 256] = jax.nn.sigmoid(shifted).astype(o_ref.dtype)


def prepare_weights(weights, use_bf16=False):
    """One-time weight re-layout; call once and reuse (hoisted out of the hot path).

    weights: (16, 64, 256) PyTorch nn.Linear layout, core index = col*4 + row.
    Returns wb: (4, 1024, 256) block-diagonal so that for column `col`
        wb[col, l2*256 + r*64 + k, s*64 + n] = weights[col*4 + r, n, l2*64 + k] * (r == s)
    and  y_col = x_col @ wb[col]  computes all four row-cores of that column.
    """
    assert weights.shape == (16, 64, 256)
    w = weights.reshape(4, 4, 64, 4, 64)                  # (col, row, n, l2, k)
    eye = jnp.eye(4, dtype=weights.dtype)
    wb = jnp.einsum('crnlk,rs->clrksn', w, eye).reshape(4, 1024, 256)
    if use_bf16:
        wb = wb.astype(jnp.bfloat16)
    return wb


def eic_layer3_pallas(x, wb, *, batch_tile=256):
    """x: (B, 4, 4, 256); wb: prepared weights from prepare_weights()."""
    B = x.shape[0]
    assert x.shape[1:] == (4, 4, 256)
    assert wb.shape == (4, 1024, 256)

    x_flat = x.reshape(B, 4096)                # free reshape, natural memory layout
    if wb.dtype == jnp.bfloat16 and x_flat.dtype != jnp.bfloat16:
        # Halves the kernel's input DMA; only a net win if the producer already
        # emits bf16 (otherwise this cast is an extra XLA pass over x).
        x_flat = x_flat.astype(jnp.bfloat16)

    if B <= batch_tile:
        bt, nb = B, 1                          # single full-batch tile (block == full dim)
    else:
        bt, nb = batch_tile, pl.cdiv(B, batch_tile)   # ragged last tile masked by Pallas

    xbytes = x_flat.dtype.itemsize
    wbytes = wb.dtype.itemsize
    vmem_bytes = (2 * bt * 4096 * xbytes        # x block, double-buffered
                  + 2 * wb.size * wbytes        # resident weight block
                  + 2 * bt * 1024 * 4           # f32 output block
                  + (4 << 20))                  # scratch headroom
    cost = pl.CostEstimate(
        flops=2 * B * 4 * 1024 * 256,           # padded block-diagonal matmul FLOPs
        transcendentals=B * 1024,               # sigmoid
        bytes_accessed=x_flat.size * xbytes + wb.size * wbytes + B * 1024 * 4)

    out = pl.pallas_call(
        _eic3_kernel,
        out_shape=jax.ShapeDtypeStruct((B, 1024), jnp.float32),
        grid_spec=pltpu.PrefetchScalarGridSpec(
            num_scalar_prefetch=0,
            grid=(nb,),
            in_specs=[
                pl.BlockSpec((bt, 4096), lambda b: (b, 0)),
                # Constant index map -> weights DMA'd once, resident across batch tiles.
                pl.BlockSpec((4, 1024, 256), lambda b: (0, 0, 0)),
            ],
            out_specs=pl.BlockSpec((bt, 1024), lambda b: (b, 0)),
        ),
        compiler_params=pltpu.CompilerParams(
            dimension_semantics=("parallel",),  # independent batch tiles; v7x may shard across TCs
            vmem_limit_bytes=max(vmem_bytes, 32 * 1024 * 1024),
        ),
        cost_estimate=cost,
    )(x_flat, wb)

    # out[b, col*256 + row*64 + n] -> (B, row, col, 64).
    # TODO(synk): this 4 KB/sample output transpose stays in XLA; folding it
    # in-kernel would need 64-lane masked stores (worse than the glue).
    return jnp.transpose(out.reshape(B, 4, 4, 64), (0, 2, 1, 3))


def eic_layer3_ref(x, weights):
    """Pure-JAX reference mirroring the PyTorch forward."""
    B = x.shape[0]
    out = jnp.zeros((B, 4, 4, 64), dtype=jnp.float32)
    core_idx = 0
    for col in range(4):
        start = 0
        for row in range(4):
            chunk = jnp.concatenate(
                [x[:, l2row, col, start:start + 64] for l2row in range(4)], axis=1)
            y = chunk @ weights[core_idx].T
            bias = -0.5 * jnp.max(y, axis=1, keepdims=True)
            y = jax.nn.sigmoid(y + bias)
            out = out.at[:, row, col, :].set(y)
            core_idx += 1
            start += 64
    return out


if __name__ == "__main__":
    key = jax.random.PRNGKey(0)
    kx, kw = jax.random.split(key)

    B = 8
    x = jax.random.uniform(kx, (B, 4, 4, 256), dtype=jnp.float32)
    # 16 cores, each nn.Linear(256, 64, bias=False) -> weight shape (64, 256).
    weights = jax.random.normal(kw, (16, 64, 256), dtype=jnp.float32) * 0.05

    ref = eic_layer3_ref(x, weights)
    fwd = jax.jit(eic_layer3_pallas)

    # f32 path: matches the PyTorch forward to 1e-5.
    wb32 = prepare_weights(weights)                       # one-time re-layout (hoisted)
    out = jax.block_until_ready(fwd(x, wb32))
    assert out.shape == (B, 4, 4, 64), out.shape
    assert jnp.allclose(out, ref, atol=1e-5, rtol=1e-5), "f32 mismatch vs reference"

    # bf16 path: half the DMA bytes; f32 accumulation/epilogue, loose tolerance.
    wb16 = prepare_weights(weights, use_bf16=True)
    out16 = jax.block_until_ready(fwd(x, wb16))
    assert out16.shape == (B, 4, 4, 64), out16.shape
    assert float(jnp.max(jnp.abs(out16 - ref))) < 2e-2, "bf16 mismatch vs reference"

    print("KERNEL_OK")
</pallas_src>

<mosaic_0001>
module attributes {stable_mosaic.version = 11 : i64} {
  func.func @_eic3_kernel(%arg0: i32, %arg1: memref<8x4096xf32, #tpu.memory_space<vmem>>, %arg2: memref<4x1024x256xf32, #tpu.memory_space<vmem>>, %arg3: memref<8x1024xf32, #tpu.memory_space<vmem>>) attributes {dimension_semantics = [#tpu.dimension_semantics<parallel>], iteration_bounds = array<i64: 1>, scalar_prefetch = 0 : i64, scratch_operands = 0 : i64, tpu.core_type = #tpu.core_type<tc>, window_params = [{transform_indices = @transform_0, window_bounds = array<i64: 8, 4096>}, {pipeline_mode = #tpu.pipeline_mode<synchronous>, transform_indices = @transform_1, window_bounds = array<i64: 4, 1024, 256>}, {transform_indices = @transform_2, window_bounds = array<i64: 8, 1024>}]} {
    %c0 = arith.constant 0 : index
    %c0_0 = arith.constant 0 : index
    %0 = vector.load %arg1[%c0, %c0_0] : memref<8x4096xf32, #tpu.memory_space<vmem>>, vector<8x256xf32>
    %c0_1 = arith.constant 0 : index
    %c1024 = arith.constant 1024 : index
    %1 = vector.load %arg1[%c0_1, %c1024] : memref<8x4096xf32, #tpu.memory_space<vmem>>, vector<8x256xf32>
    %c0_2 = arith.constant 0 : index
    %c2048 = arith.constant 2048 : index
    %2 = vector.load %arg1[%c0_2, %c2048] : memref<8x4096xf32, #tpu.memory_space<vmem>>, vector<8x256xf32>
    %c0_3 = arith.constant 0 : index
    %c3072 = arith.constant 3072 : index
    %3 = vector.load %arg1[%c0_3, %c3072] : memref<8x4096xf32, #tpu.memory_space<vmem>>, vector<8x256xf32>
    %4 = tpu.concatenate %0, %1, %2, %3 in 1 : vector<8x256xf32>, vector<8x256xf32>, vector<8x256xf32>, vector<8x256xf32> -> vector<8x1024xf32>
    %c0_4 = arith.constant 0 : index
    %c0_5 = arith.constant 0 : index
    %c0_6 = arith.constant 0 : index
    %5 = vector.load %arg2[%c0_4, %c0_5, %c0_6] : memref<4x1024x256xf32, #tpu.memory_space<vmem>>, vector<1x1024x256xf32>
    %6 = vector.shape_cast %5 : vector<1x1024x256xf32> to vector<1024x256xf32>
    %cst = arith.constant dense<0.000000e+00> : vector<8x256xf32>
    %7 = tpu.matmul %4, %6, %cst {dimension_numbers = #tpu.dot_dimension_numbers<[1], [0], [0], [1], [0, 0, 1, 1], [], []>} : vector<8x1024xf32>, vector<1024x256xf32>, vector<8x256xf32> -> vector<8x256xf32>
    %8 = vector.extract_strided_slice %7 {offsets = [0, 0], sizes = [8, 64], strides = [1, 1]} : vector<8x256xf32> to vector<8x64xf32>
    %9 = vector.extract_strided_slice %7 {offsets = [0, 0], sizes = [8, 64], strides = [1, 1]} : vector<8x256xf32> to vector<8x64xf32>
    %cst_7 = arith.constant dense<0xFF800000> : vector<8xf32>
    %10 = vector.multi_reduction <maximumf>, %9, %cst_7 [1] : vector<8x64xf32> to vector<8xf32>
    %11 = vector.shape_cast %10 : vector<8xf32> to vector<8x1xf32>
    %cst_8 = arith.constant 5.000000e-01 : f32
    %12 = vector.broadcast %cst_8 : f32 to vector<8x1xf32>
    %13 = arith.mulf %12, %11 : vector<8x1xf32>
    %14 = vector.broadcast %13 : vector<8x1xf32> to vector<8x64xf32>
    %15 = arith.subf %8, %14 : vector<8x64xf32>
    %16 = vector.extract_strided_slice %7 {offsets = [0, 64], sizes = [8, 64], strides = [1, 1]} : vector<8x256xf32> to vector<8x64xf32>
    %17 = vector.extract_strided_slice %7 {offsets = [0, 64], sizes = [8, 64], strides = [1, 1]} : vector<8x256xf32> to vector<8x64xf32>
    %cst_9 = arith.constant dense<0xFF800000> : vector<8xf32>
    %18 = vector.multi_reduction <maximumf>, %17, %cst_9 [1] : vector<8x64xf32> to vector<8xf32>
    %19 = vector.shape_cast %18 : vector<8xf32> to vector<8x1xf32>
    %cst_10 = arith.constant 5.000000e-01 : f32
    %20 = vector.broadcast %cst_10 : f32 to vector<8x1xf32>
    %21 = arith.mulf %20, %19 : vector<8x1xf32>
    %22 = vector.broadcast %21 : vector<8x1xf32> to vector<8x64xf32>
    %23 = arith.subf %16, %22 : vector<8x64xf32>
    %24 = vector.extract_strided_slice %7 {offsets = [0, 128], sizes = [8, 64], strides = [1, 1]} : vector<8x256xf32> to vector<8x64xf32>
    %25 = vector.extract_strided_slice %7 {offsets = [0, 128], sizes = [8, 64], strides = [1, 1]} : vector<8x256xf32> to vector<8x64xf32>
    %cst_11 = arith.constant dense<0xFF800000> : vector<8xf32>
    %26 = vector.multi_reduction <maximumf>, %25, %cst_11 [1] : vector<8x64xf32> to vector<8xf32>
    %27 = vector.shape_cast %26 : vector<8xf32> to vector<8x1xf32>
    %cst_12 = arith.constant 5.000000e-01 : f32
    %28 = vector.broadcast %cst_12 : f32 to vector<8x1xf32>
    %29 = arith.mulf %28, %27 : vector<8x1xf32>
    %30 = vector.broadcast %29 : vector<8x1xf32> to vector<8x64xf32>
    %31 = arith.subf %24, %30 : vector<8x64xf32>
    %32 = vector.extract_strided_slice %7 {offsets = [0, 192], sizes = [8, 64], strides = [1, 1]} : vector<8x256xf32> to vector<8x64xf32>
    %33 = vector.extract_strided_slice %7 {offsets = [0, 192], sizes = [8, 64], strides = [1, 1]} : vector<8x256xf32> to vector<8x64xf32>
    %cst_13 = arith.constant dense<0xFF800000> : vector<8xf32>
    %34 = vector.multi_reduction <maximumf>, %33, %cst_13 [1] : vector<8x64xf32> to vector<8xf32>
    %35 = vector.shape_cast %34 : vector<8xf32> to vector<8x1xf32>
    %cst_14 = arith.constant 5.000000e-01 : f32
    %36 = vector.broadcast %cst_14 : f32 to vector<8x1xf32>
    %37 = arith.mulf %36, %35 : vector<8x1xf32>
    %38 = vector.broadcast %37 : vector<8x1xf32> to vector<8x64xf32>
    %39 = arith.subf %32, %38 : vector<8x64xf32>
    %40 = tpu.concatenate %15, %23, %31, %39 in 1 : vector<8x64xf32>, vector<8x64xf32>, vector<8x64xf32>, vector<8x64xf32> -> vector<8x256xf32>
    %41 = arith.negf %40 : vector<8x256xf32>
    %42 = math.exp %41 : vector<8x256xf32>
    %cst_15 = arith.constant 1.000000e+00 : f32
    %43 = vector.broadcast %cst_15 : f32 to vector<8x256xf32>
    %44 = arith.addf %43, %42 : vector<8x256xf32>
    %45 = arith.divf %43, %44 : vector<8x256xf32>
    %c0_16 = arith.constant 0 : index
    %c0_17 = arith.constant 0 : index
    %46 = vector.load %arg3[%c0_16, %c0_17] : memref<8x1024xf32, #tpu.memory_space<vmem>>, vector<8x256xf32>
    tpu.vector_store %arg3[%c0_16, %c0_17], %45 {strides = array<i32>} : memref<8x1024xf32, #tpu.memory_space<vmem>>, vector<8x256xf32>,
    %c0_18 = arith.constant 0 : index
    %c256 = arith.constant 256 : index
    %47 = vector.load %arg1[%c0_18, %c256] : memref<8x4096xf32, #tpu.memory_space<vmem>>, vector<8x256xf32>
    %c0_19 = arith.constant 0 : index
    %c1280 = arith.constant 1280 : index
    %48 = vector.load %arg1[%c0_19, %c1280] : memref<8x4096xf32, #tpu.memory_space<vmem>>, vector<8x256xf32>
    %c0_20 = arith.constant 0 : index
    %c2304 = arith.constant 2304 : index
    %49 = vector.load %arg1[%c0_20, %c2304] : memref<8x4096xf32, #tpu.memory_space<vmem>>, vector<8x256xf32>
    %c0_21 = arith.constant 0 : index
    %c3328 = arith.constant 3328 : index
    %50 = vector.load %arg1[%c0_21, %c3328] : memref<8x4096xf32, #tpu.memory_space<vmem>>, vector<8x256xf32>
    %51 = tpu.concatenate %47, %48, %49, %50 in 1 : vector<8x256xf32>, vector<8x256xf32>, vector<8x256xf32>, vector<8x256xf32> -> vector<8x1024xf32>
    %c1 = arith.constant 1 : index
    %c0_22 = arith.constant 0 : index
    %c0_23 = arith.constant 0 : index
    %52 = vector.load %arg2[%c1, %c0_22, %c0_23] : memref<4x1024x256xf32, #tpu.memory_space<vmem>>, vector<1x1024x256xf32>
    %53 = vector.shape_cast %52 : vector<1x1024x256xf32> to vector<1024x256xf32>
    %cst_24 = arith.constant dense<0.000000e+00> : vector<8x256xf32>
    %54 = tpu.matmul %51, %53, %cst_24 {dimension_numbers = #tpu.dot_dimension_numbers<[1], [0], [0], [1], [0, 0, 1, 1], [], []>} : vector<8x1024xf32>, vector<1024x256xf32>, vector<8x256xf32> -> vector<8x256xf32>
    %55 = vector.extract_strided_slice %54 {offsets = [0, 0], sizes = [8, 64], strides = [1, 1]} : vector<8x256xf32> to vector<8x64xf32>
    %56 = vector.extract_strided_slice %54 {offsets = [0, 0], sizes = [8, 64], strides = [1, 1]} : vector<8x256xf32> to vector<8x64xf32>
    %cst_25 = arith.constant dense<0xFF800000> : vector<8xf32>
    %57 = vector.multi_reduction <maximumf>, %56, %cst_25 [1] : vector<8x64xf32> to vector<8xf32>
    %58 = vector.shape_cast %57 : vector<8xf32> to vector<8x1xf32>
    %cst_26 = arith.constant 5.000000e-01 : f32
    %59 = vector.broadcast %cst_26 : f32 to vector<8x1xf32>
    %60 = arith.mulf %59, %58 : vector<8x1xf32>
    %61 = vector.broadcast %60 : vector<8x1xf32> to vector<8x64xf32>
    %62 = arith.subf %55, %61 : vector<8x64xf32>
    %63 = vector.extract_strided_slice %54 {offsets = [0, 64], sizes = [8, 64], strides = [1, 1]} : vector<8x256xf32> to vector<8x64xf32>
    %64 = vector.extract_strided_slice %54 {offsets = [0, 64], sizes = [8, 64], strides = [1, 1]} : vector<8x256xf32> to vector<8x64xf32>
    %cst_27 = arith.constant dense<0xFF800000> : vector<8xf32>
    %65 = vector.multi_reduction <maximumf>, %64, %cst_27 [1] : vector<8x64xf32> to vector<8xf32>
    %66 = vector.shape_cast %65 : vector<8xf32> to vector<8x1xf32>
    %cst_28 = arith.constant 5.000000e-01 : f32
    %67 = vector.broadcast %cst_28 : f32 to vector<8x1xf32>
    %68 = arith.mulf %67, %66 : vector<8x1xf32>
    %69 = vector.broadcast %68 : vector<8x1xf32> to vector<8x64xf32>
    %70 = arith.subf %63, %69 : vector<8x64xf32>
    %71 = vector.extract_strided_slice %54 {offsets = [0, 128], sizes = [8, 64], strides = [1, 1]} : vector<8x256xf32> to vector<8x64xf32>
    %72 = vector.extract_strided_slice %54 {offsets = [0, 128], sizes = [8, 64], strides = [1, 1]} : vector<8x256xf32> to vector<8x64xf32>
    %cst_29 = arith.constant dense<0xFF800000> : vector<8xf32>
    %73 = vector.multi_reduction <maximumf>, %72, %cst_29 [1] : vector<8x64xf32> to vector<8xf32>
    %74 = vector.shape_cast %73 : vector<8xf32> to vector<8x1xf32>
    %cst_30 = arith.constant 5.000000e-01 : f32
    %75 = vector.broadcast %cst_30 : f32 to vector<8x1xf32>
    %76 = arith.mulf %75, %74 : vector<8x1xf32>
    %77 = vector.broadcast %76 : vector<8x1xf32> to vector<8x64xf32>
    %78 = arith.subf %71, %77 : vector<8x64xf32>
    %79 = vector.extract_strided_slice %54 {offsets = [0, 192], sizes = [8, 64], strides = [1, 1]} : vector<8x256xf32> to vector<8x64xf32>
    %80 = vector.extract_strided_slice %54 {offsets = [0, 192], sizes = [8, 64], strides = [1, 1]} : vector<8x256xf32> to vector<8x64xf32>
    %cst_31 = arith.constant dense<0xFF800000> : vector<8xf32>
    %81 = vector.multi_reduction <maximumf>, %80, %cst_31 [1] : vector<8x64xf32> to vector<8xf32>
    %82 = vector.shape_cast %81 : vector<8xf32> to vector<8x1xf32>
    %cst_32 = arith.constant 5.000000e-01 : f32
    %83 = vector.broadcast %cst_32 : f32 to vector<8x1xf32>
    %84 = arith.mulf %83, %82 : vector<8x1xf32>
    %85 = vector.broadcast %84 : vector<8x1xf32> to vector<8x64xf32>
    %86 = arith.subf %79, %85 : vector<8x64xf32>
    %87 = tpu.concatenate %62, %70, %78, %86 in 1 : vector<8x64xf32>, vector<8x64xf32>, vector<8x64xf32>, vector<8x64xf32> -> vector<8x256xf32>
    %88 = arith.negf %87 : vector<8x256xf32>
    %89 = math.exp %88 : vector<8x256xf32>
    %cst_33 = arith.constant 1.000000e+00 : f32
    %90 = vector.broadcast %cst_33 : f32 to vector<8x256xf32>
    %91 = arith.addf %90, %89 : vector<8x256xf32>
    %92 = arith.divf %90, %91 : vector<8x256xf32>
    %c0_34 = arith.constant 0 : index
    %c256_35 = arith.constant 256 : index
    %93 = vector.load %arg3[%c0_34, %c256_35] : memref<8x1024xf32, #tpu.memory_space<vmem>>, vector<8x256xf32>
    tpu.vector_store %arg3[%c0_34, %c256_35], %92 {strides = array<i32>} : memref<8x1024xf32, #tpu.memory_space<vmem>>, vector<8x256xf32>,
    %c0_36 = arith.constant 0 : index
    %c512 = arith.constant 512 : index
    %94 = vector.load %arg1[%c0_36, %c512] : memref<8x4096xf32, #tpu.memory_space<vmem>>, vector<8x256xf32>
    %c0_37 = arith.constant 0 : index
    %c1536 = arith.constant 1536 : index
    %95 = vector.load %arg1[%c0_37, %c1536] : memref<8x4096xf32, #tpu.memory_space<vmem>>, vector<8x256xf32>
    %c0_38 = arith.constant 0 : index
    %c2560 = arith.constant 2560 : index
    %96 = vector.load %arg1[%c0_38, %c2560] : memref<8x4096xf32, #tpu.memory_space<vmem>>, vector<8x256xf32>
    %c0_39 = arith.constant 0 : index
    %c3584 = arith.constant 3584 : index
    %97 = vector.load %arg1[%c0_39, %c3584] : memref<8x4096xf32, #tpu.memory_space<vmem>>, vector<8x256xf32>
    %98 = tpu.concatenate %94, %95, %96, %97 in 1 : vector<8x256xf32>, vector<8x256xf32>, vector<8x256xf32>, vector<8x256xf32> -> vector<8x1024xf32>
    %c2 = arith.constant 2 : index
    %c0_40 = arith.constant 0 : index
    %c0_41 = arith.constant 0 : index
    %99 = vector.load %arg2[%c2, %c0_40, %c0_41] : memref<4x1024x256xf32, #tpu.memory_space<vmem>>, vector<1x1024x256xf32>
    %100 = vector.shape_cast %99 : vector<1x1024x256xf32> to vector<1024x256xf32>
    %cst_42 = arith.constant dense<0.000000e+00> : vector<8x256xf32>
    %101 = tpu.matmul %98, %100, %cst_42 {dimension_numbers = #tpu.dot_dimension_numbers<[1], [0], [0], [1], [0, 0, 1, 1], [], []>} : vector<8x1024xf32>, vector<1024x256xf32>, vector<8x256xf32> -> vector<8x256xf32>
    %102 = vector.extract_strided_slice %101 {offsets = [0, 0], sizes = [8, 64], strides = [1, 1]} : vector<8x256xf32> to vector<8x64xf32>
    %103 = vector.extract_strided_slice %101 {offsets = [0, 0], sizes = [8, 64], strides = [1, 1]} : vector<8x256xf32> to vector<8x64xf32>
    %cst_43 = arith.constant dense<0xFF800000> : vector<8xf32>
    %104 = vector.multi_reduction <maximumf>, %103, %cst_43 [1] : vector<8x64xf32> to vector<8xf32>
    %105 = vector.shape_cast %104 : vector<8xf32> to vector<8x1xf32>
    %cst_44 = arith.constant 5.000000e-01 : f32
    %106 = vector.broadcast %cst_44 : f32 to vector<8x1xf32>
    %107 = arith.mulf %106, %105 : vector<8x1xf32>
    %108 = vector.broadcast %107 : vector<8x1xf32> to vector<8x64xf32>
    %109 = arith.subf %102, %108 : vector<8x64xf32>
    %110 = vector.extract_strided_slice %101 {offsets = [0, 64], sizes = [8, 64], strides = [1, 1]} : vector<8x256xf32> to vector<8x64xf32>
    %111 = vector.extract_strided_slice %101 {offsets = [0, 64], sizes = [8, 64], strides = [1, 1]} : vector<8x256xf32> to vector<8x64xf32>
    %cst_45 = arith.constant dense<0xFF800000> : vector<8xf32>
    %112 = vector.multi_reduction <maximumf>, %111, %cst_45 [1] : vector<8x64xf32> to vector<8xf32>
    %113 = vector.shape_cast %112 : vector<8xf32> to vector<8x1xf32>
    %cst_46 = arith.constant 5.000000e-01 : f32
    %114 = vector.broadcast %cst_46 : f32 to vector<8x1xf32>
    %115 = arith.mulf %114, %113 : vector<8x1xf32>
    %116 = vector.broadcast %115 : vector<8x1xf32> to vector<8x64xf32>
    %117 = arith.subf %110, %116 : vector<8x64xf32>
    %118 = vector.extract_strided_slice %101 {offsets = [0, 128], sizes = [8, 64], strides = [1, 1]} : vector<8x256xf32> to vector<8x64xf32>
    %119 = vector.extract_strided_slice %101 {offsets = [0, 128], sizes = [8, 64], strides = [1, 1]} : vector<8x256xf32> to vector<8x64xf32>
    %cst_47 = arith.constant dense<0xFF800000> : vector<8xf32>
    %120 = vector.multi_reduction <maximumf>, %119, %cst_47 [1] : vector<8x64xf32> to vector<8xf32>
    %121 = vector.shape_cast %120 : vector<8xf32> to vector<8x1xf32>
    %cst_48 = arith.constant 5.000000e-01 : f32
    %122 = vector.broadcast %cst_48 : f32 to vector<8x1xf32>
    %123 = arith.mulf %122, %121 : vector<8x1xf32>
    %124 = vector.broadcast %123 : vector<8x1xf32> to vector<8x64xf32>
    %125 = arith.subf %118, %124 : vector<8x64xf32>
    %126 = vector.extract_strided_slice %101 {offsets = [0, 192], sizes = [8, 64], strides = [1, 1]} : vector<8x256xf32> to vector<8x64xf32>
    %127 = vector.extract_strided_slice %101 {offsets = [0, 192], sizes = [8, 64], strides = [1, 1]} : vector<8x256xf32> to vector<8x64xf32>
    %cst_49 = arith.constant dense<0xFF800000> : vector<8xf32>
    %128 = vector.multi_reduction <maximumf>, %127, %cst_49 [1] : vector<8x64xf32> to vector<8xf32>
    %129 = vector.shape_cast %128 : vector<8xf32> to vector<8x1xf32>
    %cst_50 = arith.constant 5.000000e-01 : f32
    %130 = vector.broadcast %cst_50 : f32 to vector<8x1xf32>
    %131 = arith.mulf %130, %129 : vector<8x1xf32>
    %132 = vector.broadcast %131 : vector<8x1xf32> to vector<8x64xf32>
    %133 = arith.subf %126, %132 : vector<8x64xf32>
    %134 = tpu.concatenate %109, %117, %125, %133 in 1 : vector<8x64xf32>, vector<8x64xf32>, vector<8x64xf32>, vector<8x64xf32> -> vector<8x256xf32>
    %135 = arith.negf %134 : vector<8x256xf32>
    %136 = math.exp %135 : vector<8x256xf32>
    %cst_51 = arith.constant 1.000000e+00 : f32
    %137 = vector.broadcast %cst_51 : f32 to vector<8x256xf32>
    %138 = arith.addf %137, %136 : vector<8x256xf32>
    %139 = arith.divf %137, %138 : vector<8x256xf32>
    %c0_52 = arith.constant 0 : index
    %c512_53 = arith.constant 512 : index
    %140 = vector.load %arg3[%c0_52, %c512_53] : memref<8x1024xf32, #tpu.memory_space<vmem>>, vector<8x256xf32>
    tpu.vector_store %arg3[%c0_52, %c512_53], %139 {strides = array<i32>} : memref<8x1024xf32, #tpu.memory_space<vmem>>, vector<8x256xf32>,
    %c0_54 = arith.constant 0 : index
    %c768 = arith.constant 768 : index
    %141 = vector.load %arg1[%c0_54, %c768] : memref<8x4096xf32, #tpu.memory_space<vmem>>, vector<8x256xf32>
    %c0_55 = arith.constant 0 : index
    %c1792 = arith.constant 1792 : index
    %142 = vector.load %arg1[%c0_55, %c1792] : memref<8x4096xf32, #tpu.memory_space<vmem>>, vector<8x256xf32>
    %c0_56 = arith.constant 0 : index
    %c2816 = arith.constant 2816 : index
    %143 = vector.load %arg1[%c0_56, %c2816] : memref<8x4096xf32, #tpu.memory_space<vmem>>, vector<8x256xf32>
    %c0_57 = arith.constant 0 : index
    %c3840 = arith.constant 3840 : index
    %144 = vector.load %arg1[%c0_57, %c3840] : memref<8x4096xf32, #tpu.memory_space<vmem>>, vector<8x256xf32>
    %145 = tpu.concatenate %141, %142, %143, %144 in 1 : vector<8x256xf32>, vector<8x256xf32>, vector<8x256xf32>, vector<8x256xf32> -> vector<8x1024xf32>
    %c3 = arith.constant 3 : index
    %c0_58 = arith.constant 0 : index
    %c0_59 = arith.constant 0 : index
    %146 = vector.load %arg2[%c3, %c0_58, %c0_59] : memref<4x1024x256xf32, #tpu.memory_space<vmem>>, vector<1x1024x256xf32>
    %147 = vector.shape_cast %146 : vector<1x1024x256xf32> to vector<1024x256xf32>
    %cst_60 = arith.constant dense<0.000000e+00> : vector<8x256xf32>
    %148 = tpu.matmul %145, %147, %cst_60 {dimension_numbers = #tpu.dot_dimension_numbers<[1], [0], [0], [1], [0, 0, 1, 1], [], []>} : vector<8x1024xf32>, vector<1024x256xf32>, vector<8x256xf32> -> vector<8x256xf32>
    %149 = vector.extract_strided_slice %148 {offsets = [0, 0], sizes = [8, 64], strides = [1, 1]} : vector<8x256xf32> to vector<8x64xf32>
    %150 = vector.extract_strided_slice %148 {offsets = [0, 0], sizes = [8, 64], strides = [1, 1]} : vector<8x256xf32> to vector<8x64xf32>
    %cst_61 = arith.constant dense<0xFF800000> : vector<8xf32>
    %151 = vector.multi_reduction <maximumf>, %150, %cst_61 [1] : vector<8x64xf32> to vector<8xf32>
    %152 = vector.shape_cast %151 : vector<8xf32> to vector<8x1xf32>
    %cst_62 = arith.constant 5.000000e-01 : f32
    %153 = vector.broadcast %cst_62 : f32 to vector<8x1xf32>
    %154 = arith.mulf %153, %152 : vector<8x1xf32>
    %155 = vector.broadcast %154 : vector<8x1xf32> to vector<8x64xf32>
    %156 = arith.subf %149, %155 : vector<8x64xf32>
    %157 = vector.extract_strided_slice %148 {offsets = [0, 64], sizes = [8, 64], strides = [1, 1]} : vector<8x256xf32> to vector<8x64xf32>
    %158 = vector.extract_strided_slice %148 {offsets = [0, 64], sizes = [8, 64], strides = [1, 1]} : vector<8x256xf32> to vector<8x64xf32>
    %cst_63 = arith.constant dense<0xFF800000> : vector<8xf32>
    %159 = vector.multi_reduction <maximumf>, %158, %cst_63 [1] : vector<8x64xf32> to vector<8xf32>
    %160 = vector.shape_cast %159 : vector<8xf32> to vector<8x1xf32>
    %cst_64 = arith.constant 5.000000e-01 : f32
    %161 = vector.broadcast %cst_64 : f32 to vector<8x1xf32>
    %162 = arith.mulf %161, %160 : vector<8x1xf32>
    %163 = vector.broadcast %162 : vector<8x1xf32> to vector<8x64xf32>
    %164 = arith.subf %157, %163 : vector<8x64xf32>
    %165 = vector.extract_strided_slice %148 {offsets = [0, 128], sizes = [8, 64], strides = [1, 1]} : vector<8x256xf32> to vector<8x64xf32>
    %166 = vector.extract_strided_slice %148 {offsets = [0, 128], sizes = [8, 64], strides = [1, 1]} : vector<8x256xf32> to vector<8x64xf32>
    %cst_65 = arith.constant dense<0xFF800000> : vector<8xf32>
    %167 = vector.multi_reduction <maximumf>, %166, %cst_65 [1] : vector<8x64xf32> to vector<8xf32>
    %168 = vector.shape_cast %167 : vector<8xf32> to vector<8x1xf32>
    %cst_66 = arith.constant 5.000000e-01 : f32
    %169 = vector.broadcast %cst_66 : f32 to vector<8x1xf32>
    %170 = arith.mulf %169, %168 : vector<8x1xf32>
    %171 = vector.broadcast %170 : vector<8x1xf32> to vector<8x64xf32>
    %172 = arith.subf %165, %171 : vector<8x64xf32>
    %173 = vector.extract_strided_slice %148 {offsets = [0, 192], sizes = [8, 64], strides = [1, 1]} : vector<8x256xf32> to vector<8x64xf32>
    %174 = vector.extract_strided_slice %148 {offsets = [0, 192], sizes = [8, 64], strides = [1, 1]} : vector<8x256xf32> to vector<8x64xf32>
    %cst_67 = arith.constant dense<0xFF800000> : vector<8xf32>
    %175 = vector.multi_reduction <maximumf>, %174, %cst_67 [1] : vector<8x64xf32> to vector<8xf32>
    %176 = vector.shape_cast %175 : vector<8xf32> to vector<8x1xf32>
    %cst_68 = arith.constant 5.000000e-01 : f32
    %177 = vector.broadcast %cst_68 : f32 to vector<8x1xf32>
    %178 = arith.mulf %177, %176 : vector<8x1xf32>
    %179 = vector.broadcast %178 : vector<8x1xf32> to vector<8x64xf32>
    %180 = arith.subf %173, %179 : vector<8x64xf32>
    %181 = tpu.concatenate %156, %164, %172, %180 in 1 : vector<8x64xf32>, vector<8x64xf32>, vector<8x64xf32>, vector<8x64xf32> -> vector<8x256xf32>
    %182 = arith.negf %181 : vector<8x256xf32>
    %183 = math.exp %182 : vector<8x256xf32>
    %cst_69 = arith.constant 1.000000e+00 : f32
    %184 = vector.broadcast %cst_69 : f32 to vector<8x256xf32>
    %185 = arith.addf %184, %183 : vector<8x256xf32>
    %186 = arith.divf %184, %185 : vector<8x256xf32>
    %c0_70 = arith.constant 0 : index
    %c768_71 = arith.constant 768 : index
    %187 = vector.load %arg3[%c0_70, %c768_71] : memref<8x1024xf32, #tpu.memory_space<vmem>>, vector<8x256xf32>
    tpu.vector_store %arg3[%c0_70, %c768_71], %186 {strides = array<i32>} : memref<8x1024xf32, #tpu.memory_space<vmem>>, vector<8x256xf32>,
    return
  }
  func.func @transform_0(%arg0: i32) -> (i32, i32) {
    %c0_i32 = arith.constant 0 : i32
    %c0_i32_0 = arith.constant 0 : i32
    return %arg0, %c0_i32 : i32, i32
  }
  func.func @transform_1(%arg0: i32) -> (i32, i32, i32) {
    %c0_i32 = arith.constant 0 : i32
    %c0_i32_0 = arith.constant 0 : i32
    %c0_i32_1 = arith.constant 0 : i32
    %c0_i32_2 = arith.constant 0 : i32
    return %c0_i32, %c0_i32_0, %c0_i32_1 : i32, i32, i32
  }
  func.func @transform_2(%arg0: i32) -> (i32, i32) {
    %c0_i32 = arith.constant 0 : i32
    %c0_i32_0 = arith.constant 0 : i32
    return %arg0, %c0_i32 : i32, i32
  }
}

</mosaic_0001>

<bundles_post_ra>
// kernel: eic_layer3_pallas.1
= control target key start
LH: loop header
LB: loop body
LE: loop exit
PB: predicated region body
PF: predicated region fallthrough
CT: control target
= control target key end

     0   :  { %7 = vsyncpa [#allocation3], 0  ;;  %s2690_s12 = smov [#allocation2]   ;;  %s2691_s14 = smov 256   ;;  %s3049_s0 = inlined_call_operand.vmem [shape: f32[8,4096], index: 0, kind: input, shape index: {}]   ;;  %s3050_s1 = inlined_call_operand.hbm [shape: f32[4,1024,256], index: 1, kind: input, shape index: {}]   ;;  %s3051_s2 = inlined_call_operand.vmem [shape: f32[8,1024], index: 2, kind: output, shape index: {}]  }
   0x1   :  { %s14_s11 = sshll.u32 %s3050_s1, 4  ;;  %s16_s13 = sshll.u32 %s2690_s12, 4  ;;  %s15_s11 = int_to_ptr.hbm [resolvable:$true] %s14_s11  ;;  %s17_s13 = int_to_ptr.vmem [resolvable:$true] %s16_s13 }
   0x2   :  { %s2692_s15 = smov 16  }
   0x3   :  { %22 = dma.hbm_to_vmem [thread:$0]  %s15_s11, 131072, %s17_s13, [#allocation3], %s2691_s14, %s2691_s14, %s2692_s15  }
   0x4   :  { %2688 = dma.done.wait [#allocation3], 131072  }
   0x5   :  { %2689 = vsyncadd [#allocation3], 4294836224  ;;  %v65_v0 = vld [vmem:[#allocation2 + $0xf0] sm:$0xff]  ;;  %v63_v2 = vld [vmem:[#allocation2 + $0xe0] sm:$0xff]  ;;  %vm611_vm0 = vcmask 523264   ;;  %vm617_vm1 = vcmask 1048064  }
   0x6   :  { %v129_v1 = vld [vmem:[#allocation2 + $0x2f0] sm:$0xff]  ;;  %291 = vmatpush.msra.mxu0 %v65_v0  ;;  %v127_v4 = vld [vmem:[#allocation2 + $0x2e0] sm:$0xff] }
   0x7   :  { %331 = vmatpush.msra.mxu2 %v129_v1  ;;  %v97_v3 = vld [vmem:[#allocation2 + $0x1f0] sm:$0xff]  ;;  %v95_v7 = vld [vmem:[#allocation2 + $0x1e0] sm:$0xff] }
   0x8   :  { %v161_v5 = vld [vmem:[#allocation2 + $0x3f0] sm:$0xff]  ;;  %311 = vmatpush.msra.mxu1 %v97_v3  ;;  %292 = vmatpush.msra.mxu0 %v63_v2  ;;  %v159_v9 = vld [vmem:[#allocation2 + $0x3e0] sm:$0xff] }
   0x9   :  { %351 = vmatpush.msra.mxu3 %v161_v5  ;;  %v61_v6 = vld [vmem:[#allocation2 + $0xd0] sm:$0xff]  ;;  %332 = vmatpush.msra.mxu2 %v127_v4  ;;  %v59_v11 = vld [vmem:[#allocation2 + $0xc0] sm:$0xff] }
   0xa   :  { %v125_v8 = vld [vmem:[#allocation2 + $0x2d0] sm:$0xff]  ;;  %312 = vmatpush.msra.mxu1 %v95_v7  ;;  %v123_v12 = vld [vmem:[#allocation2 + $0x2c0] sm:$0xff]  ;;  %293 = vmatpush.msra.mxu0 %v61_v6 }
   0xb   :  { %v93_v10 = vld [vmem:[#allocation2 + $0x1d0] sm:$0xff]  ;;  %352 = vmatpush.msra.mxu3 %v159_v9  ;;  %333 = vmatpush.msra.mxu2 %v125_v8  ;;  %v91_v14 = vld [vmem:[#allocation2 + $0x1c0] sm:$0xff] }
   0xc   :  { %v157_v13 = vld [vmem:[#allocation2 + $0x3d0] sm:$0xff]  ;;  %v155_v15 = vld [vmem:[#allocation2 + $0x3c0] sm:$0xff]  ;;  %313 = vmatpush.msra.mxu1 %v93_v10  ;;  %294 = vmatpush.msra.mxu0 %v59_v11 }
   0xd   :  { %353 = vmatpush.msra.mxu3 %v157_v13  ;;  %v57_v16 = vld [vmem:[#allocation2 + $0xb0] sm:$0xff]  ;;  %334 = vmatpush.msra.mxu2 %v123_v12  ;;  %v55_v20 = vld [vmem:[#allocation2 + $0xa0] sm:$0xff] }
   0xe   :  { %v121_v17 = vld [vmem:[#allocation2 + $0x2b0] sm:$0xff]  ;;  %314 = vmatpush.msra.mxu1 %v91_v14  ;;  %v119_v21 = vld [vmem:[#allocation2 + $0x2a0] sm:$0xff]  ;;  %295 = vmatpush.msra.mxu0 %v57_v16 }
   0xf   :  { %v89_v18 = vld [vmem:[#allocation2 + $0x1b0] sm:$0xff]  ;;  %354 = vmatpush.msra.mxu3 %v155_v15  ;;  %335 = vmatpush.msra.mxu2 %v121_v17  ;;  %v87_v22 = vld [vmem:[#allocation2 + $0x1a0] sm:$0xff] }
  0x10   :  { %v153_v19 = vld [vmem:[#allocation2 + $0x3b0] sm:$0xff]  ;;  %v151_v23 = vld [vmem:[#allocation2 + $0x3a0] sm:$0xff]  ;;  %315 = vmatpush.msra.mxu1 %v89_v18  ;;  %296 = vmatpush.msra.mxu0 %v55_v20 }
  0x11   :  { %355 = vmatpush.msra.mxu3 %v153_v19  ;;  %v53_v24 = vld [vmem:[#allocation2 + $0x90] sm:$0xff]  ;;  %336 = vmatpush.msra.mxu2 %v119_v21  ;;  %v51_v28 = vld [vmem:[#allocation2 + $0x80] sm:$0xff] }
  0x12   :  { %v117_v25 = vld [vmem:[#allocation2 + $0x290] sm:$0xff]  ;;  %316 = vmatpush.msra.mxu1 %v87_v22  ;;  %v115_v29 = vld [vmem:[#allocation2 + $0x280] sm:$0xff]  ;;  %297 = vmatpush.msra.mxu0 %v53_v24 }
  0x13   :  { %v85_v26 = vld [vmem:[#allocation2 + $0x190] sm:$0xff]  ;;  %356 = vmatpush.msra.mxu3 %v151_v23  ;;  %337 = vmatpush.msra.mxu2 %v117_v25  ;;  %v83_v30 = vld [vmem:[#allocation2 + $0x180] sm:$0xff] }
  0x14   :  { %v149_v27 = vld [vmem:[#allocation2 + $0x390] sm:$0xff]  ;;  %v147_v31 = vld [vmem:[#allocation2 + $0x380] sm:$0xff]  ;;  %317 = vmatpush.msra.mxu1 %v85_v26  ;;  %298 = vmatpush.msra.mxu0 %v51_v28 }
  0x15   :  { %357 = vmatpush.msra.mxu3 %v149_v27  ;;  %v49_v32 = vld [vmem:[#allocation2 + $0x70] sm:$0xff]  ;;  %338 = vmatpush.msra.mxu2 %v115_v29  ;;  %v47_v36 = vld [vmem:[#allocation2 + $0x60] sm:$0xff] }
  0x16   :  { %v113_v33 = vld [vmem:[#allocation2 + $0x270] sm:$0xff]  ;;  %318 = vmatpush.msra.mxu1 %v83_v30  ;;  %v111_v37 = vld [vmem:[#allocation2 + $0x260] sm:$0xff]  ;;  %299 = vmatpush.msra.mxu0 %v49_v32 }
  0x17   :  { %v81_v34 = vld [vmem:[#allocation2 + $0x170] sm:$0xff]  ;;  %358 = vmatpush.msra.mxu3 %v147_v31  ;;  %339 = vmatpush.msra.mxu2 %v113_v33  ;;  %v79_v38 = vld [vmem:[#allocation2 + $0x160] sm:$0xff] }
  0x18   :  { %v145_v35 = vld [vmem:[#allocation2 + $0x370] sm:$0xff]  ;;  %v143_v39 = vld [vmem:[#allocation2 + $0x360] sm:$0xff]  ;;  %319 = vmatpush.msra.mxu1 %v81_v34  ;;  %300 = vmatpush.msra.mxu0 %v47_v36 }
  0x19   :  { %359 = vmatpush.msra.mxu3 %v145_v35  ;;  %v45_v40 = vld [vmem:[#allocation2 + $0x50] sm:$0xff]  ;;  %340 = vmatpush.msra.mxu2 %v111_v37  ;;  %v43_v44 = vld [vmem:[#allocation2 + $0x40] sm:$0xff] }
  0x1a   :  { %v109_v41 = vld [vmem:[#allocation2 + $0x250] sm:$0xff]  ;;  %320 = vmatpush.msra.mxu1 %v79_v38  ;;  %v107_v45 = vld [vmem:[#allocation2 + $0x240] sm:$0xff]  ;;  %301 = vmatpush.msra.mxu0 %v45_v40 }
  0x1b   :  { %v77_v42 = vld [vmem:[#allocation2 + $0x150] sm:$0xff]  ;;  %360 = vmatpush.msra.mxu3 %v143_v39  ;;  %341 = vmatpush.msra.mxu2 %v109_v41  ;;  %v75_v46 = vld [vmem:[#allocation2 + $0x140] sm:$0xff] }
  0x1c   :  { %v141_v43 = vld [vmem:[#allocation2 + $0x350] sm:$0xff]  ;;  %v139_v47 = vld [vmem:[#allocation2 + $0x340] sm:$0xff]  ;;  %321 = vmatpush.msra.mxu1 %v77_v42  ;;  %302 = vmatpush.msra.mxu0 %v43_v44 }
  0x1d   :  { %361 = vmatpush.msra.mxu3 %v141_v43  ;;  %v41_v48 = vld [vmem:[#allocation2 + $0x30] sm:$0xff]  ;;  %342 = vmatpush.msra.mxu2 %v107_v45  ;;  %v39_v52 = vld [vmem:[#allocation2 + $0x20] sm:$0xff] }
  0x1e   :  { %v105_v49 = vld [vmem:[#allocation2 + $0x230] sm:$0xff]  ;;  %322 = vmatpush.msra.mxu1 %v75_v46  ;;  %v103_v53 = vld [vmem:[#allocation2 + $0x220] sm:$0xff]  ;;  %303 = vmatpush.msra.mxu0 %v41_v48 }
  0x1f   :  { %v73_v50 = vld [vmem:[#allocation2 + $0x130] sm:$0xff]  ;;  %362 = vmatpush.msra.mxu3 %v139_v47  ;;  %343 = vmatpush.msra.mxu2 %v105_v49  ;;  %v71_v54 = vld [vmem:[#allocation2 + $0x120] sm:$0xff] }
  0x20   :  { %v137_v51 = vld [vmem:[#allocation2 + $0x330] sm:$0xff]  ;;  %v135_v55 = vld [vmem:[#allocation2 + $0x320] sm:$0xff]  ;;  %323 = vmatpush.msra.mxu1 %v73_v50  ;;  %304 = vmatpush.msra.mxu0 %v39_v52  ;;  %v2725_v52 = vld [vmem:[%s3049_s0 + $0x48] sm:$0xff] }
  0x21   :  { %363 = vmatpush.msra.mxu3 %v137_v51  ;;  %v37_v56 = vld [vmem:[#allocation2 + $0x10] sm:$0xff]  ;;  %344 = vmatpush.msra.mxu2 %v103_v53  ;;  %v35_v60 = vld [vmem:[#allocation2] sm:$0xff] }
  0x22   :  { %v101_v57 = vld [vmem:[#allocation2 + $0x210] sm:$0xff]  ;;  %324 = vmatpush.msra.mxu1 %v71_v54  ;;  %v99_v61 = vld [vmem:[#allocation2 + $0x200] sm:$0xff]  ;;  %305 = vmatpush.msra.mxu0 %v37_v56 }
  0x23   :  { %v69_v58 = vld [vmem:[#allocation2 + $0x110] sm:$0xff]  ;;  %364 = vmatpush.msra.mxu3 %v135_v55  ;;  %345 = vmatpush.msra.mxu2 %v101_v57  ;;  %v67_v0 = vld [vmem:[#allocation2 + $0x100] sm:$0xff]  ;;  %v2731_v57 = vld [vmem:[%s3049_s0 + $0x8] sm:$0xff] }
  0x24   :  { %v133_v59 = vld [vmem:[#allocation2 + $0x310] sm:$0xff]  ;;  %325 = vmatpush.msra.mxu1 %v69_v58  ;;  %v131_v1 = vld [vmem:[#allocation2 + $0x300] sm:$0xff]  ;;  %306 = vmatpush.msra.mxu0 %v35_v60 }
  0x25   :  { %v193_v62 = vld [vmem:[#allocation2 + $0x4f0] sm:$0xff]  ;;  %365 = vmatpush.msra.mxu3 %v133_v59  ;;  %346 = vmatpush.msra.mxu2 %v99_v61  ;;  %v191_v2 = vld [vmem:[#allocation2 + $0x4e0] sm:$0xff] }
  0x26   :  { %v257_v63 = vld [vmem:[#allocation2 + $0x6f0] sm:$0xff]  ;;  %371 = vmatpush.msrb.mxu0 %v193_v62  ;;  %v255_v4 = vld [vmem:[#allocation2 + $0x6e0] sm:$0xff]  ;;  %326 = vmatpush.msra.mxu1 %v67_v0 }
  0x27   :  { %v225_v3 = vld [vmem:[#allocation2 + $0x5f0] sm:$0xff]  ;;  %411 = vmatpush.msrb.mxu2 %v257_v63  ;;  %366 = vmatpush.msra.mxu3 %v131_v1  ;;  %v223_v7 = vld [vmem:[#allocation2 + $0x5e0] sm:$0xff] }
  0x28   :  { %v289_v5 = vld [vmem:[#allocation2 + $0x7f0] sm:$0xff]  ;;  %372 = vmatpush.msrb.mxu0 %v191_v2  ;;  %391 = vmatpush.msrb.mxu1 %v225_v3  ;;  %v287_v9 = vld [vmem:[#allocation2 + $0x7e0] sm:$0xff]  ;;  %v66_v3 = vld [vmem:[#allocation2 + $0xf8] sm:$0xff] }
  0x29   :  { %v189_v6 = vld [vmem:[#allocation2 + $0x4d0] sm:$0xff]  ;;  %412 = vmatpush.msrb.mxu2 %v255_v4  ;;  %431 = vmatpush.msrb.mxu3 %v289_v5  ;;  %v187_v10 = vld [vmem:[#allocation2 + $0x4c0] sm:$0xff]  ;;  %v130_v4 = vld [vmem:[#allocation2 + $0x2f8] sm:$0xff] }
  0x2a   :  { %v253_v8 = vld [vmem:[#allocation2 + $0x6d0] sm:$0xff]  ;;  %373 = vmatpush.msrb.mxu0 %v189_v6  ;;  %392 = vmatpush.msrb.mxu1 %v223_v7  ;;  %v251_v12 = vld [vmem:[#allocation2 + $0x6c0] sm:$0xff] }
  0x2b   :  { %v221_v11 = vld [vmem:[#allocation2 + $0x5d0] sm:$0xff]  ;;  %413 = vmatpush.msrb.mxu2 %v253_v8  ;;  %432 = vmatpush.msrb.mxu3 %v287_v9  ;;  %v219_v15 = vld [vmem:[#allocation2 + $0x5c0] sm:$0xff]  ;;  %v2749_v8 = vld [vmem:[%s3049_s0 + $0xc8] sm:$0xff] }
  0x2c   :  { %v285_v13 = vld [vmem:[#allocation2 + $0x7d0] sm:$0xff]  ;;  %374 = vmatpush.msrb.mxu0 %v187_v10  ;;  %393 = vmatpush.msrb.mxu1 %v221_v11  ;;  %v283_v17 = vld [vmem:[#allocation2 + $0x7c0] sm:$0xff]  ;;  %v64_v9 = vld [vmem:[#allocation2 + $0xe8] sm:$0xff] }
  0x2d   :  { %v185_v14 = vld [vmem:[#allocation2 + $0x4b0] sm:$0xff]  ;;  %414 = vmatpush.msrb.mxu2 %v251_v12  ;;  %433 = vmatpush.msrb.mxu3 %v285_v13  ;;  %v183_v18 = vld [vmem:[#allocation2 + $0x4a0] sm:$0xff]  ;;  %v98_v10 = vld [vmem:[#allocation2 + $0x1f8] sm:$0xff] }
  0x2e   :  { %v249_v16 = vld [vmem:[#allocation2 + $0x6b0] sm:$0xff]  ;;  %375 = vmatpush.msrb.mxu0 %v185_v14  ;;  %394 = vmatpush.msrb.mxu1 %v219_v15  ;;  %v247_v20 = vld [vmem:[#allocation2 + $0x6a0] sm:$0xff]  ;;  %v128_v11 = vld [vmem:[#allocation2 + $0x2e8] sm:$0xff] }
  0x2f   :  { %v217_v19 = vld [vmem:[#allocation2 + $0x5b0] sm:$0xff]  ;;  %415 = vmatpush.msrb.mxu2 %v249_v16  ;;  %434 = vmatpush.msrb.mxu3 %v283_v17  ;;  %v215_v23 = vld [vmem:[#allocation2 + $0x5a0] sm:$0xff]  ;;  %v162_v12 = vld [vmem:[#allocation2 + $0x3f8] sm:$0xff] }
  0x30   :  { %v281_v21 = vld [vmem:[#allocation2 + $0x7b0] sm:$0xff]  ;;  %376 = vmatpush.msrb.mxu0 %v183_v18  ;;  %395 = vmatpush.msrb.mxu1 %v217_v19  ;;  %v279_v25 = vld [vmem:[#allocation2 + $0x7a0] sm:$0xff]  ;;  %v2755_v13 = vld [vmem:[%s3049_s0 + $0x88] sm:$0xff] }
  0x31   :  { %v181_v22 = vld [vmem:[#allocation2 + $0x490] sm:$0xff]  ;;  %416 = vmatpush.msrb.mxu2 %v247_v20  ;;  %435 = vmatpush.msrb.mxu3 %v281_v21  ;;  %v179_v26 = vld [vmem:[#allocation2 + $0x480] sm:$0xff]  ;;  %v62_v14 = vld [vmem:[#allocation2 + $0xd8] sm:$0xff] }
  0x32   :  { %v245_v24 = vld [vmem:[#allocation2 + $0x690] sm:$0xff]  ;;  %377 = vmatpush.msrb.mxu0 %v181_v22  ;;  %396 = vmatpush.msrb.mxu1 %v215_v23  ;;  %v243_v28 = vld [vmem:[#allocation2 + $0x680] sm:$0xff]  ;;  %v96_v15 = vld [vmem:[#allocation2 + $0x1e8] sm:$0xff] }
  0x33   :  { %v213_v27 = vld [vmem:[#allocation2 + $0x590] sm:$0xff]  ;;  %417 = vmatpush.msrb.mxu2 %v245_v24  ;;  %436 = vmatpush.msrb.mxu3 %v279_v25  ;;  %v211_v31 = vld [vmem:[#allocation2 + $0x580] sm:$0xff]  ;;  %v126_v16 = vld [vmem:[#allocation2 + $0x2d8] sm:$0xff] }
  0x34   :  { %v277_v29 = vld [vmem:[#allocation2 + $0x790] sm:$0xff]  ;;  %378 = vmatpush.msrb.mxu0 %v179_v26  ;;  %397 = vmatpush.msrb.mxu1 %v213_v27  ;;  %v275_v33 = vld [vmem:[#allocation2 + $0x780] sm:$0xff]  ;;  %v160_v17 = vld [vmem:[#allocation2 + $0x3e8] sm:$0xff] }
  0x35   :  { %v177_v30 = vld [vmem:[#allocation2 + $0x470] sm:$0xff]  ;;  %418 = vmatpush.msrb.mxu2 %v243_v28  ;;  %437 = vmatpush.msrb.mxu3 %v277_v29  ;;  %v175_v34 = vld [vmem:[#allocation2 + $0x460] sm:$0xff]  ;;  %v60_v18 = vld [vmem:[#allocation2 + $0xc8] sm:$0xff] }
  0x36   :  { %v241_v32 = vld [vmem:[#allocation2 + $0x670] sm:$0xff]  ;;  %379 = vmatpush.msrb.mxu0 %v177_v30  ;;  %398 = vmatpush.msrb.mxu1 %v211_v31  ;;  %v239_v36 = vld [vmem:[#allocation2 + $0x660] sm:$0xff]  ;;  %v94_v19 = vld [vmem:[#allocation2 + $0x1d8] sm:$0xff] }
  0x37   :  { %v209_v35 = vld [vmem:[#allocation2 + $0x570] sm:$0xff]  ;;  %419 = vmatpush.msrb.mxu2 %v241_v32  ;;  %438 = vmatpush.msrb.mxu3 %v275_v33  ;;  %v207_v39 = vld [vmem:[#allocation2 + $0x560] sm:$0xff]  ;;  %v124_v20 = vld [vmem:[#allocation2 + $0x2c8] sm:$0xff] }
  0x38   :  { %v273_v37 = vld [vmem:[#allocation2 + $0x770] sm:$0xff]  ;;  %380 = vmatpush.msrb.mxu0 %v175_v34  ;;  %399 = vmatpush.msrb.mxu1 %v209_v35  ;;  %v271_v41 = vld [vmem:[#allocation2 + $0x760] sm:$0xff]  ;;  %v158_v21 = vld [vmem:[#allocation2 + $0x3d8] sm:$0xff] }
  0x39   :  { %v173_v38 = vld [vmem:[#allocation2 + $0x450] sm:$0xff]  ;;  %420 = vmatpush.msrb.mxu2 %v239_v36  ;;  %439 = vmatpush.msrb.mxu3 %v273_v37  ;;  %v171_v42 = vld [vmem:[#allocation2 + $0x440] sm:$0xff]  ;;  %v58_v22 = vld [vmem:[#allocation2 + $0xb8] sm:$0xff] }
  0x3a   :  { %v237_v40 = vld [vmem:[#allocation2 + $0x650] sm:$0xff]  ;;  %381 = vmatpush.msrb.mxu0 %v173_v38  ;;  %400 = vmatpush.msrb.mxu1 %v207_v39  ;;  %v235_v44 = vld [vmem:[#allocation2 + $0x640] sm:$0xff]  ;;  %v92_v23 = vld [vmem:[#allocation2 + $0x1c8] sm:$0xff] }
  0x3b   :  { %v205_v43 = vld [vmem:[#allocation2 + $0x550] sm:$0xff]  ;;  %421 = vmatpush.msrb.mxu2 %v237_v40  ;;  %440 = vmatpush.msrb.mxu3 %v271_v41  ;;  %v2714_v46 = vld [vmem:[%s3049_s0 + $0x40] sm:$0xff]  ;;  %v122_v24 = vld [vmem:[#allocation2 + $0x2b8] sm:$0xff] }
  0x3c   :  { %v269_v45 = vld [vmem:[#allocation2 + $0x750] sm:$0xff]  ;;  %382 = vmatpush.msrb.mxu0 %v171_v42  ;;  %401 = vmatpush.msrb.mxu1 %v205_v43  ;;  %v203_v48 = vld [vmem:[#allocation2 + $0x540] sm:$0xff]  ;;  %v156_v25 = vld [vmem:[#allocation2 + $0x3c8] sm:$0xff] }
  0x3d   :  { %v169_v47 = vld [vmem:[#allocation2 + $0x430] sm:$0xff]  ;;  %422 = vmatpush.msrb.mxu2 %v235_v44  ;;  %441 = vmatpush.msrb.mxu3 %v269_v45  ;;  %v267_v50 = vld [vmem:[#allocation2 + $0x740] sm:$0xff]  ;;  %v56_v26 = vld [vmem:[#allocation2 + $0xa8] sm:$0xff] }
  0x3e   :  { %v233_v49 = vld [vmem:[#allocation2 + $0x630] sm:$0xff]  ;;  %v2719_v51 = vld [vmem:[%s3049_s0] sm:$0xff]  ;;  %347 = vmatmul.f32.vlgmr.msra.gmra.mxu2 %v2714_v46  ;;  %383 = vmatpush.msrb.mxu0 %v169_v47  ;;  %v90_v27 = vld [vmem:[#allocation2 + $0x1b8] sm:$0xff] }
  0x3f   :  { %v167_v53 = vld [vmem:[#allocation2 + $0x420] sm:$0xff]  ;;  %402 = vmatpush.msrb.mxu1 %v203_v48  ;;  %423 = vmatpush.msrb.mxu2 %v233_v49  ;;  %v201_v54 = vld [vmem:[#allocation2 + $0x530] sm:$0xff]  ;;  %v120_v28 = vld [vmem:[#allocation2 + $0x2a8] sm:$0xff] }
  0x40   :  { %v231_v55 = vld [vmem:[#allocation2 + $0x620] sm:$0xff]  ;;  %442 = vmatpush.msrb.mxu3 %v267_v50  ;;  %307 = vmatmul.f32.vlgmr.msra.gmra.mxu0 %v2719_v51  ;;  %v265_v56 = vld [vmem:[#allocation2 + $0x730] sm:$0xff]  ;;  %v154_v29 = vld [vmem:[#allocation2 + $0x3b8] sm:$0xff] }
  0x41   :  { %367 = vmatmul.f32.vlgmr.msra.gmra.mxu3 %v2725_v52  ;;  %384 = vmatpush.msrb.mxu0 %v167_v53  ;;  %v165_v58 = vld [vmem:[#allocation2 + $0x410] sm:$0xff]  ;;  %v199_v59 = vld [vmem:[#allocation2 + $0x520] sm:$0xff]  ;;  %v54_v30 = vld [vmem:[#allocation2 + $0x98] sm:$0xff] }
  0x42   :  { %403 = vmatpush.msrb.mxu1 %v201_v54  ;;  %424 = vmatpush.msrb.mxu2 %v231_v55  ;;  %v229_v60 = vld [vmem:[#allocation2 + $0x610] sm:$0xff]  ;;  %v263_v61 = vld [vmem:[#allocation2 + $0x720] sm:$0xff]  ;;  %v88_v31 = vld [vmem:[#allocation2 + $0x1a8] sm:$0xff] }
  0x43   :  { %443 = vmatpush.msrb.mxu3 %v265_v56  ;;  %327 = vmatmul.f32.vlgmr.msra.gmra.mxu1 %v2731_v57  ;;  %v163_v62 = vld [vmem:[#allocation2 + $0x400] sm:$0xff]  ;;  %v197_v63 = vld [vmem:[#allocation2 + $0x510] sm:$0xff]  ;;  %v118_v32 = vld [vmem:[#allocation2 + $0x298] sm:$0xff] }
  0x44   :  { %385 = vmatpush.msrb.mxu0 %v165_v58  ;;  %404 = vmatpush.msrb.mxu1 %v199_v59  ;;  %v227_v0 = vld [vmem:[#allocation2 + $0x600] sm:$0xff]  ;;  %v261_v1 = vld [vmem:[#allocation2 + $0x710] sm:$0xff]  ;;  %v152_v33 = vld [vmem:[#allocation2 + $0x3a8] sm:$0xff] }
  0x45   :  { %425 = vmatpush.msrb.mxu2 %v229_v60  ;;  %444 = vmatpush.msrb.mxu3 %v263_v61  ;;  %v2738_v2 = vld [vmem:[%s3049_s0 + $0xc0] sm:$0xff]  ;;  %v52_v34 = vld [vmem:[#allocation2 + $0x88] sm:$0xff]  ;;  %v86_v35 = vld [vmem:[#allocation2 + $0x198] sm:$0xff] }
  0x46   :  { %386 = vmatpush.msrb.mxu0 %v163_v62  ;;  %405 = vmatpush.msrb.mxu1 %v197_v63  ;;  %v195_v5 = vld [vmem:[#allocation2 + $0x500] sm:$0xff]  ;;  %v116_v36 = vld [vmem:[#allocation2 + $0x288] sm:$0xff]  ;;  %v150_v37 = vld [vmem:[#allocation2 + $0x398] sm:$0xff] }
  0x47   :  { %426 = vmatpush.msrb.mxu2 %v227_v0  ;;  %445 = vmatpush.msrb.mxu3 %v261_v1  ;;  %v259_v6 = vld [vmem:[#allocation2 + $0x700] sm:$0xff]  ;;  %v50_v38 = vld [vmem:[#allocation2 + $0x78] sm:$0xff]  ;;  %v84_v39 = vld [vmem:[#allocation2 + $0x188] sm:$0xff] }
  0x48   :  { %v2743_v7 = vld [vmem:[%s3049_s0 + $0x80] sm:$0xff]  ;;  %427 = vmatmul.f32.vlgmr.msrb.gmra.mxu2 %v2738_v2  ;;  %451 = vmatpush.msra.mxu0 %v66_v3  ;;  %v114_v40 = vld [vmem:[#allocation2 + $0x278] sm:$0xff]  ;;  %v148_v41 = vld [vmem:[#allocation2 + $0x388] sm:$0xff] }
  0x49   :  { %491 = vmatpush.msra.mxu2 %v130_v4  ;;  %406 = vmatpush.msrb.mxu1 %v195_v5  ;;  %v48_v42 = vld [vmem:[#allocation2 + $0x68] sm:$0xff]  ;;  %v82_v43 = vld [vmem:[#allocation2 + $0x178] sm:$0xff] }
  0x4a   :  { %446 = vmatpush.msrb.mxu3 %v259_v6  ;;  %387 = vmatmul.f32.vlgmr.msrb.gmra.mxu0 %v2743_v7  ;;  %v112_v44 = vld [vmem:[#allocation2 + $0x268] sm:$0xff]  ;;  %v146_v45 = vld [vmem:[#allocation2 + $0x378] sm:$0xff] }
  0x4b   :  { %447 = vmatmul.f32.vlgmr.msrb.gmra.mxu3 %v2749_v8  ;;  %452 = vmatpush.msra.mxu0 %v64_v9  ;;  %v46_v47 = vld [vmem:[#allocation2 + $0x58] sm:$0xff]  ;;  %v80_v48 = vld [vmem:[#allocation2 + $0x168] sm:$0xff] }
  0x4c   :  { %471 = vmatpush.msra.mxu1 %v98_v10  ;;  %492 = vmatpush.msra.mxu2 %v128_v11  ;;  %v110_v49 = vld [vmem:[#allocation2 + $0x258] sm:$0xff]  ;;  %v144_v50 = vld [vmem:[#allocation2 + $0x368] sm:$0xff] }
  0x4d   :  { %511 = vmatpush.msra.mxu3 %v162_v12  ;;  %407 = vmatmul.f32.vlgmr.msrb.gmra.mxu1 %v2755_v13  ;;  %v44_v53 = vld [vmem:[#allocation2 + $0x48] sm:$0xff]  ;;  %v78_v54 = vld [vmem:[#allocation2 + $0x158] sm:$0xff] }
  0x4e   :  { %453 = vmatpush.msra.mxu0 %v62_v14  ;;  %472 = vmatpush.msra.mxu1 %v96_v15  ;;  %v108_v55 = vld [vmem:[#allocation2 + $0x248] sm:$0xff]  ;;  %v142_v56 = vld [vmem:[#allocation2 + $0x358] sm:$0xff] }
  0x4f   :  { %493 = vmatpush.msra.mxu2 %v126_v16  ;;  %512 = vmatpush.msra.mxu3 %v160_v17  ;;  %v42_v58 = vld [vmem:[#allocation2 + $0x38] sm:$0xff]  ;;  %v76_v59 = vld [vmem:[#allocation2 + $0x148] sm:$0xff] }
  0x50   :  { %454 = vmatpush.msra.mxu0 %v60_v18  ;;  %473 = vmatpush.msra.mxu1 %v94_v19  ;;  %v106_v60 = vld [vmem:[#allocation2 + $0x238] sm:$0xff]  ;;  %v140_v61 = vld [vmem:[#allocation2 + $0x348] sm:$0xff] }
  0x51   :  { %494 = vmatpush.msra.mxu2 %v124_v20  ;;  %513 = vmatpush.msra.mxu3 %v158_v21  ;;  %v40_v62 = vld [vmem:[#allocation2 + $0x28] sm:$0xff]  ;;  %v74_v63 = vld [vmem:[#allocation2 + $0x138] sm:$0xff] }
  0x52   :  { %455 = vmatpush.msra.mxu0 %v58_v22  ;;  %474 = vmatpush.msra.mxu1 %v92_v23  ;;  %v104_v0 = vld [vmem:[#allocation2 + $0x228] sm:$0xff]  ;;  %v138_v1 = vld [vmem:[#allocation2 + $0x338] sm:$0xff] }
  0x53   :  { %495 = vmatpush.msra.mxu2 %v122_v24  ;;  %514 = vmatpush.msra.mxu3 %v156_v25  ;;  %v38_v3 = vld [vmem:[#allocation2 + $0x18] sm:$0xff]  ;;  %v72_v4 = vld [vmem:[#allocation2 + $0x128] sm:$0xff] }
  0x54   :  { %456 = vmatpush.msra.mxu0 %v56_v26  ;;  %475 = vmatpush.msra.mxu1 %v90_v27  ;;  %v102_v5 = vld [vmem:[#allocation2 + $0x218] sm:$0xff]  ;;  %v136_v6 = vld [vmem:[#allocation2 + $0x328] sm:$0xff] }
  0x55   :  { %496 = vmatpush.msra.mxu2 %v120_v28  ;;  %515 = vmatpush.msra.mxu3 %v154_v29  ;;  %v36_v9 = vld [vmem:[#allocation2 + $0x8] sm:$0xff]  ;;  %v70_v10 = vld [vmem:[#allocation2 + $0x118] sm:$0xff] }
  0x56   :  { %457 = vmatpush.msra.mxu0 %v54_v30  ;;  %476 = vmatpush.msra.mxu1 %v88_v31  ;;  %v100_v11 = vld [vmem:[#allocation2 + $0x208] sm:$0xff]  ;;  %v134_v12 = vld [vmem:[#allocation2 + $0x318] sm:$0xff] }
  0x57   :  { %497 = vmatpush.msra.mxu2 %v118_v32  ;;  %516 = vmatpush.msra.mxu3 %v152_v33  ;;  %v194_v14 = vld [vmem:[#allocation2 + $0x4f8] sm:$0xff]  ;;  %v68_v16 = vld [vmem:[#allocation2 + $0x108] sm:$0xff] }
  0x58   :  { %458 = vmatpush.msra.mxu0 %v52_v34  ;;  %477 = vmatpush.msra.mxu1 %v86_v35  ;;  %v258_v15 = vld [vmem:[#allocation2 + $0x6f8] sm:$0xff]  ;;  %v132_v17 = vld [vmem:[#allocation2 + $0x308] sm:$0xff] }
  0x59   :  { %498 = vmatpush.msra.mxu2 %v116_v36  ;;  %517 = vmatpush.msra.mxu3 %v150_v37  ;;  %v192_v18 = vld [vmem:[#allocation2 + $0x4e8] sm:$0xff]  ;;  %v226_v19 = vld [vmem:[#allocation2 + $0x5f8] sm:$0xff] }
  0x5a   :  { %459 = vmatpush.msra.mxu0 %v50_v38  ;;  %478 = vmatpush.msra.mxu1 %v84_v39  ;;  %v256_v20 = vld [vmem:[#allocation2 + $0x6e8] sm:$0xff]  ;;  %v290_v21 = vld [vmem:[#allocation2 + $0x7f8] sm:$0xff] }
  0x5b   :  { %499 = vmatpush.msra.mxu2 %v114_v40  ;;  %518 = vmatpush.msra.mxu3 %v148_v41  ;;  %v190_v22 = vld [vmem:[#allocation2 + $0x4d8] sm:$0xff]  ;;  %v224_v23 = vld [vmem:[#allocation2 + $0x5e8] sm:$0xff] }
  0x5c   :  { %460 = vmatpush.msra.mxu0 %v48_v42  ;;  %479 = vmatpush.msra.mxu1 %v82_v43  ;;  %v254_v24 = vld [vmem:[#allocation2 + $0x6d8] sm:$0xff]  ;;  %v288_v25 = vld [vmem:[#allocation2 + $0x7e8] sm:$0xff] }
  0x5d   :  { %500 = vmatpush.msra.mxu2 %v112_v44  ;;  %519 = vmatpush.msra.mxu3 %v146_v45  ;;  %v188_v26 = vld [vmem:[#allocation2 + $0x4c8] sm:$0xff]  ;;  %v222_v27 = vld [vmem:[#allocation2 + $0x5d8] sm:$0xff] }
  0x5e   :  { %461 = vmatpush.msra.mxu0 %v46_v47  ;;  %480 = vmatpush.msra.mxu1 %v80_v48  ;;  %v252_v28 = vld [vmem:[#allocation2 + $0x6c8] sm:$0xff]  ;;  %v286_v29 = vld [vmem:[#allocation2 + $0x7d8] sm:$0xff] }
  0x5f   :  { %501 = vmatpush.msra.mxu2 %v110_v49  ;;  %520 = vmatpush.msra.mxu3 %v144_v50  ;;  %v186_v30 = vld [vmem:[#allocation2 + $0x4b8] sm:$0xff]  ;;  %v220_v31 = vld [vmem:[#allocation2 + $0x5c8] sm:$0xff] }
  0x60   :  { %462 = vmatpush.msra.mxu0 %v44_v53  ;;  %481 = vmatpush.msra.mxu1 %v78_v54  ;;  %v250_v32 = vld [vmem:[#allocation2 + $0x6b8] sm:$0xff]  ;;  %v284_v33 = vld [vmem:[#allocation2 + $0x7c8] sm:$0xff] }
  0x61   :  { %502 = vmatpush.msra.mxu2 %v108_v55  ;;  %521 = vmatpush.msra.mxu3 %v142_v56  ;;  %v184_v34 = vld [vmem:[#allocation2 + $0x4a8] sm:$0xff]  ;;  %v218_v35 = vld [vmem:[#allocation2 + $0x5b8] sm:$0xff] }
  0x62   :  { %463 = vmatpush.msra.mxu0 %v42_v58  ;;  %482 = vmatpush.msra.mxu1 %v76_v59  ;;  %v248_v36 = vld [vmem:[#allocation2 + $0x6a8] sm:$0xff]  ;;  %v282_v37 = vld [vmem:[#allocation2 + $0x7b8] sm:$0xff] }
  0x63   :  { %503 = vmatpush.msra.mxu2 %v106_v60  ;;  %522 = vmatpush.msra.mxu3 %v140_v61  ;;  %v182_v38 = vld [vmem:[#allocation2 + $0x498] sm:$0xff]  ;;  %v216_v39 = vld [vmem:[#allocation2 + $0x5a8] sm:$0xff] }
  0x64   :  { %464 = vmatpush.msra.mxu0 %v40_v62  ;;  %483 = vmatpush.msra.mxu1 %v74_v63  ;;  %v246_v40 = vld [vmem:[#allocation2 + $0x698] sm:$0xff]  ;;  %v280_v41 = vld [vmem:[#allocation2 + $0x7a8] sm:$0xff] }
  0x65   :  { %504 = vmatpush.msra.mxu2 %v104_v0  ;;  %523 = vmatpush.msra.mxu3 %v138_v1  ;;  %v180_v42 = vld [vmem:[#allocation2 + $0x488] sm:$0xff]  ;;  %v214_v43 = vld [vmem:[#allocation2 + $0x598] sm:$0xff] }
  0x66   :  { %465 = vmatpush.msra.mxu0 %v38_v3  ;;  %484 = vmatpush.msra.mxu1 %v72_v4  ;;  %v244_v44 = vld [vmem:[#allocation2 + $0x688] sm:$0xff]  ;;  %v278_v45 = vld [vmem:[#allocation2 + $0x798] sm:$0xff] }
  0x67   :  { %505 = vmatpush.msra.mxu2 %v102_v5  ;;  %524 = vmatpush.msra.mxu3 %v136_v6  ;;  %v178_v47 = vld [vmem:[#allocation2 + $0x478] sm:$0xff]  ;;  %v212_v48 = vld [vmem:[#allocation2 + $0x588] sm:$0xff] }
  0x68   :  { %466 = vmatpush.msra.mxu0 %v36_v9  ;;  %485 = vmatpush.msra.mxu1 %v70_v10  ;;  %v242_v49 = vld [vmem:[#allocation2 + $0x678] sm:$0xff]  ;;  %v276_v50 = vld [vmem:[#allocation2 + $0x788] sm:$0xff] }
  0x69   :  { %506 = vmatpush.msra.mxu2 %v100_v11  ;;  %525 = vmatpush.msra.mxu3 %v134_v12  ;;  %v176_v53 = vld [vmem:[#allocation2 + $0x468] sm:$0xff]  ;;  %v210_v54 = vld [vmem:[#allocation2 + $0x578] sm:$0xff] }
  0x6a   :  { %531 = vmatpush.msrb.mxu0 %v194_v14  ;;  %486 = vmatpush.msra.mxu1 %v68_v16  ;;  %v240_v55 = vld [vmem:[#allocation2 + $0x668] sm:$0xff]  ;;  %v274_v56 = vld [vmem:[#allocation2 + $0x778] sm:$0xff] }
  0x6b   :  { %571 = vmatpush.msrb.mxu2 %v258_v15  ;;  %526 = vmatpush.msra.mxu3 %v132_v17  ;;  %v174_v58 = vld [vmem:[#allocation2 + $0x458] sm:$0xff]  ;;  %v208_v59 = vld [vmem:[#allocation2 + $0x568] sm:$0xff] }
  0x6c   :  { %532 = vmatpush.msrb.mxu0 %v192_v18  ;;  %551 = vmatpush.msrb.mxu1 %v226_v19  ;;  %v238_v60 = vld [vmem:[#allocation2 + $0x658] sm:$0xff]  ;;  %v272_v61 = vld [vmem:[#allocation2 + $0x768] sm:$0xff] }
  0x6d   :  { %572 = vmatpush.msrb.mxu2 %v256_v20  ;;  %591 = vmatpush.msrb.mxu3 %v290_v21  ;;  %v172_v62 = vld [vmem:[#allocation2 + $0x448] sm:$0xff]  ;;  %v206_v63 = vld [vmem:[#allocation2 + $0x558] sm:$0xff] }
  0x6e   :  { %533 = vmatpush.msrb.mxu0 %v190_v22  ;;  %552 = vmatpush.msrb.mxu1 %v224_v23  ;;  %v236_v0 = vld [vmem:[#allocation2 + $0x648] sm:$0xff]  ;;  %v270_v1 = vld [vmem:[#allocation2 + $0x758] sm:$0xff]  ;;  %v746_v23 = vld [vmem:[#allocation2 + $0x9f0] sm:$0xff] }
  0x6f   :  { %573 = vmatpush.msrb.mxu2 %v254_v24  ;;  %592 = vmatpush.msrb.mxu3 %v288_v25  ;;  %v170_v3 = vld [vmem:[#allocation2 + $0x438] sm:$0xff]  ;;  %v204_v4 = vld [vmem:[#allocation2 + $0x548] sm:$0xff]  ;;  %v776_v24 = vld [vmem:[#allocation2 + $0xae0] sm:$0xff] }
  0x70   :  { %534 = vmatpush.msrb.mxu0 %v188_v26  ;;  %553 = vmatpush.msrb.mxu1 %v222_v27  ;;  %v234_v5 = vld [vmem:[#allocation2 + $0x638] sm:$0xff]  ;;  %v268_v6 = vld [vmem:[#allocation2 + $0x748] sm:$0xff]  ;;  %v810_v25 = vld [vmem:[#allocation2 + $0xbf0] sm:$0xff] }
  0x71   :  { %574 = vmatpush.msrb.mxu2 %v252_v28  ;;  %593 = vmatpush.msrb.mxu3 %v286_v29  ;;  %v168_v9 = vld [vmem:[#allocation2 + $0x428] sm:$0xff]  ;;  %v202_v10 = vld [vmem:[#allocation2 + $0x538] sm:$0xff]  ;;  %v710_v26 = vld [vmem:[#allocation2 + $0x8d0] sm:$0xff] }
  0x72   :  { %535 = vmatpush.msrb.mxu0 %v186_v30  ;;  %554 = vmatpush.msrb.mxu1 %v220_v31  ;;  %v232_v11 = vld [vmem:[#allocation2 + $0x628] sm:$0xff]  ;;  %v266_v12 = vld [vmem:[#allocation2 + $0x738] sm:$0xff]  ;;  %v744_v27 = vld [vmem:[#allocation2 + $0x9e0] sm:$0xff] }
  0x73   :  { %575 = vmatpush.msrb.mxu2 %v250_v32  ;;  %594 = vmatpush.msrb.mxu3 %v284_v33  ;;  %v166_v14 = vld [vmem:[#allocation2 + $0x418] sm:$0xff]  ;;  %v200_v15 = vld [vmem:[#allocation2 + $0x528] sm:$0xff]  ;;  %v774_v28 = vld [vmem:[#allocation2 + $0xad0] sm:$0xff] }
  0x74   :  { %536 = vmatpush.msrb.mxu0 %v184_v34  ;;  %555 = vmatpush.msrb.mxu1 %v218_v35  ;;  %v230_v16 = vld [vmem:[#allocation2 + $0x618] sm:$0xff]  ;;  %v264_v17 = vld [vmem:[#allocation2 + $0x728] sm:$0xff]  ;;  %v808_v29 = vld [vmem:[#allocation2 + $0xbe0] sm:$0xff] }
  0x75   :  { %576 = vmatpush.msrb.mxu2 %v248_v36  ;;  %595 = vmatpush.msrb.mxu3 %v282_v37  ;;  %v198_v18 = vld [vmem:[#allocation2 + $0x518] sm:$0xff]  ;;  %v228_v19 = vld [vmem:[#allocation2 + $0x608] sm:$0xff]  ;;  %v742_v30 = vld [vmem:[#allocation2 + $0x9d0] sm:$0xff] }
  0x76   :  { %537 = vmatpush.msrb.mxu0 %v182_v38  ;;  %556 = vmatpush.msrb.mxu1 %v216_v39  ;;  %v262_v20 = vld [vmem:[#allocation2 + $0x718] sm:$0xff]  ;;  %v196_v21 = vld [vmem:[#allocation2 + $0x508] sm:$0xff]  ;;  %v772_v31 = vld [vmem:[#allocation2 + $0xac0] sm:$0xff] }
  0x77   :  { %577 = vmatpush.msrb.mxu2 %v246_v40  ;;  %596 = vmatpush.msrb.mxu3 %v280_v41  ;;  %v260_v22 = vld [vmem:[#allocation2 + $0x708] sm:$0xff]  ;;  %v806_v32 = vld [vmem:[#allocation2 + $0xbd0] sm:$0xff]  ;;  %v804_v34 = vld [vmem:[#allocation2 + $0xbc0] sm:$0xff] }
  0x78   :  { %538 = vmatpush.msrb.mxu0 %v180_v42  ;;  %557 = vmatpush.msrb.mxu1 %v214_v43  ;;  %v770_v33 = vld [vmem:[#allocation2 + $0xab0] sm:$0xff]  ;;  %v704_v35 = vld [vmem:[#allocation2 + $0x8a0] sm:$0xff] }
  0x79   :  { %578 = vmatpush.msrb.mxu2 %v244_v44  ;;  %597 = vmatpush.msrb.mxu3 %v278_v45  ;;  %v738_v36 = vld [vmem:[#allocation2 + $0x9b0] sm:$0xff]  ;;  %v736_v39 = vld [vmem:[#allocation2 + $0x9a0] sm:$0xff] }
  0x7a   :  { %539 = vmatpush.msrb.mxu0 %v178_v47  ;;  %558 = vmatpush.msrb.mxu1 %v212_v48  ;;  %v802_v37 = vld [vmem:[#allocation2 + $0xbb0] sm:$0xff]  ;;  %v800_v41 = vld [vmem:[#allocation2 + $0xba0] sm:$0xff] }
  0x7b   :  { %579 = vmatpush.msrb.mxu2 %v242_v49  ;;  %598 = vmatpush.msrb.mxu3 %v276_v50  ;;  %v702_v38 = vld [vmem:[#allocation2 + $0x890] sm:$0xff]  ;;  %v700_v42 = vld [vmem:[#allocation2 + $0x880] sm:$0xff] }
  0x7c   :  { %540 = vmatpush.msrb.mxu0 %v176_v53  ;;  %559 = vmatpush.msrb.mxu1 %v210_v54  ;;  %v766_v40 = vld [vmem:[#allocation2 + $0xa90] sm:$0xff]  ;;  %v764_v44 = vld [vmem:[#allocation2 + $0xa80] sm:$0xff] }
  0x7d   :  { %580 = vmatpush.msrb.mxu2 %v240_v55  ;;  %599 = vmatpush.msrb.mxu3 %v274_v56  ;;  %v734_v43 = vld [vmem:[#allocation2 + $0x990] sm:$0xff]  ;;  %v732_v48 = vld [vmem:[#allocation2 + $0x980] sm:$0xff] }
  0x7e   :  { %541 = vmatpush.msrb.mxu0 %v174_v58  ;;  %560 = vmatpush.msrb.mxu1 %v208_v59  ;;  %v798_v45 = vld [vmem:[#allocation2 + $0xb90] sm:$0xff]  ;;  %v796_v50 = vld [vmem:[#allocation2 + $0xb80] sm:$0xff] }
  0x7f   :  { %581 = vmatpush.msrb.mxu2 %v238_v60  ;;  %600 = vmatpush.msrb.mxu3 %v272_v61  ;;  %v698_v47 = vld [vmem:[#allocation2 + $0x870] sm:$0xff]  ;;  %v696_v53 = vld [vmem:[#allocation2 + $0x860] sm:$0xff] }
  0x80   :  { %542 = vmatpush.msrb.mxu0 %v172_v62  ;;  %561 = vmatpush.msrb.mxu1 %v206_v63  ;;  %v762_v49 = vld [vmem:[#allocation2 + $0xa70] sm:$0xff]  ;;  %v760_v55 = vld [vmem:[#allocation2 + $0xa60] sm:$0xff] }
  0x81   :  { %582 = vmatpush.msrb.mxu2 %v236_v0  ;;  %601 = vmatpush.msrb.mxu3 %v270_v1  ;;  %v730_v54 = vld [vmem:[#allocation2 + $0x970] sm:$0xff]  ;;  %v728_v59 = vld [vmem:[#allocation2 + $0x960] sm:$0xff] }
  0x82   :  { %507 = vmatmul.f32.vlgmr.msra.gmra.mxu2 %v2714_v46  ;;  %543 = vmatpush.msrb.mxu0 %v170_v3  ;;  %v164_v46 = vld [vmem:[#allocation2 + $0x408] sm:$0xff]  ;;  %v794_v56 = vld [vmem:[#allocation2 + $0xb70] sm:$0xff]  ;;  %v792_v61 = vld [vmem:[#allocation2 + $0xb60] sm:$0xff] }
  0x83   :  { %562 = vmatpush.msrb.mxu1 %v204_v4  ;;  %583 = vmatpush.msrb.mxu2 %v234_v5  ;;  %v694_v58 = vld [vmem:[#allocation2 + $0x850] sm:$0xff]  ;;  %v692_v62 = vld [vmem:[#allocation2 + $0x840] sm:$0xff] }
  0x84   :  { %602 = vmatpush.msrb.mxu3 %v268_v6  ;;  %467 = vmatmul.f32.vlgmr.msra.gmra.mxu0 %v2719_v51  ;;  %v714_v51 = vld [vmem:[#allocation2 + $0x8f0] sm:$0xff]  ;;  %v756_v0 = vld [vmem:[#allocation2 + $0xa40] sm:$0xff] }
  0x85   :  { %527 = vmatmul.f32.vlgmr.msra.gmra.mxu3 %v2725_v52  ;;  %544 = vmatpush.msrb.mxu0 %v168_v9  ;;  %v778_v52 = vld [vmem:[#allocation2 + $0xaf0] sm:$0xff]  ;;  %v724_v4 = vld [vmem:[#allocation2 + $0x940] sm:$0xff] }
  0x86   :  { %563 = vmatpush.msrb.mxu1 %v202_v10  ;;  %584 = vmatpush.msrb.mxu2 %v232_v11  ;;  %v758_v60 = vld [vmem:[#allocation2 + $0xa50] sm:$0xff]  ;;  %v788_v6 = vld [vmem:[#allocation2 + $0xb40] sm:$0xff] }
  0x87   :  { %603 = vmatpush.msrb.mxu3 %v266_v12  ;;  %487 = vmatmul.f32.vlgmr.msra.gmra.mxu1 %v2731_v57  ;;  %v712_v57 = vld [vmem:[#allocation2 + $0x8e0] sm:$0xff]  ;;  %v726_v63 = vld [vmem:[#allocation2 + $0x950] sm:$0xff] }
  0x88   :  { %545 = vmatpush.msrb.mxu0 %v166_v14  ;;  %564 = vmatpush.msrb.mxu1 %v200_v15  ;;  %v790_v1 = vld [vmem:[#allocation2 + $0xb50] sm:$0xff]  ;;  %v688_v9 = vld [vmem:[#allocation2 + $0x820] sm:$0xff] }
  0x89   :  { %585 = vmatpush.msrb.mxu2 %v230_v16  ;;  %604 = vmatpush.msrb.mxu3 %v264_v17  ;;  %v690_v3 = vld [vmem:[#allocation2 + $0x830] sm:$0xff]  ;;  %v752_v11 = vld [vmem:[#allocation2 + $0xa20] sm:$0xff] }
  0x8a   :  { %546 = vmatpush.msrb.mxu0 %v164_v46  ;;  %565 = vmatpush.msrb.mxu1 %v198_v18  ;;  %v754_v5 = vld [vmem:[#allocation2 + $0xa30] sm:$0xff]  ;;  %v720_v15 = vld [vmem:[#allocation2 + $0x920] sm:$0xff] }
  0x8b   :  { %586 = vmatpush.msrb.mxu2 %v228_v19  ;;  %605 = vmatpush.msrb.mxu3 %v262_v20  ;;  %v722_v10 = vld [vmem:[#allocation2 + $0x930] sm:$0xff]  ;;  %v784_v17 = vld [vmem:[#allocation2 + $0xb20] sm:$0xff] }
  0x8c   :  { %587 = vmatmul.f32.vlgmr.msrb.gmra.mxu2 %v2738_v2  ;;  %940 = vmatpush.msra.mxu0 %v714_v51  ;;  %v708_v2 = vld [vmem:[#allocation2 + $0x8c0] sm:$0xff]  ;;  %v786_v12 = vld [vmem:[#allocation2 + $0xb30] sm:$0xff] }
  0x8d   :  { %980 = vmatpush.msra.mxu2 %v778_v52  ;;  %566 = vmatpush.msrb.mxu1 %v196_v21  ;;  %v686_v14 = vld [vmem:[#allocation2 + $0x810] sm:$0xff]  ;;  %v684_v46 = vld [vmem:[#allocation2 + $0x800] sm:$0xff] }
  0x8e   :  { %606 = vmatpush.msrb.mxu3 %v260_v22  ;;  %547 = vmatmul.f32.vlgmr.msrb.gmra.mxu0 %v2743_v7  ;;  %v706_v7 = vld [vmem:[#allocation2 + $0x8b0] sm:$0xff]  ;;  %v748_v19 = vld [vmem:[#allocation2 + $0xa00] sm:$0xff] }
  0x8f   :  { %607 = vmatmul.f32.vlgmr.msrb.gmra.mxu3 %v2749_v8  ;;  %941 = vmatpush.msra.mxu0 %v712_v57  ;;  %v740_v8 = vld [vmem:[#allocation2 + $0x9c0] sm:$0xff]  ;;  %v750_v16 = vld [vmem:[#allocation2 + $0xa10] sm:$0xff] }
  0x90   :  { %960 = vmatpush.msra.mxu1 %v746_v23  ;;  %981 = vmatpush.msra.mxu2 %v776_v24  ;;  %v718_v18 = vld [vmem:[#allocation2 + $0x910] sm:$0xff]  ;;  %v716_v21 = vld [vmem:[#allocation2 + $0x900] sm:$0xff] }
  0x91   :  { %1000 = vmatpush.msra.mxu3 %v810_v25  ;;  %567 = vmatmul.f32.vlgmr.msrb.gmra.mxu1 %v2755_v13  ;;  %v768_v13 = vld [vmem:[#allocation2 + $0xaa0] sm:$0xff]  ;;  %v782_v20 = vld [vmem:[#allocation2 + $0xb10] sm:$0xff] }
  0x92   :  { %942 = vmatpush.msra.mxu0 %v710_v26  ;;  %961 = vmatpush.msra.mxu1 %v744_v27  ;;  %v842_v51 = vld [vmem:[#allocation2 + $0xcf0] sm:$0xff]  ;;  %v780_v22 = vld [vmem:[#allocation2 + $0xb00] sm:$0xff] }
  0x93   :  { %982 = vmatpush.msra.mxu2 %v774_v28  ;;  %1001 = vmatpush.msra.mxu3 %v808_v29  ;;  %v906_v52 = vld [vmem:[#allocation2 + $0xef0] sm:$0xff]  ;;  %v840_v57 = vld [vmem:[#allocation2 + $0xce0] sm:$0xff] }
  0x94   :  { %943 = vmatpush.msra.mxu0 %v708_v2  ;;  %962 = vmatpush.msra.mxu1 %v742_v30  ;;  %v874_v23 = vld [vmem:[#allocation2 + $0xdf0] sm:$0xff]  ;;  %v904_v24 = vld [vmem:[#allocation2 + $0xee0] sm:$0xff] }
  0x95   :  { %983 = vmatpush.msra.mxu2 %v772_v31  ;;  %1002 = vmatpush.msra.mxu3 %v806_v32  ;;  %v938_v25 = vld [vmem:[#allocation2 + $0xff0] sm:$0xff]  ;;  %v872_v27 = vld [vmem:[#allocation2 + $0xde0] sm:$0xff] }
  0x96   :  { %944 = vmatpush.msra.mxu0 %v706_v7  ;;  %963 = vmatpush.msra.mxu1 %v740_v8  ;;  %v838_v26 = vld [vmem:[#allocation2 + $0xcd0] sm:$0xff]  ;;  %v936_v29 = vld [vmem:[#allocation2 + $0xfe0] sm:$0xff] }
  0x97   :  { %984 = vmatpush.msra.mxu2 %v770_v33  ;;  %1003 = vmatpush.msra.mxu3 %v804_v34  ;;  %v902_v28 = vld [vmem:[#allocation2 + $0xed0] sm:$0xff]  ;;  %v836_v2 = vld [vmem:[#allocation2 + $0xcc0] sm:$0xff] }
  0x98   :  { %945 = vmatpush.msra.mxu0 %v704_v35  ;;  %964 = vmatpush.msra.mxu1 %v738_v36  ;;  %v870_v30 = vld [vmem:[#allocation2 + $0xdd0] sm:$0xff]  ;;  %v900_v31 = vld [vmem:[#allocation2 + $0xec0] sm:$0xff] }
  0x99   :  { %985 = vmatpush.msra.mxu2 %v768_v13  ;;  %1004 = vmatpush.msra.mxu3 %v802_v37  ;;  %v934_v32 = vld [vmem:[#allocation2 + $0xfd0] sm:$0xff]  ;;  %v868_v8 = vld [vmem:[#allocation2 + $0xdc0] sm:$0xff] }
  0x9a   :  { %946 = vmatpush.msra.mxu0 %v702_v38  ;;  %965 = vmatpush.msra.mxu1 %v736_v39  ;;  %v834_v7 = vld [vmem:[#allocation2 + $0xcb0] sm:$0xff]  ;;  %v932_v34 = vld [vmem:[#allocation2 + $0xfc0] sm:$0xff] }
  0x9b   :  { %986 = vmatpush.msra.mxu2 %v766_v40  ;;  %1005 = vmatpush.msra.mxu3 %v800_v41  ;;  %v898_v33 = vld [vmem:[#allocation2 + $0xeb0] sm:$0xff]  ;;  %v832_v35 = vld [vmem:[#allocation2 + $0xca0] sm:$0xff] }
  0x9c   :  { %947 = vmatpush.msra.mxu0 %v700_v42  ;;  %966 = vmatpush.msra.mxu1 %v734_v43  ;;  %v866_v36 = vld [vmem:[#allocation2 + $0xdb0] sm:$0xff]  ;;  %v896_v13 = vld [vmem:[#allocation2 + $0xea0] sm:$0xff] }
  0x9d   :  { %987 = vmatpush.msra.mxu2 %v764_v44  ;;  %1006 = vmatpush.msra.mxu3 %v798_v45  ;;  %v930_v37 = vld [vmem:[#allocation2 + $0xfb0] sm:$0xff]  ;;  %v864_v39 = vld [vmem:[#allocation2 + $0xda0] sm:$0xff] }
  0x9e   :  { %948 = vmatpush.msra.mxu0 %v698_v47  ;;  %967 = vmatpush.msra.mxu1 %v732_v48  ;;  %v830_v38 = vld [vmem:[#allocation2 + $0xc90] sm:$0xff]  ;;  %v928_v41 = vld [vmem:[#allocation2 + $0xfa0] sm:$0xff] }
  0x9f   :  { %988 = vmatpush.msra.mxu2 %v762_v49  ;;  %1007 = vmatpush.msra.mxu3 %v796_v50  ;;  %v894_v40 = vld [vmem:[#allocation2 + $0xe90] sm:$0xff]  ;;  %v828_v42 = vld [vmem:[#allocation2 + $0xc80] sm:$0xff] }
  0xa0   :  { %949 = vmatpush.msra.mxu0 %v696_v53  ;;  %968 = vmatpush.msra.mxu1 %v730_v54  ;;  %v862_v43 = vld [vmem:[#allocation2 + $0xd90] sm:$0xff]  ;;  %v892_v44 = vld [vmem:[#allocation2 + $0xe80] sm:$0xff] }
  0xa1   :  { %989 = vmatpush.msra.mxu2 %v760_v55  ;;  %1008 = vmatpush.msra.mxu3 %v794_v56  ;;  %v926_v45 = vld [vmem:[#allocation2 + $0xf90] sm:$0xff]  ;;  %v860_v48 = vld [vmem:[#allocation2 + $0xd80] sm:$0xff] }
  0xa2   :  { %950 = vmatpush.msra.mxu0 %v694_v58  ;;  %969 = vmatpush.msra.mxu1 %v728_v59  ;;  %v826_v47 = vld [vmem:[#allocation2 + $0xc70] sm:$0xff]  ;;  %v924_v50 = vld [vmem:[#allocation2 + $0xf80] sm:$0xff] }
  0xa3   :  { %990 = vmatpush.msra.mxu2 %v758_v60  ;;  %1009 = vmatpush.msra.mxu3 %v792_v61  ;;  %v890_v49 = vld [vmem:[#allocation2 + $0xe70] sm:$0xff]  ;;  %v824_v53 = vld [vmem:[#allocation2 + $0xc60] sm:$0xff] }
  0xa4   :  { %951 = vmatpush.msra.mxu0 %v692_v62  ;;  %970 = vmatpush.msra.mxu1 %v726_v63  ;;  %v858_v54 = vld [vmem:[#allocation2 + $0xd70] sm:$0xff]  ;;  %v888_v55 = vld [vmem:[#allocation2 + $0xe60] sm:$0xff] }
  0xa5   :  { %991 = vmatpush.msra.mxu2 %v756_v0  ;;  %1010 = vmatpush.msra.mxu3 %v790_v1  ;;  %v922_v56 = vld [vmem:[#allocation2 + $0xf70] sm:$0xff]  ;;  %v856_v59 = vld [vmem:[#allocation2 + $0xd60] sm:$0xff] }
  0xa6   :  { %952 = vmatpush.msra.mxu0 %v690_v3  ;;  %971 = vmatpush.msra.mxu1 %v724_v4  ;;  %v822_v58 = vld [vmem:[#allocation2 + $0xc50] sm:$0xff]  ;;  %v920_v61 = vld [vmem:[#allocation2 + $0xf60] sm:$0xff] }
  0xa7   :  { %992 = vmatpush.msra.mxu2 %v754_v5  ;;  %1011 = vmatpush.msra.mxu3 %v788_v6  ;;  %v886_v60 = vld [vmem:[#allocation2 + $0xe50] sm:$0xff]  ;;  %v820_v0 = vld [vmem:[#allocation2 + $0xc40] sm:$0xff] }
  0xa8   :  { %953 = vmatpush.msra.mxu0 %v688_v9  ;;  %972 = vmatpush.msra.mxu1 %v722_v10  ;;  %v854_v1 = vld [vmem:[#allocation2 + $0xd50] sm:$0xff]  ;;  %v884_v4 = vld [vmem:[#allocation2 + $0xe40] sm:$0xff] }
  0xa9   :  { %993 = vmatpush.msra.mxu2 %v752_v11  ;;  %1012 = vmatpush.msra.mxu3 %v786_v12  ;;  %v918_v5 = vld [vmem:[#allocation2 + $0xf50] sm:$0xff]  ;;  %v852_v11 = vld [vmem:[#allocation2 + $0xd40] sm:$0xff] }
  0xaa   :  { %954 = vmatpush.msra.mxu0 %v686_v14  ;;  %973 = vmatpush.msra.mxu1 %v720_v15  ;;  %v2770_v9 = vld [vmem:[%s3049_s0 + $0x50] sm:$0xff]  ;;  %v916_v14 = vld [vmem:[#allocation2 + $0xf40] sm:$0xff] }
  0xab   :  { %994 = vmatpush.msra.mxu2 %v750_v16  ;;  %1013 = vmatpush.msra.mxu3 %v784_v17  ;;  %v818_v10 = vld [vmem:[#allocation2 + $0xc30] sm:$0xff]  ;;  %v2781_v17 = vld [vmem:[%s3049_s0 + $0x58] sm:$0xff] }
  0xac   :  { %955 = vmatpush.msra.mxu0 %v684_v46  ;;  %974 = vmatpush.msra.mxu1 %v718_v18  ;;  %v882_v12 = vld [vmem:[#allocation2 + $0xe30] sm:$0xff]  ;;  %v816_v46 = vld [vmem:[#allocation2 + $0xc20] sm:$0xff] }
  0xad   :  { %995 = vmatpush.msra.mxu2 %v748_v19  ;;  %1014 = vmatpush.msra.mxu3 %v782_v20  ;;  %v2775_v15 = vld [vmem:[%s3049_s0 + $0x10] sm:$0xff]  ;;  %v880_v20 = vld [vmem:[#allocation2 + $0xe20] sm:$0xff] }
  0xae   :  { %1020 = vmatpush.msrb.mxu0 %v842_v51  ;;  %975 = vmatpush.msra.mxu1 %v716_v21  ;;  %v850_v19 = vld [vmem:[#allocation2 + $0xd30] sm:$0xff] }
  0xaf   :  { %1060 = vmatpush.msrb.mxu2 %v906_v52  ;;  %1015 = vmatpush.msra.mxu3 %v780_v22  ;;  %v914_v51 = vld [vmem:[#allocation2 + $0xf30] sm:$0xff]  ;;  %v2787_v52 = vld [vmem:[%s3049_s0 + $0x18] sm:$0xff]  ;;  %v848_v22 = vld [vmem:[#allocation2 + $0xd20] sm:$0xff] }
  0xb0   :  { %1021 = vmatpush.msrb.mxu0 %v840_v57  ;;  %1040 = vmatpush.msrb.mxu1 %v874_v23  ;;  %v814_v21 = vld [vmem:[#allocation2 + $0xc10] sm:$0xff] }
  0xb1   :  { %1061 = vmatpush.msrb.mxu2 %v904_v24  ;;  %1080 = vmatpush.msrb.mxu3 %v938_v25  ;;  %v878_v23 = vld [vmem:[#allocation2 + $0xe10] sm:$0xff]  ;;  %v912_v24 = vld [vmem:[#allocation2 + $0xf20] sm:$0xff] }
  0xb2   :  { %1022 = vmatpush.msrb.mxu0 %v838_v26  ;;  %1041 = vmatpush.msrb.mxu1 %v872_v27  ;;  %v812_v26 = vld [vmem:[#allocation2 + $0xc00] sm:$0xff]  ;;  %v846_v27 = vld [vmem:[#allocation2 + $0xd10] sm:$0xff] }
  0xb3   :  { %1062 = vmatpush.msrb.mxu2 %v902_v28  ;;  %1081 = vmatpush.msrb.mxu3 %v936_v29  ;;  %v876_v28 = vld [vmem:[#allocation2 + $0xe00] sm:$0xff]  ;;  %v910_v29 = vld [vmem:[#allocation2 + $0xf10] sm:$0xff] }
  0xb4   :  { %1023 = vmatpush.msrb.mxu0 %v836_v2  ;;  %1042 = vmatpush.msrb.mxu1 %v870_v30  ;;  %v2794_v2 = vld [vmem:[%s3049_s0 + $0xd0] sm:$0xff]  ;;  %v715_v30 = vld [vmem:[#allocation2 + $0x8f8] sm:$0xff] }
  0xb5   :  { %1063 = vmatpush.msrb.mxu2 %v900_v31  ;;  %1082 = vmatpush.msrb.mxu3 %v934_v32  ;;  %v779_v32 = vld [vmem:[#allocation2 + $0xaf8] sm:$0xff] }
  0xb6   :  { %1024 = vmatpush.msrb.mxu0 %v834_v7  ;;  %1043 = vmatpush.msrb.mxu1 %v868_v8  ;;  %v844_v7 = vld [vmem:[#allocation2 + $0xd00] sm:$0xff] }
  0xb7   :  { %1064 = vmatpush.msrb.mxu2 %v898_v33  ;;  %1083 = vmatpush.msrb.mxu3 %v932_v34  ;;  %v908_v33 = vld [vmem:[#allocation2 + $0xf00] sm:$0xff]  ;;  %v2799_v34 = vld [vmem:[%s3049_s0 + $0x90] sm:$0xff] }
  0xb8   :  { %1025 = vmatpush.msrb.mxu0 %v832_v35  ;;  %1044 = vmatpush.msrb.mxu1 %v866_v36  ;;  %v2805_v35 = vld [vmem:[%s3049_s0 + $0xd8] sm:$0xff]  ;;  %v713_v36 = vld [vmem:[#allocation2 + $0x8e8] sm:$0xff] }
  0xb9   :  { %1065 = vmatpush.msrb.mxu2 %v896_v13  ;;  %1084 = vmatpush.msrb.mxu3 %v930_v37  ;;  %v747_v13 = vld [vmem:[#allocation2 + $0x9f8] sm:$0xff]  ;;  %v777_v37 = vld [vmem:[#allocation2 + $0xae8] sm:$0xff] }
  0xba   :  { %1026 = vmatpush.msrb.mxu0 %v830_v38  ;;  %1045 = vmatpush.msrb.mxu1 %v864_v39  ;;  %v811_v39 = vld [vmem:[#allocation2 + $0xbf8] sm:$0xff] }
  0xbb   :  { %1066 = vmatpush.msrb.mxu2 %v894_v40  ;;  %1085 = vmatpush.msrb.mxu3 %v928_v41  ;;  %v2811_v40 = vld [vmem:[%s3049_s0 + $0x98] sm:$0xff] }
  0xbc   :  { %1027 = vmatpush.msrb.mxu0 %v828_v42  ;;  %1046 = vmatpush.msrb.mxu1 %v862_v43  ;;  %v711_v42 = vld [vmem:[#allocation2 + $0x8d8] sm:$0xff]  ;;  %v745_v43 = vld [vmem:[#allocation2 + $0x9e8] sm:$0xff] }
  0xbd   :  { %1067 = vmatpush.msrb.mxu2 %v892_v44  ;;  %1086 = vmatpush.msrb.mxu3 %v926_v45  ;;  %v308_v62 = vpop.f32.mrf.mxu0  ;;  %v775_v44 = vld [vmem:[#allocation2 + $0xad8] sm:$0xff]  ;;  %v809_v45 = vld [vmem:[#allocation2 + $0xbe8] sm:$0xff] }
  0xbe   :  { %1028 = vmatpush.msrb.mxu0 %v826_v47  ;;  %1047 = vmatpush.msrb.mxu1 %v860_v48  ;;  %v709_v47 = vld [vmem:[#allocation2 + $0x8c8] sm:$0xff]  ;;  %v743_v48 = vld [vmem:[#allocation2 + $0x9d8] sm:$0xff] }
  0xbf   :  { %1068 = vmatpush.msrb.mxu2 %v890_v49  ;;  %1087 = vmatpush.msrb.mxu3 %v924_v50  ;;  %v773_v50 = vld [vmem:[#allocation2 + $0xac8] sm:$0xff] }
  0xc0   :  { %1029 = vmatpush.msrb.mxu0 %v824_v53  ;;  %1048 = vmatpush.msrb.mxu1 %v858_v54  ;;  %v328_v63 = vpop.f32.mrf.mxu1  ;;  %v807_v53 = vld [vmem:[#allocation2 + $0xbd8] sm:$0xff] }
  0xc1   :  { %1069 = vmatpush.msrb.mxu2 %v888_v55  ;;  %1088 = vmatpush.msrb.mxu3 %v922_v56  ;;  %v329_v3 = vadd.f32 %v328_v63, %v308_v62  ;;  %v348_v6 = vpop.f32.mrf.mxu2  ;;  %v707_v55 = vld [vmem:[#allocation2 + $0x8b8] sm:$0xff]  ;;  %v741_v56 = vld [vmem:[#allocation2 + $0x9c8] sm:$0xff] }
  0xc2   :  { %1030 = vmatpush.msrb.mxu0 %v822_v58  ;;  %1049 = vmatpush.msrb.mxu1 %v856_v59  ;;  %v771_v58 = vld [vmem:[#allocation2 + $0xab8] sm:$0xff]  ;;  %v805_v59 = vld [vmem:[#allocation2 + $0xbc8] sm:$0xff] }
  0xc3   :  { %1070 = vmatpush.msrb.mxu2 %v886_v60  ;;  %1089 = vmatpush.msrb.mxu3 %v920_v61  ;;  %v349_v16 = vadd.f32 %v348_v6, %v329_v3  ;;  %v705_v61 = vld [vmem:[#allocation2 + $0x8a8] sm:$0xff]  ;;  %v739_v62 = vld [vmem:[#allocation2 + $0x9b8] sm:$0xff] }
  0xc4   :  { %1031 = vmatpush.msrb.mxu0 %v820_v0  ;;  %1050 = vmatpush.msrb.mxu1 %v854_v1  ;;  %v368_v18 = vpop.f32.mrf.mxu3  ;;  %v769_v63 = vld [vmem:[#allocation2 + $0xaa8] sm:$0xff]  ;;  %v803_v0 = vld [vmem:[#allocation2 + $0xbb8] sm:$0xff] }
  0xc5   :  { %1071 = vmatpush.msrb.mxu2 %v884_v4  ;;  %1090 = vmatpush.msrb.mxu3 %v918_v5  ;;  %v369_v57 = vadd.f32 %v368_v18, %v349_v16  ;;  %v703_v1 = vld [vmem:[#allocation2 + $0x898] sm:$0xff]  ;;  %v737_v3 = vld [vmem:[#allocation2 + $0x9a8] sm:$0xff] }
  0xc6   :  { %996 = vmatmul.f32.vlgmr.msra.gmra.mxu2 %v2770_v9  ;;  %1032 = vmatpush.msrb.mxu0 %v818_v10  ;;  %v767_v4 = vld [vmem:[#allocation2 + $0xa98] sm:$0xff]  ;;  %v801_v5 = vld [vmem:[#allocation2 + $0xba8] sm:$0xff] }
  0xc7   :  { %1051 = vmatpush.msrb.mxu1 %v852_v11  ;;  %1072 = vmatpush.msrb.mxu2 %v882_v12  ;;  %v388_v25 = vpop.f32.mrf.mxu0  ;;  %v701_v10 = vld [vmem:[#allocation2 + $0x888] sm:$0xff]  ;;  %v735_v11 = vld [vmem:[#allocation2 + $0x998] sm:$0xff] }
  0xc8   :  { %1091 = vmatpush.msrb.mxu3 %v916_v14  ;;  %956 = vmatmul.f32.vlgmr.msra.gmra.mxu0 %v2775_v15  ;;  %v389_v31 = vadd.f32 %v388_v25, %v369_v57  ;;  %v765_v12 = vld [vmem:[#allocation2 + $0xa88] sm:$0xff]  ;;  %v799_v14 = vld [vmem:[#allocation2 + $0xb98] sm:$0xff] }
  0xc9   :  { %1016 = vmatmul.f32.vlgmr.msra.gmra.mxu3 %v2781_v17  ;;  %1033 = vmatpush.msrb.mxu0 %v816_v46  ;;  %v699_v16 = vld [vmem:[#allocation2 + $0x878] sm:$0xff]  ;;  %v733_v46 = vld [vmem:[#allocation2 + $0x988] sm:$0xff] }
  0xca   :  { %1052 = vmatpush.msrb.mxu1 %v850_v19  ;;  %1073 = vmatpush.msrb.mxu2 %v880_v20  ;;  %v408_v8 = vpop.f32.mrf.mxu1  ;;  %v763_v18 = vld [vmem:[#allocation2 + $0xa78] sm:$0xff]  ;;  %v797_v19 = vld [vmem:[#allocation2 + $0xb88] sm:$0xff] }
  0xcb   :  { %1092 = vmatpush.msrb.mxu3 %v914_v51  ;;  %976 = vmatmul.f32.vlgmr.msra.gmra.mxu1 %v2787_v52  ;;  %v409_v38 = vadd.f32 %v408_v8, %v389_v31  ;;  %v428_v41 = vpop.f32.mrf.mxu2  ;;  %v697_v20 = vld [vmem:[#allocation2 + $0x868] sm:$0xff]  ;;  %v731_v51 = vld [vmem:[#allocation2 + $0x978] sm:$0xff] }
  0xcc   :  { %1034 = vmatpush.msrb.mxu0 %v814_v21  ;;  %1053 = vmatpush.msrb.mxu1 %v848_v22  ;;  %v761_v21 = vld [vmem:[#allocation2 + $0xa68] sm:$0xff]  ;;  %v795_v22 = vld [vmem:[#allocation2 + $0xb78] sm:$0xff] }
  0xcd   :  { %1074 = vmatpush.msrb.mxu2 %v878_v23  ;;  %1093 = vmatpush.msrb.mxu3 %v912_v24  ;;  %v429_v49 = vadd.f32 %v428_v41, %v409_v38  ;;  %v695_v57 = vld [vmem:[#allocation2 + $0x858] sm:$0xff]  ;;  %v729_v23 = vld [vmem:[#allocation2 + $0x968] sm:$0xff] }
  0xce   :  { %1035 = vmatpush.msrb.mxu0 %v812_v26  ;;  %1054 = vmatpush.msrb.mxu1 %v846_v27  ;;  %v448_v54 = vpop.f32.mrf.mxu3  ;;  %v759_v24 = vld [vmem:[#allocation2 + $0xa58] sm:$0xff]  ;;  %v793_v25 = vld [vmem:[#allocation2 + $0xb68] sm:$0xff] }
  0xcf   :  { %1075 = vmatpush.msrb.mxu2 %v876_v28  ;;  %1094 = vmatpush.msrb.mxu3 %v910_v29  ;;  %v2815_v60 = vadd.f32 %v448_v54, %v429_v49  ;;  %v693_v26 = vld [vmem:[#allocation2 + $0x848] sm:$0xff]  ;;  %v727_v27 = vld [vmem:[#allocation2 + $0x958] sm:$0xff] }
  0xd0   :  { %1076 = vmatmul.f32.vlgmr.msrb.gmra.mxu2 %v2794_v2  ;;  %1100 = vmatpush.msra.mxu0 %v715_v30  ;;  %v757_v29 = vld [vmem:[#allocation2 + $0xa48] sm:$0xff]  ;;  %v791_v30 = vld [vmem:[#allocation2 + $0xb58] sm:$0xff] }
  0xd1   :  { %1140 = vmatpush.msra.mxu2 %v779_v32  ;;  %1055 = vmatpush.msrb.mxu1 %v844_v7  ;;  %v612_v6 = vsel %vm611_vm0, %v2815_v60, -inf  ;;  %v618_v28 = vsel %vm617_vm1, %v2815_v60, -inf  ;;  %v691_v31 = vld [vmem:[#allocation2 + $0x838] sm:$0xff]  ;;  %v725_v32 = vld [vmem:[#allocation2 + $0x948] sm:$0xff] }
  0xd2   :  { %1095 = vmatpush.msrb.mxu3 %v908_v33  ;;  %1036 = vmatmul.f32.vlgmr.msrb.gmra.mxu0 %v2799_v34  ;;  %v755_v7 = vld [vmem:[#allocation2 + $0xa38] sm:$0xff]  ;;  %v789_v8 = vld [vmem:[#allocation2 + $0xb48] sm:$0xff] }
  0xd3   :  { %1096 = vmatmul.f32.vlgmr.msrb.gmra.mxu3 %v2805_v35  ;;  %1101 = vmatpush.msra.mxu0 %v713_v36  ;;  %v689_v33 = vld [vmem:[#allocation2 + $0x828] sm:$0xff]  ;;  %v723_v36 = vld [vmem:[#allocation2 + $0x938] sm:$0xff] }
  0xd4   :  { %1120 = vmatpush.msra.mxu1 %v747_v13  ;;  %1141 = vmatpush.msra.mxu2 %v777_v37  ;;  %v753_v13 = vld [vmem:[#allocation2 + $0xa28] sm:$0xff]  ;;  %v787_v37 = vld [vmem:[#allocation2 + $0xb38] sm:$0xff] }
  0xd5   :  { %1160 = vmatpush.msra.mxu3 %v811_v39  ;;  %1056 = vmatmul.f32.vlgmr.msrb.gmra.mxu1 %v2811_v40  ;;  %v687_v38 = vld [vmem:[#allocation2 + $0x818] sm:$0xff]  ;;  %v721_v39 = vld [vmem:[#allocation2 + $0x928] sm:$0xff] }
  0xd6   :  { %1102 = vmatpush.msra.mxu0 %v711_v42  ;;  %1121 = vmatpush.msra.mxu1 %v745_v43  ;;  %v751_v41 = vld [vmem:[#allocation2 + $0xa18] sm:$0xff]  ;;  %v785_v42 = vld [vmem:[#allocation2 + $0xb28] sm:$0xff] }
  0xd7   :  { %1142 = vmatpush.msra.mxu2 %v775_v44  ;;  %1161 = vmatpush.msra.mxu3 %v809_v45  ;;  %v685_v43 = vld [vmem:[#allocation2 + $0x808] sm:$0xff]  ;;  %v719_v44 = vld [vmem:[#allocation2 + $0x918] sm:$0xff] }
  0xd8   :  { %1103 = vmatpush.msra.mxu0 %v709_v47  ;;  %1122 = vmatpush.msra.mxu1 %v743_v48  ;;  %v749_v45 = vld [vmem:[#allocation2 + $0xa08] sm:$0xff]  ;;  %v783_v47 = vld [vmem:[#allocation2 + $0xb18] sm:$0xff] }
  0xd9   :  { %1143 = vmatpush.msra.mxu2 %v773_v50  ;;  %1162 = vmatpush.msra.mxu3 %v807_v53  ;;  %v843_v48 = vld [vmem:[#allocation2 + $0xcf8] sm:$0xff]  ;;  %v717_v50 = vld [vmem:[#allocation2 + $0x908] sm:$0xff] }
  0xda   :  { %1104 = vmatpush.msra.mxu0 %v707_v55  ;;  %1123 = vmatpush.msra.mxu1 %v741_v56  ;;  %v907_v49 = vld [vmem:[#allocation2 + $0xef8] sm:$0xff]  ;;  %v781_v53 = vld [vmem:[#allocation2 + $0xb08] sm:$0xff] }
  0xdb   :  { %1144 = vmatpush.msra.mxu2 %v771_v58  ;;  %1163 = vmatpush.msra.mxu3 %v805_v59  ;;  %v841_v54 = vld [vmem:[#allocation2 + $0xce8] sm:$0xff]  ;;  %v875_v55 = vld [vmem:[#allocation2 + $0xdf8] sm:$0xff] }
  0xdc   :  { %1105 = vmatpush.msra.mxu0 %v705_v61  ;;  %1124 = vmatpush.msra.mxu1 %v739_v62  ;;  %v905_v56 = vld [vmem:[#allocation2 + $0xee8] sm:$0xff]  ;;  %v939_v58 = vld [vmem:[#allocation2 + $0xff8] sm:$0xff] }
  0xdd   :  { %1145 = vmatpush.msra.mxu2 %v769_v63  ;;  %1164 = vmatpush.msra.mxu3 %v803_v0  ;;  %v839_v59 = vld [vmem:[#allocation2 + $0xcd8] sm:$0xff]  ;;  %v873_v61 = vld [vmem:[#allocation2 + $0xde8] sm:$0xff] }
  0xde   :  { %1106 = vmatpush.msra.mxu0 %v703_v1  ;;  %1125 = vmatpush.msra.mxu1 %v737_v3  ;;  %v903_v62 = vld [vmem:[#allocation2 + $0xed8] sm:$0xff]  ;;  %v937_v63 = vld [vmem:[#allocation2 + $0xfe8] sm:$0xff] }
  0xdf   :  { %1146 = vmatpush.msra.mxu2 %v767_v4  ;;  %1165 = vmatpush.msra.mxu3 %v801_v5  ;;  %v837_v0 = vld [vmem:[#allocation2 + $0xcc8] sm:$0xff]  ;;  %v871_v1 = vld [vmem:[#allocation2 + $0xdd8] sm:$0xff] }
  0xe0   :  { %613 = vmax.xlane.f32.xlu0 %v612_v6  ;;  %1107 = vmatpush.msra.mxu0 %v701_v10  ;;  %v901_v3 = vld [vmem:[#allocation2 + $0xec8] sm:$0xff]  ;;  %v935_v4 = vld [vmem:[#allocation2 + $0xfd8] sm:$0xff] }
  0xe1   :  { %1126 = vmatpush.msra.mxu1 %v735_v11  ;;  %1147 = vmatpush.msra.mxu2 %v765_v12  ;;  %v835_v5 = vld [vmem:[#allocation2 + $0xcb8] sm:$0xff]  ;;  %v869_v6 = vld [vmem:[#allocation2 + $0xdc8] sm:$0xff] }
  0xe2   :  { %1166 = vmatpush.msra.mxu3 %v799_v14  ;;  %1108 = vmatpush.msra.mxu0 %v699_v16  ;;  %v899_v10 = vld [vmem:[#allocation2 + $0xeb8] sm:$0xff]  ;;  %v933_v11 = vld [vmem:[#allocation2 + $0xfc8] sm:$0xff] }
  0xe3   :  { %1127 = vmatpush.msra.mxu1 %v733_v46  ;;  %1148 = vmatpush.msra.mxu2 %v763_v18  ;;  %v833_v12 = vld [vmem:[#allocation2 + $0xca8] sm:$0xff]  ;;  %v867_v14 = vld [vmem:[#allocation2 + $0xdb8] sm:$0xff] }
  0xe4   :  { %1167 = vmatpush.msra.mxu3 %v797_v19  ;;  %1109 = vmatpush.msra.mxu0 %v697_v20  ;;  %v897_v16 = vld [vmem:[#allocation2 + $0xea8] sm:$0xff]  ;;  %v931_v46 = vld [vmem:[#allocation2 + $0xfb8] sm:$0xff] }
  0xe5   :  { %1128 = vmatpush.msra.mxu1 %v731_v51  ;;  %1149 = vmatpush.msra.mxu2 %v761_v21  ;;  %v831_v18 = vld [vmem:[#allocation2 + $0xc98] sm:$0xff]  ;;  %v865_v19 = vld [vmem:[#allocation2 + $0xda8] sm:$0xff] }
  0xe6   :  { %1168 = vmatpush.msra.mxu3 %v795_v22  ;;  %1110 = vmatpush.msra.mxu0 %v695_v57  ;;  %v895_v20 = vld [vmem:[#allocation2 + $0xe98] sm:$0xff]  ;;  %v929_v51 = vld [vmem:[#allocation2 + $0xfa8] sm:$0xff] }
  0xe7   :  { %1129 = vmatpush.msra.mxu1 %v729_v23  ;;  %1150 = vmatpush.msra.mxu2 %v759_v24  ;;  %v829_v21 = vld [vmem:[#allocation2 + $0xc88] sm:$0xff]  ;;  %v863_v22 = vld [vmem:[#allocation2 + $0xd98] sm:$0xff] }
  0xe8   :  { %1169 = vmatpush.msra.mxu3 %v793_v25  ;;  %619 = vmax.xlane.f32.xlu0 %v618_v28  ;;  %v893_v57 = vld [vmem:[#allocation2 + $0xe88] sm:$0xff]  ;;  %v927_v23 = vld [vmem:[#allocation2 + $0xf98] sm:$0xff] }
  0xe9   :  { %1111 = vmatpush.msra.mxu0 %v693_v26  ;;  %1130 = vmatpush.msra.mxu1 %v727_v27  ;;  %v827_v24 = vld [vmem:[#allocation2 + $0xc78] sm:$0xff]  ;;  %v861_v25 = vld [vmem:[#allocation2 + $0xd88] sm:$0xff] }
  0xea   :  { %1151 = vmatpush.msra.mxu2 %v757_v29  ;;  %1170 = vmatpush.msra.mxu3 %v791_v30  ;;  %v891_v26 = vld [vmem:[#allocation2 + $0xe78] sm:$0xff]  ;;  %v925_v27 = vld [vmem:[#allocation2 + $0xf88] sm:$0xff] }
  0xeb   :  { %1112 = vmatpush.msra.mxu0 %v691_v31  ;;  %1131 = vmatpush.msra.mxu1 %v725_v32  ;;  %v825_v28 = vld [vmem:[#allocation2 + $0xc68] sm:$0xff]  ;;  %v859_v29 = vld [vmem:[#allocation2 + $0xd78] sm:$0xff] }
  0xec   :  { %1152 = vmatpush.msra.mxu2 %v755_v7  ;;  %1171 = vmatpush.msra.mxu3 %v789_v8  ;;  %v889_v30 = vld [vmem:[#allocation2 + $0xe68] sm:$0xff]  ;;  %v923_v31 = vld [vmem:[#allocation2 + $0xf78] sm:$0xff] }
  0xed   :  { %1113 = vmatpush.msra.mxu0 %v689_v33  ;;  %1132 = vmatpush.msra.mxu1 %v723_v36  ;;  %v823_v32 = vld [vmem:[#allocation2 + $0xc58] sm:$0xff]  ;;  %v857_v7 = vld [vmem:[#allocation2 + $0xd68] sm:$0xff] }
  0xee   :  { %1153 = vmatpush.msra.mxu2 %v753_v13  ;;  %1172 = vmatpush.msra.mxu3 %v787_v37  ;;  %v887_v33 = vld [vmem:[#allocation2 + $0xe58] sm:$0xff]  ;;  %v921_v36 = vld [vmem:[#allocation2 + $0xf68] sm:$0xff] }
  0xef   :  { %1114 = vmatpush.msra.mxu0 %v687_v38  ;;  %1133 = vmatpush.msra.mxu1 %v721_v39  ;;  %v821_v37 = vld [vmem:[#allocation2 + $0xc48] sm:$0xff]  ;;  %v855_v38 = vld [vmem:[#allocation2 + $0xd58] sm:$0xff] }
  0xf0   :  { %1154 = vmatpush.msra.mxu2 %v751_v41  ;;  %1173 = vmatpush.msra.mxu3 %v785_v42  ;;  %v885_v41 = vld [vmem:[#allocation2 + $0xe48] sm:$0xff]  ;;  %v919_v42 = vld [vmem:[#allocation2 + $0xf58] sm:$0xff] }
  0xf1   :  { %1115 = vmatpush.msra.mxu0 %v685_v43  ;;  %1134 = vmatpush.msra.mxu1 %v719_v44  ;;  %v819_v44 = vld [vmem:[#allocation2 + $0xc38] sm:$0xff] }
  0xf2   :  { %1155 = vmatpush.msra.mxu2 %v749_v45  ;;  %1174 = vmatpush.msra.mxu3 %v783_v47  ;;  %v853_v45 = vld [vmem:[#allocation2 + $0xd48] sm:$0xff]  ;;  %v883_v47 = vld [vmem:[#allocation2 + $0xe38] sm:$0xff] }
  0xf3   :  { %1180 = vmatpush.msrb.mxu0 %v843_v48  ;;  %1135 = vmatpush.msra.mxu1 %v717_v50  ;;  %v917_v48 = vld [vmem:[#allocation2 + $0xf48] sm:$0xff] }
  0xf4   :  { %1220 = vmatpush.msrb.mxu2 %v907_v49  ;;  %1175 = vmatpush.msra.mxu3 %v781_v53  ;;  %v817_v50 = vld [vmem:[#allocation2 + $0xc28] sm:$0xff] }
  0xf5   :  { %1181 = vmatpush.msrb.mxu0 %v841_v54  ;;  %1200 = vmatpush.msrb.mxu1 %v875_v55  ;;  %v851_v54 = vld [vmem:[#allocation2 + $0xd38] sm:$0xff]  ;;  %v881_v55 = vld [vmem:[#allocation2 + $0xe28] sm:$0xff] }
  0xf6   :  { %1221 = vmatpush.msrb.mxu2 %v905_v56  ;;  %1240 = vmatpush.msrb.mxu3 %v939_v58  ;;  %v915_v56 = vld [vmem:[#allocation2 + $0xf38] sm:$0xff] }
  0xf7   :  { %1182 = vmatpush.msrb.mxu0 %v839_v59  ;;  %1201 = vmatpush.msrb.mxu1 %v873_v61  ;;  %v815_v58 = vld [vmem:[#allocation2 + $0xc18] sm:$0xff]  ;;  %v849_v59 = vld [vmem:[#allocation2 + $0xd28] sm:$0xff] }
  0xf8   :  { %1222 = vmatpush.msrb.mxu2 %v903_v62  ;;  %1241 = vmatpush.msrb.mxu3 %v937_v63  ;;  %v913_v62 = vld [vmem:[#allocation2 + $0xf28] sm:$0xff] }
  0xf9   :  { %1183 = vmatpush.msrb.mxu0 %v837_v0  ;;  %1202 = vmatpush.msrb.mxu1 %v871_v1  ;;  %v813_v0 = vld [vmem:[#allocation2 + $0xc08] sm:$0xff]  ;;  %v847_v1 = vld [vmem:[#allocation2 + $0xd18] sm:$0xff] }
  0xfa   :  { %1223 = vmatpush.msrb.mxu2 %v901_v3  ;;  %1242 = vmatpush.msrb.mxu3 %v935_v4  ;;  %v911_v3 = vld [vmem:[#allocation2 + $0xf18] sm:$0xff] }
  0xfb   :  { %1184 = vmatpush.msrb.mxu0 %v835_v5  ;;  %1203 = vmatpush.msrb.mxu1 %v869_v6  ;;  %v1425_v5 = vld [vmem:[#allocation2 + $0x12f0] sm:$0xff]  ;;  %v845_v6 = vld [vmem:[#allocation2 + $0xd08] sm:$0xff] }
  0xfc   :  { %1224 = vmatpush.msrb.mxu2 %v899_v10  ;;  %1243 = vmatpush.msrb.mxu3 %v933_v11  ;;  %v909_v11 = vld [vmem:[#allocation2 + $0xf08] sm:$0xff] }
  0xfd   :  { %1185 = vmatpush.msrb.mxu0 %v833_v12  ;;  %1204 = vmatpush.msrb.mxu1 %v867_v14  ;;  %v1393_v12 = vld [vmem:[#allocation2 + $0x11f0] sm:$0xff]  ;;  %v1423_v14 = vld [vmem:[#allocation2 + $0x12e0] sm:$0xff] }
  0xfe   :  { %1225 = vmatpush.msrb.mxu2 %v897_v16  ;;  %1244 = vmatpush.msrb.mxu3 %v931_v46  ;;  %v1457_v46 = vld [vmem:[#allocation2 + $0x13f0] sm:$0xff] }
  0xff   :  { %1186 = vmatpush.msrb.mxu0 %v831_v18  ;;  %1205 = vmatpush.msrb.mxu1 %v865_v19  ;;  %v1357_v19 = vld [vmem:[#allocation2 + $0x10d0] sm:$0xff] }
 0x100   :  { %1226 = vmatpush.msrb.mxu2 %v895_v20  ;;  %1245 = vmatpush.msrb.mxu3 %v929_v51  ;;  %v1391_v20 = vld [vmem:[#allocation2 + $0x11e0] sm:$0xff] }
 0x101   :  { %1187 = vmatpush.msrb.mxu0 %v829_v21  ;;  %1206 = vmatpush.msrb.mxu1 %v863_v22  ;;  %v468_v13 = vpop.f32.mrf.mxu0  ;;  %v1455_v51 = vld [vmem:[#allocation2 + $0x13e0] sm:$0xff]  ;;  %v1389_v22 = vld [vmem:[#allocation2 + $0x11d0] sm:$0xff] }
 0x102   :  { %1227 = vmatpush.msrb.mxu2 %v893_v57  ;;  %1246 = vmatpush.msrb.mxu3 %v927_v23  ;;  %v1355_v21 = vld [vmem:[#allocation2 + $0x10c0] sm:$0xff]  ;;  %v1453_v23 = vld [vmem:[#allocation2 + $0x13d0] sm:$0xff] }
 0x103   :  { %1188 = vmatpush.msrb.mxu0 %v827_v24  ;;  %1207 = vmatpush.msrb.mxu1 %v861_v25  ;;  %v1387_v25 = vld [vmem:[#allocation2 + $0x11c0] sm:$0xff] }
 0x104   :  { %1228 = vmatpush.msrb.mxu2 %v891_v26  ;;  %1247 = vmatpush.msrb.mxu3 %v925_v27  ;;  %v488_v8 = vpop.f32.mrf.mxu1  ;;  %v1417_v26 = vld [vmem:[#allocation2 + $0x12b0] sm:$0xff]  ;;  %v1451_v27 = vld [vmem:[#allocation2 + $0x13c0] sm:$0xff] }
 0x105   :  { %1189 = vmatpush.msrb.mxu0 %v825_v28  ;;  %1208 = vmatpush.msrb.mxu1 %v859_v29  ;;  %v489_v39 = vadd.f32 %v488_v8, %v468_v13  ;;  %v508_v43 = vpop.f32.mrf.mxu2  ;;  %v1385_v29 = vld [vmem:[#allocation2 + $0x11b0] sm:$0xff]  ;;  %v1347_v13 = vld [vmem:[#allocation2 + $0x1080] sm:$0xff] }
 0x106   :  { %1229 = vmatpush.msrb.mxu2 %v889_v30  ;;  %1248 = vmatpush.msrb.mxu3 %v923_v31  ;;  %v1415_v30 = vld [vmem:[#allocation2 + $0x12a0] sm:$0xff]  ;;  %v1449_v31 = vld [vmem:[#allocation2 + $0x13b0] sm:$0xff] }
 0x107   :  { %1190 = vmatpush.msrb.mxu0 %v823_v32  ;;  %1209 = vmatpush.msrb.mxu1 %v857_v7  ;;  %v509_v49 = vadd.f32 %v508_v43, %v489_v39  ;;  %v1349_v32 = vld [vmem:[#allocation2 + $0x1090] sm:$0xff]  ;;  %v1383_v7 = vld [vmem:[#allocation2 + $0x11a0] sm:$0xff] }
 0x108   :  { %1230 = vmatpush.msrb.mxu2 %v887_v33  ;;  %1249 = vmatpush.msrb.mxu3 %v921_v36  ;;  %v528_v53 = vpop.f32.mrf.mxu3  ;;  %v1413_v8 = vld [vmem:[#allocation2 + $0x1290] sm:$0xff]  ;;  %v1447_v33 = vld [vmem:[#allocation2 + $0x13a0] sm:$0xff] }
 0x109   :  { %1191 = vmatpush.msrb.mxu0 %v821_v37  ;;  %1210 = vmatpush.msrb.mxu1 %v855_v38  ;;  %v529_v61 = vadd.f32 %v528_v53, %v509_v49  ;;  %v1381_v37 = vld [vmem:[#allocation2 + $0x1190] sm:$0xff]  ;;  %v1411_v38 = vld [vmem:[#allocation2 + $0x1280] sm:$0xff] }
 0x10a   :  { %1231 = vmatpush.msrb.mxu2 %v885_v41  ;;  %1250 = vmatpush.msrb.mxu3 %v919_v42  ;;  %v1445_v39 = vld [vmem:[#allocation2 + $0x1390] sm:$0xff]  ;;  %v1379_v42 = vld [vmem:[#allocation2 + $0x1180] sm:$0xff] }
 0x10b   :  { %1156 = vmatmul.f32.vlgmr.msra.gmra.mxu2 %v2770_v9  ;;  %1192 = vmatpush.msrb.mxu0 %v819_v44  ;;  %v879_v9 = vld [vmem:[#allocation2 + $0xe18] sm:$0xff]  ;;  %v548_v63 = vpop.f32.mrf.mxu0  ;;  %v1345_v41 = vld [vmem:[#allocation2 + $0x1070] sm:$0xff]  ;;  %v1443_v44 = vld [vmem:[#allocation2 + $0x1380] sm:$0xff] }
 0x10c   :  { %1211 = vmatpush.msrb.mxu1 %v853_v45  ;;  %1232 = vmatpush.msrb.mxu2 %v883_v47  ;;  %v549_v4 = vadd.f32 %v548_v63, %v529_v61  ;;  %v1409_v43 = vld [vmem:[#allocation2 + $0x1270] sm:$0xff]  ;;  %v1343_v45 = vld [vmem:[#allocation2 + $0x1060] sm:$0xff] }
 0x10d   :  { %1251 = vmatpush.msrb.mxu3 %v917_v48  ;;  %1116 = vmatmul.f32.vlgmr.msra.gmra.mxu0 %v2775_v15  ;;  %v877_v15 = vld [vmem:[#allocation2 + $0xe08] sm:$0xff]  ;;  %v1377_v47 = vld [vmem:[#allocation2 + $0x1170] sm:$0xff]  ;;  %v1407_v48 = vld [vmem:[#allocation2 + $0x1260] sm:$0xff] }
 0x10e   :  { %1176 = vmatmul.f32.vlgmr.msra.gmra.mxu3 %v2781_v17  ;;  %1193 = vmatpush.msrb.mxu0 %v817_v50  ;;  %v1361_v17 = vld [vmem:[#allocation2 + $0x10f0] sm:$0xff]  ;;  %v568_v10 = vpop.f32.mrf.mxu1  ;;  %v1375_v53 = vld [vmem:[#allocation2 + $0x1160] sm:$0xff] }
 0x10f   :  { %1212 = vmatpush.msrb.mxu1 %v851_v54  ;;  %1233 = vmatpush.msrb.mxu2 %v881_v55  ;;  %v569_v16 = vadd.f32 %v568_v10, %v549_v4  ;;  %v588_v18 = vpop.f32.mrf.mxu2  ;;  %v1441_v49 = vld [vmem:[#allocation2 + $0x1370] sm:$0xff]  ;;  %v1439_v55 = vld [vmem:[#allocation2 + $0x1360] sm:$0xff] }
 0x110   :  { %1252 = vmatpush.msrb.mxu3 %v915_v56  ;;  %1136 = vmatmul.f32.vlgmr.msra.gmra.mxu1 %v2787_v52  ;;  %v1359_v52 = vld [vmem:[#allocation2 + $0x10e0] sm:$0xff]  ;;  %v1341_v50 = vld [vmem:[#allocation2 + $0x1050] sm:$0xff] }
 0x111   :  { %1194 = vmatpush.msrb.mxu0 %v815_v58  ;;  %1213 = vmatpush.msrb.mxu1 %v849_v59  ;;  %v589_v57 = vadd.f32 %v588_v18, %v569_v16  ;;  %v1405_v54 = vld [vmem:[#allocation2 + $0x1250] sm:$0xff]  ;;  %v1339_v56 = vld [vmem:[#allocation2 + $0x1040] sm:$0xff] }
 0x112   :  { %1234 = vmatpush.msrb.mxu2 %v879_v9  ;;  %1253 = vmatpush.msrb.mxu3 %v913_v62  ;;  %v608_v24 = vpop.f32.mrf.mxu3  ;;  %v1373_v58 = vld [vmem:[#allocation2 + $0x1150] sm:$0xff]  ;;  %v1403_v61 = vld [vmem:[#allocation2 + $0x1240] sm:$0xff] }
 0x113   :  { %1195 = vmatpush.msrb.mxu0 %v813_v0  ;;  %1214 = vmatpush.msrb.mxu1 %v847_v1  ;;  %v2829_v28 = vadd.f32 %v608_v24, %v589_v57  ;;  %v1437_v9 = vld [vmem:[#allocation2 + $0x1350] sm:$0xff]  ;;  %v1371_v63 = vld [vmem:[#allocation2 + $0x1140] sm:$0xff] }
 0x114   :  { %1235 = vmatpush.msrb.mxu2 %v877_v15  ;;  %1254 = vmatpush.msrb.mxu3 %v911_v3  ;;  %v1337_v62 = vld [vmem:[#allocation2 + $0x1030] sm:$0xff]  ;;  %v1435_v1 = vld [vmem:[#allocation2 + $0x1340] sm:$0xff] }
 0x115   :  { %1236 = vmatmul.f32.vlgmr.msrb.gmra.mxu2 %v2794_v2  ;;  %1587 = vmatpush.msra.mxu0 %v1361_v17  ;;  %v1421_v2 = vld [vmem:[#allocation2 + $0x12d0] sm:$0xff]  ;;  %v623_v36 = vsel %vm611_vm0, %v2829_v28, -inf  ;;  %v628_v59 = vsel %vm617_vm1, %v2829_v28, -inf  ;;  %v1335_v15 = vld [vmem:[#allocation2 + $0x1020] sm:$0xff] }
 0x116   :  { %1627 = vmatpush.msra.mxu2 %v1425_v5  ;;  %1215 = vmatpush.msrb.mxu1 %v845_v6  ;;  %v1401_v0 = vld [vmem:[#allocation2 + $0x1230] sm:$0xff]  ;;  %v1399_v17 = vld [vmem:[#allocation2 + $0x1220] sm:$0xff] }
 0x117   :  { %1255 = vmatpush.msrb.mxu3 %v909_v11  ;;  %1196 = vmatmul.f32.vlgmr.msrb.gmra.mxu0 %v2799_v34  ;;  %v1419_v34 = vld [vmem:[#allocation2 + $0x12c0] sm:$0xff]  ;;  %v1369_v3 = vld [vmem:[#allocation2 + $0x1130] sm:$0xff] }
 0x118   :  { %1256 = vmatmul.f32.vlgmr.msrb.gmra.mxu3 %v2805_v35  ;;  %1588 = vmatpush.msra.mxu0 %v1359_v52  ;;  %v1353_v35 = vld [vmem:[#allocation2 + $0x10b0] sm:$0xff]  ;;  %v1367_v6 = vld [vmem:[#allocation2 + $0x1120] sm:$0xff] }
 0x119   :  { %1607 = vmatpush.msra.mxu1 %v1393_v12  ;;  %1628 = vmatpush.msra.mxu2 %v1423_v14  ;;  %v1433_v4 = vld [vmem:[#allocation2 + $0x1330] sm:$0xff]  ;;  %v1431_v11 = vld [vmem:[#allocation2 + $0x1320] sm:$0xff] }
 0x11a   :  { %1647 = vmatpush.msra.mxu3 %v1457_v46  ;;  %1216 = vmatmul.f32.vlgmr.msrb.gmra.mxu1 %v2811_v40  ;;  %v1351_v40 = vld [vmem:[#allocation2 + $0x10a0] sm:$0xff]  ;;  %v1333_v5 = vld [vmem:[#allocation2 + $0x1010] sm:$0xff] }
 0x11b   :  { %1589 = vmatpush.msra.mxu0 %v1357_v19  ;;  %1608 = vmatpush.msra.mxu1 %v1391_v20  ;;  %v1397_v10 = vld [vmem:[#allocation2 + $0x1210] sm:$0xff]  ;;  %v1331_v52 = vld [vmem:[#allocation2 + $0x1000] sm:$0xff] }
 0x11c   :  { %1629 = vmatpush.msra.mxu2 %v1421_v2  ;;  %1648 = vmatpush.msra.mxu3 %v1455_v51  ;;  %v1365_v12 = vld [vmem:[#allocation2 + $0x1110] sm:$0xff]  ;;  %v1395_v14 = vld [vmem:[#allocation2 + $0x1200] sm:$0xff] }
 0x11d   :  { %1590 = vmatpush.msra.mxu0 %v1355_v21  ;;  %1609 = vmatpush.msra.mxu1 %v1389_v22  ;;  %v1429_v16 = vld [vmem:[#allocation2 + $0x1310] sm:$0xff]  ;;  %v1363_v19 = vld [vmem:[#allocation2 + $0x1100] sm:$0xff] }
 0x11e   :  { %1630 = vmatpush.msra.mxu2 %v1419_v34  ;;  %1649 = vmatpush.msra.mxu3 %v1453_v23  ;;  %v1489_v46 = vld [vmem:[#allocation2 + $0x14f0] sm:$0xff]  ;;  %v1427_v20 = vld [vmem:[#allocation2 + $0x1300] sm:$0xff] }
 0x11f   :  { %1591 = vmatpush.msra.mxu0 %v1353_v35  ;;  %1610 = vmatpush.msra.mxu1 %v1387_v25  ;;  %v1553_v18 = vld [vmem:[#allocation2 + $0x16f0] sm:$0xff]  ;;  %v1487_v2 = vld [vmem:[#allocation2 + $0x14e0] sm:$0xff] }
 0x120   :  { %1631 = vmatpush.msra.mxu2 %v1417_v26  ;;  %1650 = vmatpush.msra.mxu3 %v1451_v27  ;;  %v1521_v51 = vld [vmem:[#allocation2 + $0x15f0] sm:$0xff]  ;;  %v1551_v21 = vld [vmem:[#allocation2 + $0x16e0] sm:$0xff] }
 0x121   :  { %1592 = vmatpush.msra.mxu0 %v1351_v40  ;;  %1611 = vmatpush.msra.mxu1 %v1385_v29  ;;  %v1585_v22 = vld [vmem:[#allocation2 + $0x17f0] sm:$0xff]  ;;  %v1519_v34 = vld [vmem:[#allocation2 + $0x15e0] sm:$0xff] }
 0x122   :  { %1632 = vmatpush.msra.mxu2 %v1415_v30  ;;  %1651 = vmatpush.msra.mxu3 %v1449_v31  ;;  %v1485_v57 = vld [vmem:[#allocation2 + $0x14d0] sm:$0xff]  ;;  %v1583_v24 = vld [vmem:[#allocation2 + $0x17e0] sm:$0xff] }
 0x123   :  { %1593 = vmatpush.msra.mxu0 %v1349_v32  ;;  %1612 = vmatpush.msra.mxu1 %v1383_v7  ;;  %v1549_v23 = vld [vmem:[#allocation2 + $0x16d0] sm:$0xff]  ;;  %v1483_v35 = vld [vmem:[#allocation2 + $0x14c0] sm:$0xff] }
 0x124   :  { %1633 = vmatpush.msra.mxu2 %v1413_v8  ;;  %1652 = vmatpush.msra.mxu3 %v1447_v33  ;;  %v1517_v25 = vld [vmem:[#allocation2 + $0x15d0] sm:$0xff]  ;;  %v1547_v26 = vld [vmem:[#allocation2 + $0x16c0] sm:$0xff] }
 0x125   :  { %624 = vmax.xlane.f32.xlu1 %v623_v36  ;;  %1594 = vmatpush.msra.mxu0 %v1347_v13  ;;  %v1581_v27 = vld [vmem:[#allocation2 + $0x17d0] sm:$0xff]  ;;  %v1515_v29 = vld [vmem:[#allocation2 + $0x15c0] sm:$0xff] }
 0x126   :  { %1613 = vmatpush.msra.mxu1 %v1381_v37  ;;  %1634 = vmatpush.msra.mxu2 %v1411_v38  ;;  %v1481_v40 = vld [vmem:[#allocation2 + $0x14b0] sm:$0xff]  ;;  %v1579_v31 = vld [vmem:[#allocation2 + $0x17c0] sm:$0xff] }
 0x127   :  { %1653 = vmatpush.msra.mxu3 %v1445_v39  ;;  %1595 = vmatpush.msra.mxu0 %v1345_v41  ;;  %v1545_v30 = vld [vmem:[#allocation2 + $0x16b0] sm:$0xff]  ;;  %v1479_v32 = vld [vmem:[#allocation2 + $0x14a0] sm:$0xff] }
 0x128   :  { %1614 = vmatpush.msra.mxu1 %v1379_v42  ;;  %1635 = vmatpush.msra.mxu2 %v1409_v43  ;;  %v1513_v7 = vld [vmem:[#allocation2 + $0x15b0] sm:$0xff]  ;;  %v1543_v8 = vld [vmem:[#allocation2 + $0x16a0] sm:$0xff] }
 0x129   :  { %1654 = vmatpush.msra.mxu3 %v1443_v44  ;;  %1596 = vmatpush.msra.mxu0 %v1343_v45  ;;  %v1577_v33 = vld [vmem:[#allocation2 + $0x17b0] sm:$0xff]  ;;  %v1511_v13 = vld [vmem:[#allocation2 + $0x15a0] sm:$0xff] }
 0x12a   :  { %1615 = vmatpush.msra.mxu1 %v1377_v47  ;;  %1636 = vmatpush.msra.mxu2 %v1407_v48  ;;  %v1477_v36 = vld [vmem:[#allocation2 + $0x1490] sm:$0xff]  ;;  %v1575_v38 = vld [vmem:[#allocation2 + $0x17a0] sm:$0xff] }
 0x12b   :  { %1655 = vmatpush.msra.mxu3 %v1441_v49  ;;  %1597 = vmatpush.msra.mxu0 %v1341_v50  ;;  %v1541_v37 = vld [vmem:[#allocation2 + $0x1690] sm:$0xff]  ;;  %v1475_v39 = vld [vmem:[#allocation2 + $0x1480] sm:$0xff] }
 0x12c   :  { %1616 = vmatpush.msra.mxu1 %v1375_v53  ;;  %1637 = vmatpush.msra.mxu2 %v1405_v54  ;;  %v1509_v41 = vld [vmem:[#allocation2 + $0x1590] sm:$0xff]  ;;  %v1539_v42 = vld [vmem:[#allocation2 + $0x1680] sm:$0xff] }
 0x12d   :  { %1656 = vmatpush.msra.mxu3 %v1439_v55  ;;  %629 = vmax.xlane.f32.xlu1 %v628_v59  ;;  %v1573_v43 = vld [vmem:[#allocation2 + $0x1790] sm:$0xff]  ;;  %v1507_v45 = vld [vmem:[#allocation2 + $0x1580] sm:$0xff] }
 0x12e   :  { %1598 = vmatpush.msra.mxu0 %v1339_v56  ;;  %1617 = vmatpush.msra.mxu1 %v1373_v58  ;;  %v1473_v44 = vld [vmem:[#allocation2 + $0x1470] sm:$0xff]  ;;  %v1571_v48 = vld [vmem:[#allocation2 + $0x1780] sm:$0xff] }
 0x12f   :  { %1638 = vmatpush.msra.mxu2 %v1403_v61  ;;  %1657 = vmatpush.msra.mxu3 %v1437_v9  ;;  %v1537_v47 = vld [vmem:[#allocation2 + $0x1670] sm:$0xff]  ;;  %v1471_v49 = vld [vmem:[#allocation2 + $0x1460] sm:$0xff] }
 0x130   :  { %1599 = vmatpush.msra.mxu0 %v1337_v62  ;;  %1618 = vmatpush.msra.mxu1 %v1371_v63  ;;  %v1505_v50 = vld [vmem:[#allocation2 + $0x1570] sm:$0xff]  ;;  %v1535_v53 = vld [vmem:[#allocation2 + $0x1660] sm:$0xff] }
 0x131   :  { %1639 = vmatpush.msra.mxu2 %v1401_v0  ;;  %1658 = vmatpush.msra.mxu3 %v1435_v1  ;;  %v1569_v54 = vld [vmem:[#allocation2 + $0x1770] sm:$0xff]  ;;  %v1503_v58 = vld [vmem:[#allocation2 + $0x1560] sm:$0xff] }
 0x132   :  { %1600 = vmatpush.msra.mxu0 %v1335_v15  ;;  %1619 = vmatpush.msra.mxu1 %v1369_v3  ;;  %v1469_v56 = vld [vmem:[#allocation2 + $0x1450] sm:$0xff]  ;;  %v1567_v61 = vld [vmem:[#allocation2 + $0x1760] sm:$0xff] }
 0x133   :  { %1640 = vmatpush.msra.mxu2 %v1399_v17  ;;  %1659 = vmatpush.msra.mxu3 %v1433_v4  ;;  %v1533_v59 = vld [vmem:[#allocation2 + $0x1650] sm:$0xff]  ;;  %v1467_v62 = vld [vmem:[#allocation2 + $0x1440] sm:$0xff] }
 0x134   :  { %1601 = vmatpush.msra.mxu0 %v1333_v5  ;;  %1620 = vmatpush.msra.mxu1 %v1367_v6  ;;  %v1501_v63 = vld [vmem:[#allocation2 + $0x1550] sm:$0xff]  ;;  %v1531_v1 = vld [vmem:[#allocation2 + $0x1640] sm:$0xff] }
 0x135   :  { %1641 = vmatpush.msra.mxu2 %v1397_v10  ;;  %1660 = vmatpush.msra.mxu3 %v1431_v11  ;;  %v1565_v15 = vld [vmem:[#allocation2 + $0x1750] sm:$0xff]  ;;  %v2838_v17 = vld [vmem:[%s3049_s0 + $0x60] sm:$0xff] }
 0x136   :  { %1602 = vmatpush.msra.mxu0 %v1331_v52  ;;  %1621 = vmatpush.msra.mxu1 %v1365_v12  ;;  %v1465_v4 = vld [vmem:[#allocation2 + $0x1430] sm:$0xff]  ;;  %v1499_v5 = vld [vmem:[#allocation2 + $0x1540] sm:$0xff]  ;;  %v2849_v12 = vld [vmem:[%s3049_s0 + $0x68] sm:$0xff] }
 0x137   :  { %1642 = vmatpush.msra.mxu2 %v1395_v14  ;;  %1661 = vmatpush.msra.mxu3 %v1429_v16  ;;  %v1529_v6 = vld [vmem:[#allocation2 + $0x1630] sm:$0xff]  ;;  %v1563_v10 = vld [vmem:[#allocation2 + $0x1740] sm:$0xff] }
 0x138   :  { %1667 = vmatpush.msrb.mxu0 %v1489_v46  ;;  %1622 = vmatpush.msra.mxu1 %v1363_v19  ;;  %v2843_v11 = vld [vmem:[%s3049_s0 + $0x20] sm:$0xff]  ;;  %v1497_v46 = vld [vmem:[#allocation2 + $0x1530] sm:$0xff] }
 0x139   :  { %1707 = vmatpush.msrb.mxu2 %v1553_v18  ;;  %1662 = vmatpush.msra.mxu3 %v1427_v20  ;;  %v1463_v14 = vld [vmem:[#allocation2 + $0x1420] sm:$0xff]  ;;  %v1561_v19 = vld [vmem:[#allocation2 + $0x1730] sm:$0xff]  ;;  %v2855_v20 = vld [vmem:[%s3049_s0 + $0x28] sm:$0xff] }
 0x13a   :  { %1668 = vmatpush.msrb.mxu0 %v1487_v2  ;;  %1687 = vmatpush.msrb.mxu1 %v1521_v51  ;;  %v1527_v18 = vld [vmem:[#allocation2 + $0x1620] sm:$0xff]  ;;  %v1461_v2 = vld [vmem:[#allocation2 + $0x1410] sm:$0xff] }
 0x13b   :  { %1708 = vmatpush.msrb.mxu2 %v1551_v21  ;;  %1727 = vmatpush.msrb.mxu3 %v1585_v22  ;;  %v1495_v51 = vld [vmem:[#allocation2 + $0x1520] sm:$0xff] }
 0x13c   :  { %1669 = vmatpush.msrb.mxu0 %v1485_v57  ;;  %1688 = vmatpush.msrb.mxu1 %v1519_v34  ;;  %v1525_v57 = vld [vmem:[#allocation2 + $0x1610] sm:$0xff]  ;;  %v1559_v34 = vld [vmem:[#allocation2 + $0x1720] sm:$0xff] }
 0x13d   :  { %1709 = vmatpush.msrb.mxu2 %v1549_v23  ;;  %1728 = vmatpush.msrb.mxu3 %v1583_v24  ;;  %v1459_v24 = vld [vmem:[#allocation2 + $0x1400] sm:$0xff] }
 0x13e   :  { %1670 = vmatpush.msrb.mxu0 %v1483_v35  ;;  %1689 = vmatpush.msrb.mxu1 %v1517_v25  ;;  %v1493_v35 = vld [vmem:[#allocation2 + $0x1510] sm:$0xff]  ;;  %v1523_v25 = vld [vmem:[#allocation2 + $0x1600] sm:$0xff] }
 0x13f   :  { %1710 = vmatpush.msrb.mxu2 %v1547_v26  ;;  %1729 = vmatpush.msrb.mxu3 %v1581_v27  ;;  %v1557_v26 = vld [vmem:[#allocation2 + $0x1710] sm:$0xff]  ;;  %v2862_v27 = vld [vmem:[%s3049_s0 + $0xe0] sm:$0xff] }
 0x140   :  { %1671 = vmatpush.msrb.mxu0 %v1481_v40  ;;  %1690 = vmatpush.msrb.mxu1 %v1515_v29  ;;  %v1362_v40 = vld [vmem:[#allocation2 + $0x10f8] sm:$0xff] }
 0x141   :  { %1711 = vmatpush.msrb.mxu2 %v1545_v30  ;;  %1730 = vmatpush.msrb.mxu3 %v1579_v31  ;;  %v1426_v30 = vld [vmem:[#allocation2 + $0x12f8] sm:$0xff]  ;;  %v1491_v31 = vld [vmem:[#allocation2 + $0x1500] sm:$0xff] }
 0x142   :  { %1672 = vmatpush.msrb.mxu0 %v1479_v32  ;;  %1691 = vmatpush.msrb.mxu1 %v1513_v7  ;;  %v1555_v7 = vld [vmem:[#allocation2 + $0x1700] sm:$0xff] }
 0x143   :  { %1712 = vmatpush.msrb.mxu2 %v1543_v8  ;;  %1731 = vmatpush.msrb.mxu3 %v1577_v33  ;;  %v2867_v8 = vld [vmem:[%s3049_s0 + $0xa0] sm:$0xff]  ;;  %v2873_v33 = vld [vmem:[%s3049_s0 + $0xe8] sm:$0xff] }
 0x144   :  { %1673 = vmatpush.msrb.mxu0 %v1477_v36  ;;  %1692 = vmatpush.msrb.mxu1 %v1511_v13  ;;  %v1360_v36 = vld [vmem:[#allocation2 + $0x10e8] sm:$0xff] }
 0x145   :  { %1713 = vmatpush.msrb.mxu2 %v1541_v37  ;;  %1732 = vmatpush.msrb.mxu3 %v1575_v38  ;;  %v957_v9 = vpop.f32.mrf.mxu0  ;;  %v1394_v37 = vld [vmem:[#allocation2 + $0x11f8] sm:$0xff]  ;;  %v1424_v38 = vld [vmem:[#allocation2 + $0x12e8] sm:$0xff] }
 0x146   :  { %1674 = vmatpush.msrb.mxu0 %v1475_v39  ;;  %1693 = vmatpush.msrb.mxu1 %v1509_v41 }
 0x147   :  { %1714 = vmatpush.msrb.mxu2 %v1539_v42  ;;  %1733 = vmatpush.msrb.mxu3 %v1573_v43  ;;  %v1458_v42 = vld [vmem:[#allocation2 + $0x13f8] sm:$0xff]  ;;  %v2879_v43 = vld [vmem:[%s3049_s0 + $0xa8] sm:$0xff] }
 0x148   :  { %1675 = vmatpush.msrb.mxu0 %v1473_v44  ;;  %1694 = vmatpush.msrb.mxu1 %v1507_v45  ;;  %v977_v55 = vpop.f32.mrf.mxu1 }
 0x149   :  { %1715 = vmatpush.msrb.mxu2 %v1537_v47  ;;  %1734 = vmatpush.msrb.mxu3 %v1571_v48  ;;  %v978_v0 = vadd.f32 %v977_v55, %v957_v9  ;;  %v997_v3 = vpop.f32.mrf.mxu2  ;;  %v1358_v47 = vld [vmem:[#allocation2 + $0x10d8] sm:$0xff]  ;;  %v1392_v48 = vld [vmem:[#allocation2 + $0x11e8] sm:$0xff] }
 0x14a   :  { %1676 = vmatpush.msrb.mxu0 %v1471_v49  ;;  %1695 = vmatpush.msrb.mxu1 %v1505_v50  ;;  %v1422_v49 = vld [vmem:[#allocation2 + $0x12d8] sm:$0xff]  ;;  %v1456_v50 = vld [vmem:[#allocation2 + $0x13e8] sm:$0xff] }
 0x14b   :  { %1716 = vmatpush.msrb.mxu2 %v1535_v53  ;;  %1735 = vmatpush.msrb.mxu3 %v1569_v54  ;;  %v998_v52 = vadd.f32 %v997_v3, %v978_v0  ;;  %v1356_v55 = vld [vmem:[#allocation2 + $0x10c8] sm:$0xff] }
 0x14c   :  { %1677 = vmatpush.msrb.mxu0 %v1469_v56  ;;  %1696 = vmatpush.msrb.mxu1 %v1503_v58  ;;  %v1017_v16 = vpop.f32.mrf.mxu3  ;;  %v1390_v56 = vld [vmem:[#allocation2 + $0x11d8] sm:$0xff]  ;;  %v1388_v0 = vld [vmem:[#allocation2 + $0x11c8] sm:$0xff] }
 0x14d   :  { %1717 = vmatpush.msrb.mxu2 %v1533_v59  ;;  %1736 = vmatpush.msrb.mxu3 %v1567_v61  ;;  %v1018_v21 = vadd.f32 %v1017_v16, %v998_v52  ;;  %v1420_v59 = vld [vmem:[#allocation2 + $0x12c8] sm:$0xff]  ;;  %v1454_v61 = vld [vmem:[#allocation2 + $0x13d8] sm:$0xff] }
 0x14e   :  { %1678 = vmatpush.msrb.mxu0 %v1467_v62  ;;  %1697 = vmatpush.msrb.mxu1 %v1501_v63  ;;  %v1354_v63 = vld [vmem:[#allocation2 + $0x10b8] sm:$0xff] }
 0x14f   :  { %1718 = vmatpush.msrb.mxu2 %v1531_v1  ;;  %1737 = vmatpush.msrb.mxu3 %v1565_v15  ;;  %v1037_v23 = vpop.f32.mrf.mxu0  ;;  %v1452_v15 = vld [vmem:[#allocation2 + $0x13c8] sm:$0xff]  ;;  %v1350_v52 = vld [vmem:[#allocation2 + $0x1098] sm:$0xff] }
 0x150   :  { %1643 = vmatmul.f32.vlgmr.msra.gmra.mxu2 %v2838_v17  ;;  %1679 = vmatpush.msrb.mxu0 %v1465_v4  ;;  %v1038_v29 = vadd.f32 %v1037_v23, %v1018_v21  ;;  %v1352_v4 = vld [vmem:[#allocation2 + $0x10a8] sm:$0xff]  ;;  %v1414_v16 = vld [vmem:[#allocation2 + $0x1298] sm:$0xff] }
 0x151   :  { %1698 = vmatpush.msrb.mxu1 %v1499_v5  ;;  %1719 = vmatpush.msrb.mxu2 %v1529_v6  ;;  %v1386_v5 = vld [vmem:[#allocation2 + $0x11b8] sm:$0xff]  ;;  %v1416_v6 = vld [vmem:[#allocation2 + $0x12a8] sm:$0xff] }
 0x152   :  { %1738 = vmatpush.msrb.mxu3 %v1563_v10  ;;  %1603 = vmatmul.f32.vlgmr.msra.gmra.mxu0 %v2843_v11  ;;  %v1057_v32 = vpop.f32.mrf.mxu1  ;;  %v1450_v10 = vld [vmem:[#allocation2 + $0x13b8] sm:$0xff]  ;;  %v1380_v23 = vld [vmem:[#allocation2 + $0x1188] sm:$0xff] }
 0x153   :  { %1663 = vmatmul.f32.vlgmr.msra.gmra.mxu3 %v2849_v12  ;;  %1680 = vmatpush.msrb.mxu0 %v1463_v14  ;;  %v614_v22 = vpop.xlane.xlu0 %613  ;;  %v1058_v39 = vadd.f32 %v1057_v32, %v1038_v29  ;;  %v1077_v44 = vpop.f32.mrf.mxu2  ;;  %v1384_v14 = vld [vmem:[#allocation2 + $0x11a8] sm:$0xff]  ;;  %v1442_v29 = vld [vmem:[#allocation2 + $0x1378] sm:$0xff] }
 0x154   :  { %1699 = vmatpush.msrb.mxu1 %v1497_v46  ;;  %1720 = vmatpush.msrb.mxu2 %v1527_v18  ;;  %v615_v13 = vmul.f32 0.5, %v614_v22  ;;  %v1448_v46 = vld [vmem:[#allocation2 + $0x13a8] sm:$0xff]  ;;  %v1446_v22 = vld [vmem:[#allocation2 + $0x1398] sm:$0xff] }
 0x155   :  { %1739 = vmatpush.msrb.mxu3 %v1561_v19  ;;  %1623 = vmatmul.f32.vlgmr.msra.gmra.mxu1 %v2855_v20  ;;  %v1078_v58 = vadd.f32 %v1077_v44, %v1058_v39  ;;  %v1348_v19 = vld [vmem:[#allocation2 + $0x1088] sm:$0xff]  ;;  %v1406_v32 = vld [vmem:[#allocation2 + $0x1258] sm:$0xff] }
 0x156   :  { %1681 = vmatpush.msrb.mxu0 %v1461_v2  ;;  %1700 = vmatpush.msrb.mxu1 %v1495_v51  ;;  %v616_v53 = vsub.f32 %v2815_v60, %v615_v13  ;;  %v1097_v9 = vpop.f32.mrf.mxu3  ;;  %v1382_v2 = vld [vmem:[#allocation2 + $0x1198] sm:$0xff]  ;;  %v1412_v51 = vld [vmem:[#allocation2 + $0x1288] sm:$0xff] }
 0x157   :  { %1721 = vmatpush.msrb.mxu2 %v1525_v57  ;;  %1740 = vmatpush.msrb.mxu3 %v1559_v34  ;;  %v2886_v3 = vadd.f32 %v1097_v9, %v1078_v58  ;;  %v1346_v57 = vld [vmem:[#allocation2 + $0x1078] sm:$0xff]  ;;  %v1372_v44 = vld [vmem:[#allocation2 + $0x1148] sm:$0xff] }
 0x158   :  { %1682 = vmatpush.msrb.mxu0 %v1459_v24  ;;  %1701 = vmatpush.msrb.mxu1 %v1493_v35  ;;  %v1410_v24 = vld [vmem:[#allocation2 + $0x1278] sm:$0xff]  ;;  %v1444_v35 = vld [vmem:[#allocation2 + $0x1388] sm:$0xff] }
 0x159   :  { %1722 = vmatpush.msrb.mxu2 %v1523_v25  ;;  %1741 = vmatpush.msrb.mxu3 %v1557_v26  ;;  %v1260_v18 = vsel %vm611_vm0, %v2886_v3, -inf  ;;  %v1344_v25 = vld [vmem:[#allocation2 + $0x1068] sm:$0xff]  ;;  %v1378_v26 = vld [vmem:[#allocation2 + $0x1178] sm:$0xff] }
 0x15a   :  { %1723 = vmatmul.f32.vlgmr.msrb.gmra.mxu2 %v2862_v27  ;;  %1747 = vmatpush.msra.mxu0 %v1362_v40  ;;  %v1408_v40 = vld [vmem:[#allocation2 + $0x1268] sm:$0xff]  ;;  %v1374_v13 = vld [vmem:[#allocation2 + $0x1158] sm:$0xff] }
 0x15b   :  { %1787 = vmatpush.msra.mxu2 %v1426_v30  ;;  %1702 = vmatpush.msrb.mxu1 %v1491_v31  ;;  %v620_v41 = vpop.xlane.xlu0 %619  ;;  %v1342_v30 = vld [vmem:[#allocation2 + $0x1058] sm:$0xff]  ;;  %v1376_v31 = vld [vmem:[#allocation2 + $0x1168] sm:$0xff] }
 0x15c   :  { %1742 = vmatpush.msrb.mxu3 %v1555_v7  ;;  %1683 = vmatmul.f32.vlgmr.msrb.gmra.mxu0 %v2867_v8  ;;  %v621_v45 = vmul.f32 0.5, %v620_v41  ;;  %v1440_v7 = vld [vmem:[#allocation2 + $0x1368] sm:$0xff]  ;;  %v1438_v39 = vld [vmem:[#allocation2 + $0x1358] sm:$0xff] }
 0x15d   :  { %1743 = vmatmul.f32.vlgmr.msrb.gmra.mxu3 %v2873_v33  ;;  %1748 = vmatpush.msra.mxu0 %v1360_v36  ;;  %v1340_v36 = vld [vmem:[#allocation2 + $0x1048] sm:$0xff]  ;;  %v1334_v58 = vld [vmem:[#allocation2 + $0x1018] sm:$0xff] }
 0x15e   :  { %1767 = vmatpush.msra.mxu1 %v1394_v37  ;;  %1788 = vmatpush.msra.mxu2 %v1424_v38  ;;  %v622_v54 = vsub.f32 %v2815_v60, %v621_v45  ;;  %v1418_v60 = vld [vmem:[#allocation2 + $0x12b8] sm:$0xff]  ;;  %v1265_v37 = vsel %vm617_vm1, %v2886_v3, -inf  ;;  %v1404_v38 = vld [vmem:[#allocation2 + $0x1248] sm:$0xff] }
 0x15f   :  { %1807 = vmatpush.msra.mxu3 %v1458_v42  ;;  %1703 = vmatmul.f32.vlgmr.msrb.gmra.mxu1 %v2879_v43  ;;  %v1338_v42 = vld [vmem:[#allocation2 + $0x1038] sm:$0xff] }
 0x160   :  { %1749 = vmatpush.msra.mxu0 %v1358_v47  ;;  %1768 = vmatpush.msra.mxu1 %v1392_v48  ;;  %v633_v62 = vsel %vm611_vm0, %v616_v53, %v622_v54  ;;  %v1402_v47 = vld [vmem:[#allocation2 + $0x1238] sm:$0xff]  ;;  %v1436_v48 = vld [vmem:[#allocation2 + $0x1348] sm:$0xff] }
 0x161   :  { %1789 = vmatpush.msra.mxu2 %v1422_v49  ;;  %1808 = vmatpush.msra.mxu3 %v1456_v50  ;;  %v2621_v1 = vmul.f32 -1.442695, %v633_v62  ;;  %v1336_v49 = vld [vmem:[#allocation2 + $0x1028] sm:$0xff]  ;;  %v1370_v50 = vld [vmem:[#allocation2 + $0x1138] sm:$0xff] }
 0x162   :  { %1750 = vmatpush.msra.mxu0 %v1356_v55  ;;  %1769 = vmatpush.msra.mxu1 %v1390_v56  ;;  %v1400_v54 = vld [vmem:[#allocation2 + $0x1228] sm:$0xff]  ;;  %v1434_v55 = vld [vmem:[#allocation2 + $0x1338] sm:$0xff] }
 0x163   :  { %1790 = vmatpush.msra.mxu2 %v1420_v59  ;;  %1809 = vmatpush.msra.mxu3 %v1454_v61  ;;  %2632 = vpow2.f32 %v2621_v1  ;;  %v1368_v59 = vld [vmem:[#allocation2 + $0x1128] sm:$0xff]  ;;  %v1398_v62 = vld [vmem:[#allocation2 + $0x1218] sm:$0xff] }
 0x164   :  { %1751 = vmatpush.msra.mxu0 %v1354_v63  ;;  %1770 = vmatpush.msra.mxu1 %v1388_v0  ;;  %v1432_v63 = vld [vmem:[#allocation2 + $0x1328] sm:$0xff]  ;;  %v1366_v1 = vld [vmem:[#allocation2 + $0x1118] sm:$0xff] }
 0x165   :  { %1791 = vmatpush.msra.mxu2 %v1418_v60  ;;  %1810 = vmatpush.msra.mxu3 %v1452_v15  ;;  %v1332_v0 = vld [vmem:[#allocation2 + $0x1008] sm:$0xff] }
 0x166   :  { %1752 = vmatpush.msra.mxu0 %v1352_v4  ;;  %1771 = vmatpush.msra.mxu1 %v1386_v5  ;;  %v1396_v15 = vld [vmem:[#allocation2 + $0x1208] sm:$0xff]  ;;  %v1430_v4 = vld [vmem:[#allocation2 + $0x1318] sm:$0xff] }
 0x167   :  { %1792 = vmatpush.msra.mxu2 %v1416_v6  ;;  %1811 = vmatpush.msra.mxu3 %v1450_v10  ;;  %v1490_v6 = vld [vmem:[#allocation2 + $0x14f8] sm:$0xff] }
 0x168   :  { %1753 = vmatpush.msra.mxu0 %v1350_v52  ;;  %1772 = vmatpush.msra.mxu1 %v1384_v14  ;;  %v1554_v10 = vld [vmem:[#allocation2 + $0x16f8] sm:$0xff]  ;;  %v1364_v14 = vld [vmem:[#allocation2 + $0x1108] sm:$0xff] }
 0x169   :  { %v2633_v21 = vpop.eup %2632  ;;  %1793 = vmatpush.msra.mxu2 %v1414_v16  ;;  %1812 = vmatpush.msra.mxu3 %v1448_v46  ;;  %v1428_v16 = vld [vmem:[#allocation2 + $0x1308] sm:$0xff] }
 0x16a   :  { %v2890_v34 = vadd.f32 1.0, %v2633_v21  ;;  %1261 = vmax.xlane.f32.xlu2 %v1260_v18  ;;  %1754 = vmatpush.msra.mxu0 %v1348_v19  ;;  %v1488_v18 = vld [vmem:[#allocation2 + $0x14e8] sm:$0xff]  ;;  %v1522_v19 = vld [vmem:[#allocation2 + $0x15f8] sm:$0xff] }
 0x16b   :  { %1773 = vmatpush.msra.mxu1 %v1382_v2  ;;  %1794 = vmatpush.msra.mxu2 %v1412_v51  ;;  %v1552_v2 = vld [vmem:[#allocation2 + $0x16e8] sm:$0xff]  ;;  %v1586_v51 = vld [vmem:[#allocation2 + $0x17f8] sm:$0xff] }
 0x16c   :  { %2634 = vrcp.f32 %v2890_v34  ;;  %1813 = vmatpush.msra.mxu3 %v1446_v22  ;;  %1755 = vmatpush.msra.mxu0 %v1346_v57  ;;  %v654_v56 = vand.u32 2147483648, %v2890_v34  ;;  %v652_v9 = vand.u32 2147483647, %v2890_v34  ;;  %vm648_vm3 = vweird.f32 %v2890_v34  ;;  %v1486_v21 = vld [vmem:[#allocation2 + $0x14d8] sm:$0xff]  ;;  %v1520_v22 = vld [vmem:[#allocation2 + $0x15e8] sm:$0xff] }
 0x16d   :  { %1774 = vmatpush.msra.mxu1 %v1380_v23  ;;  %1795 = vmatpush.msra.mxu2 %v1410_v24  ;;  %v1550_v57 = vld [vmem:[#allocation2 + $0x16d8] sm:$0xff]  ;;  %v1484_v23 = vld [vmem:[#allocation2 + $0x14c8] sm:$0xff] }
 0x16e   :  { %1814 = vmatpush.msra.mxu3 %v1444_v35  ;;  %1756 = vmatpush.msra.mxu0 %v1344_v25  ;;  %v655_v5 = vor.u32 1.1754944e-38, %v654_v56  ;;  %vm653_vm5 = vcmp.eq.f32.partialorder %v652_v9, 8.507059e+37  ;;  %v1518_v24 = vld [vmem:[#allocation2 + $0x15d8] sm:$0xff]  ;;  %v1548_v35 = vld [vmem:[#allocation2 + $0x16c8] sm:$0xff] }
 0x16f   :  { %1775 = vmatpush.msra.mxu1 %v1378_v26  ;;  %1796 = vmatpush.msra.mxu2 %v1408_v40  ;;  %v1582_v25 = vld [vmem:[#allocation2 + $0x17d8] sm:$0xff]  ;;  %v1516_v40 = vld [vmem:[#allocation2 + $0x15c8] sm:$0xff] }
 0x170   :  { %1815 = vmatpush.msra.mxu3 %v1442_v29  ;;  %1757 = vmatpush.msra.mxu0 %v1342_v30  ;;  %v1482_v26 = vld [vmem:[#allocation2 + $0x14b8] sm:$0xff]  ;;  %v1580_v30 = vld [vmem:[#allocation2 + $0x17c8] sm:$0xff] }
 0x171   :  { %1776 = vmatpush.msra.mxu1 %v1376_v31  ;;  %1797 = vmatpush.msra.mxu2 %v1406_v32  ;;  %v1546_v29 = vld [vmem:[#allocation2 + $0x16b8] sm:$0xff]  ;;  %v1480_v31 = vld [vmem:[#allocation2 + $0x14a8] sm:$0xff] }
 0x172   :  { %v2635_v41 = vpop.eup %2634  ;;  %1816 = vmatpush.msra.mxu3 %v1440_v7  ;;  %1266 = vmax.xlane.f32.xlu2 %v1265_v37  ;;  %v1514_v32 = vld [vmem:[#allocation2 + $0x15b8] sm:$0xff]  ;;  %v1544_v7 = vld [vmem:[#allocation2 + $0x16a8] sm:$0xff] }
 0x173   :  { %v644_v45 = vmul.f32 %v2635_v41, %v2890_v34  ;;  %1758 = vmatpush.msra.mxu0 %v1340_v36  ;;  %1777 = vmatpush.msra.mxu1 %v1374_v13  ;;  %vm649_vm2 = vweird.f32 %v2635_v41  ;;  %v1584_v34 = vld [vmem:[#allocation2 + $0x17e8] sm:$0xff]  ;;  %v1578_v36 = vld [vmem:[#allocation2 + $0x17b8] sm:$0xff] }
 0x174   :  { %1798 = vmatpush.msra.mxu2 %v1404_v38  ;;  %1817 = vmatpush.msra.mxu3 %v1438_v39  ;;  %vm650_vm4 = vmor %vm648_vm3, %vm649_vm2  ;;  %v1478_v13 = vld [vmem:[#allocation2 + $0x1498] sm:$0xff]  ;;  %v1512_v37 = vld [vmem:[#allocation2 + $0x15a8] sm:$0xff] }
 0x175   :  { %v645_v53 = vsub.f32 1.0, %v644_v45  ;;  %1759 = vmatpush.msra.mxu0 %v1338_v42  ;;  %1778 = vmatpush.msra.mxu1 %v1372_v44  ;;  %v1542_v38 = vld [vmem:[#allocation2 + $0x1698] sm:$0xff]  ;;  %v1576_v39 = vld [vmem:[#allocation2 + $0x17a8] sm:$0xff] }
 0x176   :  { %1799 = vmatpush.msra.mxu2 %v1402_v47  ;;  %1818 = vmatpush.msra.mxu3 %v1436_v48  ;;  %v1510_v42 = vld [vmem:[#allocation2 + $0x1598] sm:$0xff]  ;;  %v1540_v44 = vld [vmem:[#allocation2 + $0x1688] sm:$0xff] }
 0x177   :  { %v646_v61 = vmul.f32 %v2635_v41, %v645_v53  ;;  %1760 = vmatpush.msra.mxu0 %v1336_v49  ;;  %1779 = vmatpush.msra.mxu1 %v1370_v50  ;;  %v1574_v45 = vld [vmem:[#allocation2 + $0x1798] sm:$0xff]  ;;  %v1508_v48 = vld [vmem:[#allocation2 + $0x1588] sm:$0xff] }
 0x178   :  { %1800 = vmatpush.msra.mxu2 %v1400_v54  ;;  %1819 = vmatpush.msra.mxu3 %v1434_v55  ;;  %v1474_v47 = vld [vmem:[#allocation2 + $0x1478] sm:$0xff]  ;;  %v1572_v50 = vld [vmem:[#allocation2 + $0x1788] sm:$0xff] }
 0x179   :  { %v647_v60 = vadd.f32 %v2635_v41, %v646_v61  ;;  %1761 = vmatpush.msra.mxu0 %v1334_v58  ;;  %1780 = vmatpush.msra.mxu1 %v1368_v59  ;;  %v1538_v49 = vld [vmem:[#allocation2 + $0x1678] sm:$0xff]  ;;  %v1472_v53 = vld [vmem:[#allocation2 + $0x1468] sm:$0xff] }
 0x17a   :  { %1801 = vmatpush.msra.mxu2 %v1398_v62  ;;  %1820 = vmatpush.msra.mxu3 %v1432_v63  ;;  %v1506_v54 = vld [vmem:[#allocation2 + $0x1578] sm:$0xff]  ;;  %v1536_v55 = vld [vmem:[#allocation2 + $0x1668] sm:$0xff] }
 0x17b   :  { %v651_v52 = vsel %vm650_vm4, %v2635_v41, %v647_v60  ;;  %1762 = vmatpush.msra.mxu0 %v1332_v0  ;;  %1781 = vmatpush.msra.mxu1 %v1366_v1  ;;  %v1476_v41 = vld [vmem:[#allocation2 + $0x1488] sm:$0xff]  ;;  %v1570_v56 = vld [vmem:[#allocation2 + $0x1778] sm:$0xff] }
 0x17c   :  { %v656_v46 = vsel %vm653_vm5, %v655_v5, %v651_v52  ;;  %1802 = vmatpush.msra.mxu2 %v1396_v15  ;;  %1821 = vmatpush.msra.mxu3 %v1430_v4  ;;  %v1470_v59 = vld [vmem:[#allocation2 + $0x1458] sm:$0xff]  ;;  %v1504_v61 = vld [vmem:[#allocation2 + $0x1568] sm:$0xff] }
 0x17d   :  { %673 = vst [vmem:[%s3051_s2] sm:$0xff] %v656_v46  ;;  %1827 = vmatpush.msrb.mxu0 %v1490_v6  ;;  %1782 = vmatpush.msra.mxu1 %v1364_v14  ;;  %v1534_v9 = vld [vmem:[#allocation2 + $0x1658] sm:$0xff]  ;;  %v1568_v62 = vld [vmem:[#allocation2 + $0x1768] sm:$0xff] }
 0x17e   :  { %1867 = vmatpush.msrb.mxu2 %v1554_v10  ;;  %1822 = vmatpush.msra.mxu3 %v1428_v16  ;;  %v1468_v0 = vld [vmem:[#allocation2 + $0x1448] sm:$0xff]  ;;  %v1502_v1 = vld [vmem:[#allocation2 + $0x1558] sm:$0xff] }
 0x17f   :  { %1828 = vmatpush.msrb.mxu0 %v1488_v18  ;;  %1847 = vmatpush.msrb.mxu1 %v1522_v19  ;;  %v1532_v15 = vld [vmem:[#allocation2 + $0x1648] sm:$0xff]  ;;  %v1566_v4 = vld [vmem:[#allocation2 + $0x1758] sm:$0xff] }
 0x180   :  { %1868 = vmatpush.msrb.mxu2 %v1552_v2  ;;  %1887 = vmatpush.msrb.mxu3 %v1586_v51  ;;  %v1466_v6 = vld [vmem:[#allocation2 + $0x1438] sm:$0xff]  ;;  %v1500_v10 = vld [vmem:[#allocation2 + $0x1548] sm:$0xff] }
 0x181   :  { %1829 = vmatpush.msrb.mxu0 %v1486_v21  ;;  %1848 = vmatpush.msrb.mxu1 %v1520_v22  ;;  %v1530_v52 = vld [vmem:[#allocation2 + $0x1638] sm:$0xff]  ;;  %v1564_v14 = vld [vmem:[#allocation2 + $0x1748] sm:$0xff] }
 0x182   :  { %1869 = vmatpush.msrb.mxu2 %v1550_v57  ;;  %1888 = vmatpush.msrb.mxu3 %v1584_v34  ;;  %v1464_v46 = vld [vmem:[#allocation2 + $0x1428] sm:$0xff]  ;;  %v1498_v19 = vld [vmem:[#allocation2 + $0x1538] sm:$0xff] }
 0x183   :  { %1830 = vmatpush.msrb.mxu0 %v1484_v23  ;;  %1849 = vmatpush.msrb.mxu1 %v1518_v24  ;;  %v1528_v2 = vld [vmem:[#allocation2 + $0x1628] sm:$0xff]  ;;  %v1562_v51 = vld [vmem:[#allocation2 + $0x1738] sm:$0xff] }
 0x184   :  { %1870 = vmatpush.msrb.mxu2 %v1548_v35  ;;  %1889 = vmatpush.msrb.mxu3 %v1582_v25  ;;  %v1462_v21 = vld [vmem:[#allocation2 + $0x1418] sm:$0xff]  ;;  %v1496_v22 = vld [vmem:[#allocation2 + $0x1528] sm:$0xff] }
 0x185   :  { %1831 = vmatpush.msrb.mxu0 %v1482_v26  ;;  %1850 = vmatpush.msrb.mxu1 %v1516_v40  ;;  %v1560_v23 = vld [vmem:[#allocation2 + $0x1728] sm:$0xff]  ;;  %v1494_v25 = vld [vmem:[#allocation2 + $0x1518] sm:$0xff] }
 0x186   :  { %1871 = vmatpush.msrb.mxu2 %v1546_v29  ;;  %1890 = vmatpush.msrb.mxu3 %v1580_v30  ;;  %v1460_v35 = vld [vmem:[#allocation2 + $0x1408] sm:$0xff]  ;;  %v1558_v26 = vld [vmem:[#allocation2 + $0x1718] sm:$0xff]  ;;  %v2072_v29 = vld [vmem:[#allocation2 + $0x1af0] sm:$0xff] }
 0x187   :  { %1832 = vmatpush.msrb.mxu0 %v1480_v31  ;;  %1851 = vmatpush.msrb.mxu1 %v1514_v32  ;;  %v1492_v30 = vld [vmem:[#allocation2 + $0x1508] sm:$0xff] }
 0x188   :  { %1872 = vmatpush.msrb.mxu2 %v1544_v7  ;;  %1891 = vmatpush.msrb.mxu3 %v1578_v36  ;;  %v1556_v32 = vld [vmem:[#allocation2 + $0x1708] sm:$0xff]  ;;  %v2040_v36 = vld [vmem:[#allocation2 + $0x19f0] sm:$0xff] }
 0x189   :  { %1833 = vmatpush.msrb.mxu0 %v1478_v13  ;;  %1852 = vmatpush.msrb.mxu1 %v1512_v37  ;;  %v2070_v13 = vld [vmem:[#allocation2 + $0x1ae0] sm:$0xff] }
 0x18a   :  { %1873 = vmatpush.msrb.mxu2 %v1542_v38  ;;  %1892 = vmatpush.msrb.mxu3 %v1576_v39  ;;  %v1117_v63 = vpop.f32.mrf.mxu0  ;;  %v2104_v39 = vld [vmem:[#allocation2 + $0x1bf0] sm:$0xff] }
 0x18b   :  { %1834 = vmatpush.msrb.mxu0 %v1476_v41  ;;  %1853 = vmatpush.msrb.mxu1 %v1510_v42 }
 0x18c   :  { %1874 = vmatpush.msrb.mxu2 %v1540_v44  ;;  %1893 = vmatpush.msrb.mxu3 %v1574_v45  ;;  %v2004_v44 = vld [vmem:[#allocation2 + $0x18d0] sm:$0xff] }
 0x18d   :  { %1835 = vmatpush.msrb.mxu0 %v1474_v47  ;;  %1854 = vmatpush.msrb.mxu1 %v1508_v48  ;;  %v1137_v58 = vpop.f32.mrf.mxu1  ;;  %v2068_v45 = vld [vmem:[#allocation2 + $0x1ad0] sm:$0xff]  ;;  %v2102_v47 = vld [vmem:[#allocation2 + $0x1be0] sm:$0xff] }
 0x18e   :  { %1875 = vmatpush.msrb.mxu2 %v1538_v49  ;;  %1894 = vmatpush.msrb.mxu3 %v1572_v50  ;;  %v1138_v60 = vadd.f32 %v1137_v58, %v1117_v63  ;;  %v1157_v5 = vpop.f32.mrf.mxu2  ;;  %v2036_v50 = vld [vmem:[#allocation2 + $0x19d0] sm:$0xff] }
 0x18f   :  { %1836 = vmatpush.msrb.mxu0 %v1472_v53  ;;  %1855 = vmatpush.msrb.mxu1 %v1506_v54  ;;  %v2100_v54 = vld [vmem:[#allocation2 + $0x1bd0] sm:$0xff] }
 0x190   :  { %1876 = vmatpush.msrb.mxu2 %v1536_v55  ;;  %1895 = vmatpush.msrb.mxu3 %v1570_v56  ;;  %v1158_v16 = vadd.f32 %v1157_v5, %v1138_v60  ;;  %v2000_v58 = vld [vmem:[#allocation2 + $0x18b0] sm:$0xff]  ;;  %v2094_v5 = vld [vmem:[#allocation2 + $0x1ba0] sm:$0xff] }
 0x191   :  { %1837 = vmatpush.msrb.mxu0 %v1470_v59  ;;  %1856 = vmatpush.msrb.mxu1 %v1504_v61  ;;  %v1177_v18 = vpop.f32.mrf.mxu3  ;;  %v2034_v59 = vld [vmem:[#allocation2 + $0x19c0] sm:$0xff]  ;;  %v2032_v63 = vld [vmem:[#allocation2 + $0x19b0] sm:$0xff] }
 0x192   :  { %1877 = vmatpush.msrb.mxu2 %v1534_v9  ;;  %1896 = vmatpush.msrb.mxu3 %v1568_v62  ;;  %v1178_v57 = vadd.f32 %v1177_v18, %v1158_v16  ;;  %v2098_v9 = vld [vmem:[#allocation2 + $0x1bc0] sm:$0xff]  ;;  %v1996_v60 = vld [vmem:[#allocation2 + $0x1890] sm:$0xff] }
 0x193   :  { %1838 = vmatpush.msrb.mxu0 %v1468_v0  ;;  %1857 = vmatpush.msrb.mxu1 %v1502_v1  ;;  %v1998_v62 = vld [vmem:[#allocation2 + $0x18a0] sm:$0xff]  ;;  %v2096_v1 = vld [vmem:[#allocation2 + $0x1bb0] sm:$0xff] }
 0x194   :  { %1878 = vmatpush.msrb.mxu2 %v1532_v15  ;;  %1897 = vmatpush.msrb.mxu3 %v1566_v4  ;;  %v1197_v24 = vpop.f32.mrf.mxu0  ;;  %v2062_v0 = vld [vmem:[#allocation2 + $0x1aa0] sm:$0xff]  ;;  %v2060_v4 = vld [vmem:[#allocation2 + $0x1a90] sm:$0xff] }
 0x195   :  { %1803 = vmatmul.f32.vlgmr.msra.gmra.mxu2 %v2838_v17  ;;  %1839 = vmatpush.msrb.mxu0 %v1466_v6  ;;  %v1526_v17 = vld [vmem:[#allocation2 + $0x1618] sm:$0xff]  ;;  %v1198_v40 = vadd.f32 %v1197_v24, %v1178_v57  ;;  %v2030_v15 = vld [vmem:[#allocation2 + $0x19a0] sm:$0xff]  ;;  %v2092_v18 = vld [vmem:[#allocation2 + $0x1b90] sm:$0xff] }
 0x196   :  { %1858 = vmatpush.msrb.mxu1 %v1500_v10  ;;  %1879 = vmatpush.msrb.mxu2 %v1530_v52  ;;  %v1994_v52 = vld [vmem:[#allocation2 + $0x1880] sm:$0xff]  ;;  %v1988_v24 = vld [vmem:[#allocation2 + $0x1850] sm:$0xff] }
 0x197   :  { %1898 = vmatpush.msrb.mxu3 %v1564_v14  ;;  %1763 = vmatmul.f32.vlgmr.msra.gmra.mxu0 %v2843_v11  ;;  %v1524_v11 = vld [vmem:[#allocation2 + $0x1608] sm:$0xff]  ;;  %v1217_v31 = vpop.f32.mrf.mxu1  ;;  %v2028_v14 = vld [vmem:[#allocation2 + $0x1990] sm:$0xff]  ;;  %v1990_v57 = vld [vmem:[#allocation2 + $0x1860] sm:$0xff] }
 0x198   :  { %1823 = vmatmul.f32.vlgmr.msra.gmra.mxu3 %v2849_v12  ;;  %1840 = vmatpush.msrb.mxu0 %v1464_v46  ;;  %v625_v34 = vpop.xlane.xlu1 %624  ;;  %v2008_v12 = vld [vmem:[#allocation2 + $0x18f0] sm:$0xff]  ;;  %v1218_v37 = vadd.f32 %v1217_v31, %v1198_v40  ;;  %v1237_v41 = vpop.f32.mrf.mxu2  ;;  %v2058_v46 = vld [vmem:[#allocation2 + $0x1a80] sm:$0xff] }
 0x199   :  { %1859 = vmatpush.msrb.mxu1 %v1498_v19  ;;  %1880 = vmatpush.msrb.mxu2 %v1528_v2  ;;  %v626_v7 = vmul.f32 0.5, %v625_v34  ;;  %v1992_v2 = vld [vmem:[#allocation2 + $0x1870] sm:$0xff]  ;;  %v2050_v40 = vld [vmem:[#allocation2 + $0x1a40] sm:$0xff] }
 0x19a   :  { %1899 = vmatpush.msrb.mxu3 %v1562_v51  ;;  %1783 = vmatmul.f32.vlgmr.msra.gmra.mxu1 %v2855_v20  ;;  %v2006_v20 = vld [vmem:[#allocation2 + $0x18e0] sm:$0xff]  ;;  %v1238_v53 = vadd.f32 %v1237_v41, %v1218_v37  ;;  %v2024_v34 = vld [vmem:[#allocation2 + $0x1970] sm:$0xff] }
 0x19b   :  { %1841 = vmatpush.msrb.mxu0 %v1462_v21  ;;  %1860 = vmatpush.msrb.mxu1 %v1496_v22  ;;  %v627_v48 = vsub.f32 %v2829_v28, %v626_v7  ;;  %v1257_v55 = vpop.f32.mrf.mxu3  ;;  %v2026_v51 = vld [vmem:[#allocation2 + $0x1980] sm:$0xff]  ;;  %v2056_v21 = vld [vmem:[#allocation2 + $0x1a70] sm:$0xff] }
 0x19c   :  { %1881 = vmatpush.msrb.mxu2 %v1526_v17  ;;  %1900 = vmatpush.msrb.mxu3 %v1560_v23  ;;  %v2090_v22 = vld [vmem:[#allocation2 + $0x1b80] sm:$0xff]  ;;  %v2088_v23 = vld [vmem:[#allocation2 + $0x1b70] sm:$0xff] }
 0x19d   :  { %1842 = vmatpush.msrb.mxu0 %v1460_v35  ;;  %1861 = vmatpush.msrb.mxu1 %v1494_v25  ;;  %v2054_v17 = vld [vmem:[#allocation2 + $0x1a60] sm:$0xff]  ;;  %v2052_v25 = vld [vmem:[#allocation2 + $0x1a50] sm:$0xff] }
 0x19e   :  { %1882 = vmatpush.msrb.mxu2 %v1524_v11  ;;  %1901 = vmatpush.msrb.mxu3 %v1558_v26  ;;  %v2022_v35 = vld [vmem:[#allocation2 + $0x1960] sm:$0xff]  ;;  %v1984_v31 = vld [vmem:[#allocation2 + $0x1830] sm:$0xff] }
 0x19f   :  { %1883 = vmatmul.f32.vlgmr.msrb.gmra.mxu2 %v2862_v27  ;;  %2234 = vmatpush.msra.mxu0 %v2008_v12  ;;  %v2038_v27 = vld [vmem:[#allocation2 + $0x19e0] sm:$0xff]  ;;  %v2020_v12 = vld [vmem:[#allocation2 + $0x1950] sm:$0xff] }
 0x1a0   :  { %2274 = vmatpush.msra.mxu2 %v2072_v29  ;;  %1862 = vmatpush.msrb.mxu1 %v1492_v30  ;;  %v630_v38 = vpop.xlane.xlu1 %629  ;;  %v2086_v11 = vld [vmem:[#allocation2 + $0x1b60] sm:$0xff]  ;;  %v2084_v29 = vld [vmem:[#allocation2 + $0x1b50] sm:$0xff] }
 0x1a1   :  { %1902 = vmatpush.msrb.mxu3 %v1556_v32  ;;  %1843 = vmatmul.f32.vlgmr.msrb.gmra.mxu0 %v2867_v8  ;;  %v631_v42 = vmul.f32 0.5, %v630_v38  ;;  %v2002_v8 = vld [vmem:[#allocation2 + $0x18c0] sm:$0xff]  ;;  %v2048_v7 = vld [vmem:[#allocation2 + $0x1a30] sm:$0xff] }
 0x1a2   :  { %1903 = vmatmul.f32.vlgmr.msrb.gmra.mxu3 %v2873_v33  ;;  %2235 = vmatpush.msra.mxu0 %v2006_v20  ;;  %v2066_v33 = vld [vmem:[#allocation2 + $0x1ac0] sm:$0xff]  ;;  %v2016_v37 = vld [vmem:[#allocation2 + $0x1930] sm:$0xff] }
 0x1a3   :  { %2254 = vmatpush.msra.mxu1 %v2040_v36  ;;  %2275 = vmatpush.msra.mxu2 %v2070_v13  ;;  %v632_v49 = vsub.f32 %v2829_v28, %v631_v42  ;;  %v2064_v28 = vld [vmem:[#allocation2 + $0x1ab0] sm:$0xff]  ;;  %v1986_v26 = vld [vmem:[#allocation2 + $0x1840] sm:$0xff] }
 0x1a4   :  { %2294 = vmatpush.msra.mxu3 %v2104_v39  ;;  %1863 = vmatmul.f32.vlgmr.msrb.gmra.mxu1 %v2879_v43  ;;  %v2914_v43 = vadd.f32 %v1257_v55, %v1238_v53  ;;  %v2018_v32 = vld [vmem:[#allocation2 + $0x1940] sm:$0xff]  ;;  %v2080_v41 = vld [vmem:[#allocation2 + $0x1b30] sm:$0xff] }
 0x1a5   :  { %2236 = vmatpush.msra.mxu0 %v2004_v44  ;;  %2255 = vmatpush.msra.mxu1 %v2038_v27  ;;  %v634_v56 = vsel %vm611_vm0, %v627_v48, %v632_v49  ;;  %v2082_v36 = vld [vmem:[#allocation2 + $0x1b40] sm:$0xff]  ;;  %v1980_v44 = vld [vmem:[#allocation2 + $0x1810] sm:$0xff] }
 0x1a6   :  { %2276 = vmatpush.msra.mxu2 %v2068_v45  ;;  %2295 = vmatpush.msra.mxu3 %v2102_v47  ;;  %v2622_v61 = vmul.f32 -1.442695, %v634_v56  ;;  %v1275_v6 = vsel %vm617_vm1, %v2914_v43, -inf  ;;  %v1270_v10 = vsel %vm611_vm0, %v2914_v43, -inf  ;;  %v1982_v13 = vld [vmem:[#allocation2 + $0x1820] sm:$0xff]  ;;  %v2044_v48 = vld [vmem:[#allocation2 + $0x1a10] sm:$0xff] }
 0x1a7   :  { %2237 = vmatpush.msra.mxu0 %v2002_v8  ;;  %2256 = vmatpush.msra.mxu1 %v2036_v50  ;;  %v2046_v39 = vld [vmem:[#allocation2 + $0x1a20] sm:$0xff]  ;;  %v2012_v50 = vld [vmem:[#allocation2 + $0x1910] sm:$0xff] }
 0x1a8   :  { %2277 = vmatpush.msra.mxu2 %v2066_v33  ;;  %2296 = vmatpush.msra.mxu3 %v2100_v54  ;;  %2636 = vpow2.f32 %v2622_v61  ;;  %v2014_v27 = vld [vmem:[#allocation2 + $0x1920] sm:$0xff]  ;;  %v2076_v54 = vld [vmem:[#allocation2 + $0x1b10] sm:$0xff] }
 0x1a9   :  { %2238 = vmatpush.msra.mxu0 %v2000_v58  ;;  %2257 = vmatpush.msra.mxu1 %v2034_v59  ;;  %v2078_v49 = vld [vmem:[#allocation2 + $0x1b20] sm:$0xff]  ;;  %v2136_v56 = vld [vmem:[#allocation2 + $0x1cf0] sm:$0xff] }
 0x1aa   :  { %2278 = vmatpush.msra.mxu2 %v2064_v28  ;;  %2297 = vmatpush.msra.mxu3 %v2098_v9  ;;  %v1978_v8 = vld [vmem:[#allocation2 + $0x1800] sm:$0xff]  ;;  %v2200_v58 = vld [vmem:[#allocation2 + $0x1ef0] sm:$0xff] }
 0x1ab   :  { %2239 = vmatpush.msra.mxu0 %v1998_v62  ;;  %2258 = vmatpush.msra.mxu1 %v2032_v63  ;;  %v2042_v33 = vld [vmem:[#allocation2 + $0x1a00] sm:$0xff]  ;;  %v2168_v63 = vld [vmem:[#allocation2 + $0x1df0] sm:$0xff] }
 0x1ac   :  { %2279 = vmatpush.msra.mxu2 %v2062_v0  ;;  %2298 = vmatpush.msra.mxu3 %v2096_v1  ;;  %v2010_v61 = vld [vmem:[#allocation2 + $0x1900] sm:$0xff]  ;;  %v2232_v1 = vld [vmem:[#allocation2 + $0x1ff0] sm:$0xff] }
 0x1ad   :  { %2240 = vmatpush.msra.mxu0 %v1996_v60  ;;  %2259 = vmatpush.msra.mxu1 %v2030_v15  ;;  %v2074_v28 = vld [vmem:[#allocation2 + $0x1b00] sm:$0xff]  ;;  %v2132_v60 = vld [vmem:[#allocation2 + $0x1cd0] sm:$0xff] }
 0x1ae   :  { %v2637_v16 = vpop.eup %2636  ;;  %2280 = vmatpush.msra.mxu2 %v2060_v4  ;;  %2299 = vmatpush.msra.mxu3 %v2094_v5  ;;  %v2134_v62 = vld [vmem:[#allocation2 + $0x1ce0] sm:$0xff]  ;;  %v2196_v4 = vld [vmem:[#allocation2 + $0x1ed0] sm:$0xff] }
 0x1af   :  { %v2920_v19 = vadd.f32 1.0, %v2637_v16  ;;  %1276 = vmax.xlane.f32.xlu1 %v1275_v6  ;;  %1271 = vmax.xlane.f32.xlu0 %v1270_v10  ;;  %v2198_v0 = vld [vmem:[#allocation2 + $0x1ee0] sm:$0xff]  ;;  %v2164_v10 = vld [vmem:[#allocation2 + $0x1dd0] sm:$0xff] }
 0x1b0   :  { %2241 = vmatpush.msra.mxu0 %v1994_v52  ;;  %2260 = vmatpush.msra.mxu1 %v2028_v14  ;;  %v2166_v15 = vld [vmem:[#allocation2 + $0x1de0] sm:$0xff]  ;;  %v2228_v14 = vld [vmem:[#allocation2 + $0x1fd0] sm:$0xff] }
 0x1b1   :  { %2638 = vrcp.f32 %v2920_v19  ;;  %2281 = vmatpush.msra.mxu2 %v2058_v46  ;;  %2300 = vmatpush.msra.mxu3 %v2092_v18  ;;  %v669_v42 = vand.u32 2147483648, %v2920_v19  ;;  %v667_v47 = vand.u32 2147483647, %v2920_v19  ;;  %vm663_vm7 = vweird.f32 %v2920_v19  ;;  %v2230_v5 = vld [vmem:[#allocation2 + $0x1fe0] sm:$0xff]  ;;  %v2128_v16 = vld [vmem:[#allocation2 + $0x1cb0] sm:$0xff] }
 0x1b2   :  { %2242 = vmatpush.msra.mxu0 %v1992_v2  ;;  %2261 = vmatpush.msra.mxu1 %v2026_v51  ;;  %v2130_v6 = vld [vmem:[#allocation2 + $0x1cc0] sm:$0xff]  ;;  %v2192_v18 = vld [vmem:[#allocation2 + $0x1eb0] sm:$0xff] }
 0x1b3   :  { %2282 = vmatpush.msra.mxu2 %v2056_v21  ;;  %2301 = vmatpush.msra.mxu3 %v2090_v22  ;;  %v670_v55 = vor.u32 1.1754944e-38, %v669_v42  ;;  %vm668_vm9 = vcmp.eq.f32.partialorder %v667_v47, 8.507059e+37  ;;  %v2194_v52 = vld [vmem:[#allocation2 + $0x1ec0] sm:$0xff]  ;;  %v2160_v51 = vld [vmem:[#allocation2 + $0x1db0] sm:$0xff] }
 0x1b4   :  { %2243 = vmatpush.msra.mxu0 %v1990_v57  ;;  %2262 = vmatpush.msra.mxu1 %v2024_v34  ;;  %v2162_v46 = vld [vmem:[#allocation2 + $0x1dc0] sm:$0xff]  ;;  %v2224_v22 = vld [vmem:[#allocation2 + $0x1fb0] sm:$0xff] }
 0x1b5   :  { %2283 = vmatpush.msra.mxu2 %v2054_v17  ;;  %2302 = vmatpush.msra.mxu3 %v2088_v23  ;;  %v2126_v2 = vld [vmem:[#allocation2 + $0x1ca0] sm:$0xff]  ;;  %v2124_v57 = vld [vmem:[#allocation2 + $0x1c90] sm:$0xff] }
 0x1b6   :  { %2244 = vmatpush.msra.mxu0 %v1988_v24  ;;  %2263 = vmatpush.msra.mxu1 %v2022_v35  ;;  %v2190_v21 = vld [vmem:[#allocation2 + $0x1ea0] sm:$0xff]  ;;  %v2188_v17 = vld [vmem:[#allocation2 + $0x1e90] sm:$0xff] }
 0x1b7   :  { %v2639_v30 = vpop.eup %2638  ;;  %2284 = vmatpush.msra.mxu2 %v2052_v25  ;;  %2303 = vmatpush.msra.mxu3 %v2086_v11  ;;  %v2158_v34 = vld [vmem:[#allocation2 + $0x1da0] sm:$0xff]  ;;  %v2156_v35 = vld [vmem:[#allocation2 + $0x1d90] sm:$0xff] }
 0x1b8   :  { %v659_v20 = vmul.f32 %v2639_v30, %v2920_v19  ;;  %2245 = vmatpush.msra.mxu0 %v1986_v26  ;;  %2264 = vmatpush.msra.mxu1 %v2020_v12  ;;  %vm664_vm6 = vweird.f32 %v2639_v30  ;;  %v2226_v19 = vld [vmem:[#allocation2 + $0x1fc0] sm:$0xff]  ;;  %v2220_v11 = vld [vmem:[#allocation2 + $0x1f90] sm:$0xff] }
 0x1b9   :  { %2285 = vmatpush.msra.mxu2 %v2050_v40  ;;  %2304 = vmatpush.msra.mxu3 %v2084_v29  ;;  %vm665_vm8 = vmor %vm663_vm7, %vm664_vm6  ;;  %v2222_v23 = vld [vmem:[#allocation2 + $0x1fa0] sm:$0xff]  ;;  %v2120_v26 = vld [vmem:[#allocation2 + $0x1c70] sm:$0xff] }
 0x1ba   :  { %v660_v38 = vsub.f32 1.0, %v659_v20  ;;  %2246 = vmatpush.msra.mxu0 %v1984_v31  ;;  %2265 = vmatpush.msra.mxu1 %v2018_v32  ;;  %v2122_v24 = vld [vmem:[#allocation2 + $0x1c80] sm:$0xff]  ;;  %v2184_v40 = vld [vmem:[#allocation2 + $0x1e70] sm:$0xff] }
 0x1bb   :  { %2286 = vmatpush.msra.mxu2 %v2048_v7  ;;  %2305 = vmatpush.msra.mxu3 %v2082_v36  ;;  %v2186_v25 = vld [vmem:[#allocation2 + $0x1e80] sm:$0xff]  ;;  %v2152_v31 = vld [vmem:[#allocation2 + $0x1d70] sm:$0xff] }
 0x1bc   :  { %v661_v45 = vmul.f32 %v2639_v30, %v660_v38  ;;  %2247 = vmatpush.msra.mxu0 %v1982_v13  ;;  %2266 = vmatpush.msra.mxu1 %v2016_v37  ;;  %v2154_v12 = vld [vmem:[#allocation2 + $0x1d80] sm:$0xff]  ;;  %v2216_v20 = vld [vmem:[#allocation2 + $0x1f70] sm:$0xff] }
 0x1bd   :  { %2287 = vmatpush.msra.mxu2 %v2046_v39  ;;  %2306 = vmatpush.msra.mxu3 %v2080_v41  ;;  %v2218_v29 = vld [vmem:[#allocation2 + $0x1f80] sm:$0xff]  ;;  %v2116_v36 = vld [vmem:[#allocation2 + $0x1c50] sm:$0xff] }
 0x1be   :  { %v662_v53 = vadd.f32 %v2639_v30, %v661_v45  ;;  %2248 = vmatpush.msra.mxu0 %v1980_v44  ;;  %2267 = vmatpush.msra.mxu1 %v2014_v27  ;;  %v2182_v32 = vld [vmem:[#allocation2 + $0x1e60] sm:$0xff]  ;;  %v2180_v37 = vld [vmem:[#allocation2 + $0x1e50] sm:$0xff] }
 0x1bf   :  { %2288 = vmatpush.msra.mxu2 %v2044_v48  ;;  %2307 = vmatpush.msra.mxu3 %v2078_v49  ;;  %v2150_v13 = vld [vmem:[#allocation2 + $0x1d60] sm:$0xff]  ;;  %v2148_v42 = vld [vmem:[#allocation2 + $0x1d50] sm:$0xff] }
 0x1c0   :  { %v666_v59 = vsel %vm665_vm8, %v2639_v30, %v662_v53  ;;  %2249 = vmatpush.msra.mxu0 %v1978_v8  ;;  %2268 = vmatpush.msra.mxu1 %v2012_v50  ;;  %v2118_v30 = vld [vmem:[#allocation2 + $0x1c60] sm:$0xff]  ;;  %v2212_v45 = vld [vmem:[#allocation2 + $0x1f50] sm:$0xff] }
 0x1c1   :  { %v671_v9 = vsel %vm668_vm9, %v670_v55, %v666_v59  ;;  %2289 = vmatpush.msra.mxu2 %v2042_v33  ;;  %2308 = vmatpush.msra.mxu3 %v2076_v54  ;;  %v2214_v38 = vld [vmem:[#allocation2 + $0x1f60] sm:$0xff]  ;;  %v2934_v48 = vld [vmem:[%s3049_s0 + $0x70] sm:$0xff]  ;;  %v2945_v55 = vld [vmem:[%s3049_s0 + $0x78] sm:$0xff] }
 0x1c2   :  { %674 = vst [vmem:[%s3051_s2 + $0x8] sm:$0xff] %v671_v9  ;;  %2314 = vmatpush.msrb.mxu0 %v2136_v56  ;;  %2269 = vmatpush.msra.mxu1 %v2010_v61  ;;  %v2114_v41 = vld [vmem:[#allocation2 + $0x1c40] sm:$0xff]  ;;  %v2112_v49 = vld [vmem:[#allocation2 + $0x1c30] sm:$0xff]  ;;  %v2951_v9 = vld [vmem:[%s3049_s0 + $0x38] sm:$0xff] }
 0x1c3   :  { %2354 = vmatpush.msrb.mxu2 %v2200_v58  ;;  %2309 = vmatpush.msra.mxu3 %v2074_v28  ;;  %v2178_v27 = vld [vmem:[#allocation2 + $0x1e40] sm:$0xff]  ;;  %v2176_v50 = vld [vmem:[#allocation2 + $0x1e30] sm:$0xff] }
 0x1c4   :  { %2315 = vmatpush.msrb.mxu0 %v2134_v62  ;;  %2334 = vmatpush.msrb.mxu1 %v2168_v63  ;;  %v2146_v8 = vld [vmem:[#allocation2 + $0x1d40] sm:$0xff]  ;;  %v2939_v33 = vld [vmem:[%s3049_s0 + $0x30] sm:$0xff] }
 0x1c5   :  { %2355 = vmatpush.msrb.mxu2 %v2198_v0  ;;  %2374 = vmatpush.msrb.mxu3 %v2232_v1  ;;  %v2210_v53 = vld [vmem:[#allocation2 + $0x1f40] sm:$0xff]  ;;  %v2144_v59 = vld [vmem:[#allocation2 + $0x1d30] sm:$0xff] }
 0x1c6   :  { %2316 = vmatpush.msrb.mxu0 %v2132_v60  ;;  %2335 = vmatpush.msrb.mxu1 %v2166_v15  ;;  %v2110_v56 = vld [vmem:[#allocation2 + $0x1c20] sm:$0xff]  ;;  %v2208_v28 = vld [vmem:[#allocation2 + $0x1f30] sm:$0xff] }
 0x1c7   :  { %2356 = vmatpush.msrb.mxu2 %v2196_v4  ;;  %2375 = vmatpush.msrb.mxu3 %v2230_v5  ;;  %v2174_v61 = vld [vmem:[#allocation2 + $0x1e20] sm:$0xff]  ;;  %v2108_v62 = vld [vmem:[#allocation2 + $0x1c10] sm:$0xff] }
 0x1c8   :  { %2317 = vmatpush.msrb.mxu0 %v2130_v6  ;;  %2336 = vmatpush.msrb.mxu1 %v2164_v10  ;;  %v2142_v63 = vld [vmem:[#allocation2 + $0x1d20] sm:$0xff]  ;;  %v2172_v60 = vld [vmem:[#allocation2 + $0x1e10] sm:$0xff] }
 0x1c9   :  { %2357 = vmatpush.msrb.mxu2 %v2194_v52  ;;  %2376 = vmatpush.msrb.mxu3 %v2228_v14  ;;  %v2206_v15 = vld [vmem:[#allocation2 + $0x1f20] sm:$0xff]  ;;  %v2140_v6 = vld [vmem:[#allocation2 + $0x1d10] sm:$0xff] }
 0x1ca   :  { %2318 = vmatpush.msrb.mxu0 %v2128_v16  ;;  %2337 = vmatpush.msrb.mxu1 %v2162_v46  ;;  %v2106_v5 = vld [vmem:[#allocation2 + $0x1c00] sm:$0xff]  ;;  %v2204_v52 = vld [vmem:[#allocation2 + $0x1f10] sm:$0xff]  ;;  %v2009_v16 = vld [vmem:[#allocation2 + $0x18f8] sm:$0xff] }
 0x1cb   :  { %2358 = vmatpush.msrb.mxu2 %v2192_v18  ;;  %2377 = vmatpush.msrb.mxu3 %v2226_v19  ;;  %v2170_v10 = vld [vmem:[#allocation2 + $0x1e00] sm:$0xff]  ;;  %v2958_v14 = vld [vmem:[%s3049_s0 + $0xf0] sm:$0xff]  ;;  %v2073_v18 = vld [vmem:[#allocation2 + $0x1af8] sm:$0xff] }
 0x1cc   :  { %2319 = vmatpush.msrb.mxu0 %v2126_v2  ;;  %2338 = vmatpush.msrb.mxu1 %v2160_v51  ;;  %v2138_v19 = vld [vmem:[#allocation2 + $0x1d00] sm:$0xff] }
 0x1cd   :  { %2359 = vmatpush.msrb.mxu2 %v2190_v21  ;;  %2378 = vmatpush.msrb.mxu3 %v2224_v22  ;;  %v2202_v51 = vld [vmem:[#allocation2 + $0x1f00] sm:$0xff]  ;;  %v2963_v21 = vld [vmem:[%s3049_s0 + $0xb0] sm:$0xff]  ;;  %v2969_v22 = vld [vmem:[%s3049_s0 + $0xf8] sm:$0xff] }
 0x1ce   :  { %2320 = vmatpush.msrb.mxu0 %v2124_v57  ;;  %2339 = vmatpush.msrb.mxu1 %v2158_v34  ;;  %v2007_v57 = vld [vmem:[#allocation2 + $0x18e8] sm:$0xff] }
 0x1cf   :  { %2360 = vmatpush.msrb.mxu2 %v2188_v17  ;;  %2379 = vmatpush.msrb.mxu3 %v2222_v23  ;;  %v1604_v39 = vpop.f32.mrf.mxu0  ;;  %v2041_v17 = vld [vmem:[#allocation2 + $0x19f8] sm:$0xff]  ;;  %v2071_v23 = vld [vmem:[#allocation2 + $0x1ae8] sm:$0xff] }
 0x1d0   :  { %2321 = vmatpush.msrb.mxu0 %v2122_v24  ;;  %2340 = vmatpush.msrb.mxu1 %v2156_v35 }
 0x1d1   :  { %2361 = vmatpush.msrb.mxu2 %v2186_v25  ;;  %2380 = vmatpush.msrb.mxu3 %v2220_v11  ;;  %v2105_v25 = vld [vmem:[#allocation2 + $0x1bf8] sm:$0xff] }
 0x1d2   :  { %2322 = vmatpush.msrb.mxu0 %v2120_v26  ;;  %2341 = vmatpush.msrb.mxu1 %v2154_v12  ;;  %v1624_v7 = vpop.f32.mrf.mxu1  ;;  %v2975_v11 = vld [vmem:[%s3049_s0 + $0xb8] sm:$0xff] }
 0x1d3   :  { %2362 = vmatpush.msrb.mxu2 %v2184_v40  ;;  %2381 = vmatpush.msrb.mxu3 %v2218_v29  ;;  %v1625_v44 = vadd.f32 %v1624_v7, %v1604_v39  ;;  %v1644_v47 = vpop.f32.mrf.mxu2  ;;  %v2005_v40 = vld [vmem:[#allocation2 + $0x18d8] sm:$0xff]  ;;  %v2039_v29 = vld [vmem:[#allocation2 + $0x19e8] sm:$0xff] }
 0x1d4   :  { %2323 = vmatpush.msrb.mxu0 %v2118_v30  ;;  %2342 = vmatpush.msrb.mxu1 %v2152_v31  ;;  %v2069_v30 = vld [vmem:[#allocation2 + $0x1ad8] sm:$0xff]  ;;  %v2103_v31 = vld [vmem:[#allocation2 + $0x1be8] sm:$0xff] }
 0x1d5   :  { %2363 = vmatpush.msrb.mxu2 %v2182_v32  ;;  %2382 = vmatpush.msrb.mxu3 %v2216_v20  ;;  %v1645_v54 = vadd.f32 %v1644_v47, %v1625_v44  ;;  %v2003_v7 = vld [vmem:[#allocation2 + $0x18c8] sm:$0xff] }
 0x1d6   :  { %2324 = vmatpush.msrb.mxu0 %v2116_v36  ;;  %2343 = vmatpush.msrb.mxu1 %v2150_v13  ;;  %v1664_v58 = vpop.f32.mrf.mxu3  ;;  %v2037_v36 = vld [vmem:[#allocation2 + $0x19d8] sm:$0xff]  ;;  %v2035_v44 = vld [vmem:[#allocation2 + $0x19c8] sm:$0xff] }
 0x1d7   :  { %2364 = vmatpush.msrb.mxu2 %v2180_v37  ;;  %2383 = vmatpush.msrb.mxu3 %v2214_v38  ;;  %v1665_v0 = vadd.f32 %v1664_v58, %v1645_v54  ;;  %v2067_v37 = vld [vmem:[#allocation2 + $0x1ac8] sm:$0xff]  ;;  %v2101_v38 = vld [vmem:[#allocation2 + $0x1bd8] sm:$0xff] }
 0x1d8   :  { %2325 = vmatpush.msrb.mxu0 %v2114_v41  ;;  %2344 = vmatpush.msrb.mxu1 %v2148_v42  ;;  %v2001_v42 = vld [vmem:[#allocation2 + $0x18b8] sm:$0xff] }
 0x1d9   :  { %2365 = vmatpush.msrb.mxu2 %v2178_v27  ;;  %2384 = vmatpush.msrb.mxu3 %v2212_v45  ;;  %v1684_v4 = vpop.f32.mrf.mxu0  ;;  %v2099_v45 = vld [vmem:[#allocation2 + $0x1bc8] sm:$0xff]  ;;  %v1997_v54 = vld [vmem:[#allocation2 + $0x1898] sm:$0xff] }
 0x1da   :  { %2290 = vmatmul.f32.vlgmr.msra.gmra.mxu2 %v2934_v48  ;;  %2326 = vmatpush.msrb.mxu0 %v2112_v49  ;;  %v1685_v46 = vadd.f32 %v1684_v4, %v1665_v0  ;;  %v1999_v49 = vld [vmem:[#allocation2 + $0x18a8] sm:$0xff]  ;;  %v2061_v58 = vld [vmem:[#allocation2 + $0x1a98] sm:$0xff] }
 0x1db   :  { %2345 = vmatpush.msrb.mxu1 %v2146_v8  ;;  %2366 = vmatpush.msrb.mxu2 %v2176_v50  ;;  %v2033_v8 = vld [vmem:[#allocation2 + $0x19b8] sm:$0xff]  ;;  %v2063_v50 = vld [vmem:[#allocation2 + $0x1aa8] sm:$0xff] }
 0x1dc   :  { %2385 = vmatpush.msrb.mxu3 %v2210_v53  ;;  %2250 = vmatmul.f32.vlgmr.msra.gmra.mxu0 %v2939_v33  ;;  %v1704_v2 = vpop.f32.mrf.mxu1  ;;  %v2097_v53 = vld [vmem:[#allocation2 + $0x1bb8] sm:$0xff] }
 0x1dd   :  { %2310 = vmatmul.f32.vlgmr.msra.gmra.mxu3 %v2945_v55  ;;  %2327 = vmatpush.msrb.mxu0 %v2110_v56  ;;  %v1262_v1 = vpop.xlane.xlu2 %1261  ;;  %v1705_v24 = vadd.f32 %v1704_v2, %v1685_v46  ;;  %v1724_v26 = vpop.f32.mrf.mxu2  ;;  %v2031_v56 = vld [vmem:[#allocation2 + $0x19a8] sm:$0xff]  ;;  %v1993_v4 = vld [vmem:[#allocation2 + $0x1878] sm:$0xff] }
 0x1de   :  { %2346 = vmatpush.msrb.mxu1 %v2144_v59  ;;  %2367 = vmatpush.msrb.mxu2 %v2174_v61  ;;  %v1263_v34 = vmul.f32 0.5, %v1262_v1  ;;  %v2095_v59 = vld [vmem:[#allocation2 + $0x1ba8] sm:$0xff] }
 0x1df   :  { %2386 = vmatpush.msrb.mxu3 %v2208_v28  ;;  %2270 = vmatmul.f32.vlgmr.msra.gmra.mxu1 %v2951_v9  ;;  %v1725_v13 = vadd.f32 %v1724_v26, %v1705_v24  ;;  %v2059_v1 = vld [vmem:[#allocation2 + $0x1a88] sm:$0xff]  ;;  %v2085_v24 = vld [vmem:[#allocation2 + $0x1b58] sm:$0xff] }
 0x1e0   :  { %2328 = vmatpush.msrb.mxu0 %v2108_v62  ;;  %2347 = vmatpush.msrb.mxu1 %v2142_v63  ;;  %v1264_v32 = vsub.f32 %v2886_v3, %v1263_v34  ;;  %v1744_v39 = vpop.f32.mrf.mxu3  ;;  %v1995_v62 = vld [vmem:[#allocation2 + $0x1888] sm:$0xff]  ;;  %v2029_v63 = vld [vmem:[#allocation2 + $0x1998] sm:$0xff] }
 0x1e1   :  { %2368 = vmatpush.msrb.mxu2 %v2172_v60  ;;  %2387 = vmatpush.msrb.mxu3 %v2206_v15  ;;  %v2982_v47 = vadd.f32 %v1744_v39, %v1725_v13  ;;  %v2093_v60 = vld [vmem:[#allocation2 + $0x1b98] sm:$0xff]  ;;  %v2055_v46 = vld [vmem:[#allocation2 + $0x1a68] sm:$0xff] }
 0x1e2   :  { %2329 = vmatpush.msrb.mxu0 %v2106_v5  ;;  %2348 = vmatpush.msrb.mxu1 %v2140_v6  ;;  %v2027_v5 = vld [vmem:[#allocation2 + $0x1988] sm:$0xff]  ;;  %v2057_v6 = vld [vmem:[#allocation2 + $0x1a78] sm:$0xff] }
 0x1e3   :  { %2369 = vmatpush.msrb.mxu2 %v2170_v10  ;;  %2388 = vmatpush.msrb.mxu3 %v2204_v52  ;;  %v1907_v61 = vsel %vm611_vm0, %v2982_v47, -inf  ;;  %v1912_v28 = vsel %vm617_vm1, %v2982_v47, -inf  ;;  %v2091_v10 = vld [vmem:[#allocation2 + $0x1b88] sm:$0xff]  ;;  %v1981_v13 = vld [vmem:[#allocation2 + $0x1818] sm:$0xff] }
 0x1e4   :  { %2370 = vmatmul.f32.vlgmr.msrb.gmra.mxu2 %v2958_v14  ;;  %2394 = vmatpush.msra.mxu0 %v2009_v16  ;;  %v1991_v52 = vld [vmem:[#allocation2 + $0x1868] sm:$0xff]  ;;  %v2025_v16 = vld [vmem:[#allocation2 + $0x1978] sm:$0xff] }
 0x1e5   :  { %2434 = vmatpush.msra.mxu2 %v2073_v18  ;;  %2349 = vmatpush.msrb.mxu1 %v2138_v19  ;;  %v1267_v35 = vpop.xlane.xlu2 %1266  ;;  %v2089_v18 = vld [vmem:[#allocation2 + $0x1b78] sm:$0xff]  ;;  %v2023_v2 = vld [vmem:[#allocation2 + $0x1968] sm:$0xff] }
 0x1e6   :  { %2389 = vmatpush.msrb.mxu3 %v2202_v51  ;;  %2330 = vmatmul.f32.vlgmr.msrb.gmra.mxu0 %v2963_v21  ;;  %v1268_v12 = vmul.f32 0.5, %v1267_v35  ;;  %v1989_v19 = vld [vmem:[#allocation2 + $0x1858] sm:$0xff]  ;;  %v1987_v34 = vld [vmem:[#allocation2 + $0x1848] sm:$0xff] }
 0x1e7   :  { %2390 = vmatmul.f32.vlgmr.msrb.gmra.mxu3 %v2969_v22  ;;  %2395 = vmatpush.msra.mxu0 %v2007_v57  ;;  %v2053_v51 = vld [vmem:[#allocation2 + $0x1a58] sm:$0xff]  ;;  %v2087_v57 = vld [vmem:[#allocation2 + $0x1b68] sm:$0xff] }
 0x1e8   :  { %2414 = vmatpush.msra.mxu1 %v2041_v17  ;;  %2435 = vmatpush.msra.mxu2 %v2071_v23  ;;  %v1269_v20 = vsub.f32 %v2886_v3, %v1268_v12  ;;  %v2065_v3 = vld [vmem:[#allocation2 + $0x1ab8] sm:$0xff]  ;;  %v2051_v23 = vld [vmem:[#allocation2 + $0x1a48] sm:$0xff] }
 0x1e9   :  { %2454 = vmatpush.msra.mxu3 %v2105_v25  ;;  %2350 = vmatmul.f32.vlgmr.msrb.gmra.mxu1 %v2975_v11  ;;  %v2021_v17 = vld [vmem:[#allocation2 + $0x1958] sm:$0xff]  ;;  %v2019_v26 = vld [vmem:[#allocation2 + $0x1948] sm:$0xff] }
 0x1ea   :  { %2396 = vmatpush.msra.mxu0 %v2005_v40  ;;  %2415 = vmatpush.msra.mxu1 %v2039_v29  ;;  %v1280_v41 = vsel %vm611_vm0, %v1264_v32, %v1269_v20  ;;  %v1985_v25 = vld [vmem:[#allocation2 + $0x1838] sm:$0xff]  ;;  %v2083_v29 = vld [vmem:[#allocation2 + $0x1b48] sm:$0xff] }
 0x1eb   :  { %2436 = vmatpush.msra.mxu2 %v2069_v30  ;;  %2455 = vmatpush.msra.mxu3 %v2103_v31  ;;  %v2623_v27 = vmul.f32 -1.442695, %v1280_v41  ;;  %v2049_v40 = vld [vmem:[#allocation2 + $0x1a38] sm:$0xff]  ;;  %v1983_v30 = vld [vmem:[#allocation2 + $0x1828] sm:$0xff] }
 0x1ec   :  { %2397 = vmatpush.msra.mxu0 %v2003_v7  ;;  %2416 = vmatpush.msra.mxu1 %v2037_v36  ;;  %v2017_v31 = vld [vmem:[#allocation2 + $0x1938] sm:$0xff]  ;;  %v2047_v20 = vld [vmem:[#allocation2 + $0x1a28] sm:$0xff] }
 0x1ed   :  { %2437 = vmatpush.msra.mxu2 %v2067_v37  ;;  %2456 = vmatpush.msra.mxu3 %v2101_v38  ;;  %2640 = vpow2.f32 %v2623_v27  ;;  %v2081_v7 = vld [vmem:[#allocation2 + $0x1b38] sm:$0xff]  ;;  %v2015_v37 = vld [vmem:[#allocation2 + $0x1928] sm:$0xff] }
 0x1ee   :  { %2398 = vmatpush.msra.mxu0 %v2001_v42  ;;  %2417 = vmatpush.msra.mxu1 %v2035_v44  ;;  %v2045_v41 = vld [vmem:[#allocation2 + $0x1a18] sm:$0xff]  ;;  %v2079_v42 = vld [vmem:[#allocation2 + $0x1b28] sm:$0xff] }
 0x1ef   :  { %2438 = vmatpush.msra.mxu2 %v2065_v3  ;;  %2457 = vmatpush.msra.mxu3 %v2099_v45  ;;  %v1979_v44 = vld [vmem:[#allocation2 + $0x1808] sm:$0xff]  ;;  %v2013_v27 = vld [vmem:[#allocation2 + $0x1918] sm:$0xff] }
 0x1f0   :  { %2399 = vmatpush.msra.mxu0 %v1999_v49  ;;  %2418 = vmatpush.msra.mxu1 %v2033_v8  ;;  %v2043_v45 = vld [vmem:[#allocation2 + $0x1a08] sm:$0xff]  ;;  %v2077_v49 = vld [vmem:[#allocation2 + $0x1b18] sm:$0xff] }
 0x1f1   :  { %2439 = vmatpush.msra.mxu2 %v2063_v50  ;;  %2458 = vmatpush.msra.mxu3 %v2097_v53  ;;  %v2137_v50 = vld [vmem:[#allocation2 + $0x1cf8] sm:$0xff] }
 0x1f2   :  { %2400 = vmatpush.msra.mxu0 %v1997_v54  ;;  %2419 = vmatpush.msra.mxu1 %v2031_v56  ;;  %v2201_v53 = vld [vmem:[#allocation2 + $0x1ef8] sm:$0xff]  ;;  %v2011_v56 = vld [vmem:[#allocation2 + $0x1908] sm:$0xff] }
 0x1f3   :  { %v2641_v0 = vpop.eup %2640  ;;  %2440 = vmatpush.msra.mxu2 %v2061_v58  ;;  %2459 = vmatpush.msra.mxu3 %v2095_v59  ;;  %v2075_v58 = vld [vmem:[#allocation2 + $0x1b08] sm:$0xff] }
 0x1f4   :  { %v2988_v15 = vadd.f32 1.0, %v2641_v0  ;;  %1908 = vmax.xlane.f32.xlu2 %v1907_v61  ;;  %1913 = vmax.xlane.f32.xlu0 %v1912_v28  ;;  %v2135_v61 = vld [vmem:[#allocation2 + $0x1ce8] sm:$0xff]  ;;  %v2169_v28 = vld [vmem:[#allocation2 + $0x1df8] sm:$0xff] }
 0x1f5   :  { %2401 = vmatpush.msra.mxu0 %v1995_v62  ;;  %2420 = vmatpush.msra.mxu1 %v2029_v63  ;;  %v2199_v62 = vld [vmem:[#allocation2 + $0x1ee8] sm:$0xff]  ;;  %v2233_v63 = vld [vmem:[#allocation2 + $0x1ff8] sm:$0xff] }
 0x1f6   :  { %2642 = vrcp.f32 %v2988_v15  ;;  %2441 = vmatpush.msra.mxu2 %v2059_v1  ;;  %2460 = vmatpush.msra.mxu3 %v2093_v60  ;;  %v1301_v36 = vand.u32 2147483648, %v2988_v15  ;;  %v1299_v39 = vand.u32 2147483647, %v2988_v15  ;;  %vm1295_vm11 = vweird.f32 %v2988_v15  ;;  %v2133_v0 = vld [vmem:[#allocation2 + $0x1cd8] sm:$0xff]  ;;  %v2167_v1 = vld [vmem:[#allocation2 + $0x1de8] sm:$0xff] }
 0x1f7   :  { %2402 = vmatpush.msra.mxu0 %v1993_v4  ;;  %2421 = vmatpush.msra.mxu1 %v2027_v5  ;;  %v2197_v60 = vld [vmem:[#allocation2 + $0x1ed8] sm:$0xff]  ;;  %v2131_v4 = vld [vmem:[#allocation2 + $0x1cc8] sm:$0xff] }
 0x1f8   :  { %2442 = vmatpush.msra.mxu2 %v2057_v6  ;;  %2461 = vmatpush.msra.mxu3 %v2091_v10  ;;  %v1302_v8 = vor.u32 1.1754944e-38, %v1301_v36  ;;  %vm1300_vm13 = vcmp.eq.f32.partialorder %v1299_v39, 8.507059e+37  ;;  %v2165_v5 = vld [vmem:[#allocation2 + $0x1dd8] sm:$0xff]  ;;  %v2195_v6 = vld [vmem:[#allocation2 + $0x1ec8] sm:$0xff] }
 0x1f9   :  { %2403 = vmatpush.msra.mxu0 %v1991_v52  ;;  %2422 = vmatpush.msra.mxu1 %v2025_v16  ;;  %v2229_v10 = vld [vmem:[#allocation2 + $0x1fd8] sm:$0xff]  ;;  %v2163_v16 = vld [vmem:[#allocation2 + $0x1dc8] sm:$0xff] }
 0x1fa   :  { %2443 = vmatpush.msra.mxu2 %v2055_v46  ;;  %2462 = vmatpush.msra.mxu3 %v2089_v18  ;;  %v2129_v52 = vld [vmem:[#allocation2 + $0x1cb8] sm:$0xff]  ;;  %v2227_v18 = vld [vmem:[#allocation2 + $0x1fc8] sm:$0xff] }
 0x1fb   :  { %2404 = vmatpush.msra.mxu0 %v1989_v19  ;;  %2423 = vmatpush.msra.mxu1 %v2023_v2  ;;  %v2193_v46 = vld [vmem:[#allocation2 + $0x1eb8] sm:$0xff]  ;;  %v2127_v19 = vld [vmem:[#allocation2 + $0x1ca8] sm:$0xff] }
 0x1fc   :  { %v2643_v35 = vpop.eup %2642  ;;  %2444 = vmatpush.msra.mxu2 %v2053_v51  ;;  %2463 = vmatpush.msra.mxu3 %v2087_v57  ;;  %v2161_v2 = vld [vmem:[#allocation2 + $0x1db8] sm:$0xff]  ;;  %v2191_v51 = vld [vmem:[#allocation2 + $0x1ea8] sm:$0xff] }
 0x1fd   :  { %v1291_v12 = vmul.f32 %v2643_v35, %v2988_v15  ;;  %2405 = vmatpush.msra.mxu0 %v1987_v34  ;;  %2424 = vmatpush.msra.mxu1 %v2021_v17  ;;  %vm1296_vm10 = vweird.f32 %v2643_v35  ;;  %v2231_v15 = vld [vmem:[#allocation2 + $0x1fe8] sm:$0xff]  ;;  %v2225_v57 = vld [vmem:[#allocation2 + $0x1fb8] sm:$0xff] }
 0x1fe   :  { %2445 = vmatpush.msra.mxu2 %v2051_v23  ;;  %2464 = vmatpush.msra.mxu3 %v2085_v24  ;;  %vm1297_vm12 = vmor %vm1295_vm11, %vm1296_vm10  ;;  %v2125_v34 = vld [vmem:[#allocation2 + $0x1c98] sm:$0xff]  ;;  %v2159_v17 = vld [vmem:[#allocation2 + $0x1da8] sm:$0xff] }
 0x1ff   :  { %v1292_v32 = vsub.f32 1.0, %v1291_v12  ;;  %2406 = vmatpush.msra.mxu0 %v1985_v25  ;;  %2425 = vmatpush.msra.mxu1 %v2019_v26  ;;  %v2189_v23 = vld [vmem:[#allocation2 + $0x1e98] sm:$0xff]  ;;  %v2223_v24 = vld [vmem:[#allocation2 + $0x1fa8] sm:$0xff] }
 0x200   :  { %2446 = vmatpush.msra.mxu2 %v2049_v40  ;;  %2465 = vmatpush.msra.mxu3 %v2083_v29  ;;  %v2157_v25 = vld [vmem:[#allocation2 + $0x1d98] sm:$0xff]  ;;  %v2187_v26 = vld [vmem:[#allocation2 + $0x1e88] sm:$0xff] }
 0x201   :  { %v1293_v38 = vmul.f32 %v2643_v35, %v1292_v32  ;;  %2407 = vmatpush.msra.mxu0 %v1983_v30  ;;  %2426 = vmatpush.msra.mxu1 %v2017_v31  ;;  %v2221_v12 = vld [vmem:[#allocation2 + $0x1f98] sm:$0xff]  ;;  %v2155_v29 = vld [vmem:[#allocation2 + $0x1d88] sm:$0xff] }
 0x202   :  { %2447 = vmatpush.msra.mxu2 %v2047_v20  ;;  %2466 = vmatpush.msra.mxu3 %v2081_v7  ;;  %v2121_v40 = vld [vmem:[#allocation2 + $0x1c78] sm:$0xff]  ;;  %v2219_v32 = vld [vmem:[#allocation2 + $0x1f88] sm:$0xff] }
 0x203   :  { %v1294_v3 = vadd.f32 %v2643_v35, %v1293_v38  ;;  %2408 = vmatpush.msra.mxu0 %v1981_v13  ;;  %2427 = vmatpush.msra.mxu1 %v2015_v37  ;;  %v2185_v31 = vld [vmem:[#allocation2 + $0x1e78] sm:$0xff]  ;;  %v2119_v20 = vld [vmem:[#allocation2 + $0x1c68] sm:$0xff] }
 0x204   :  { %2448 = vmatpush.msra.mxu2 %v2045_v41  ;;  %2467 = vmatpush.msra.mxu3 %v2079_v42  ;;  %v2153_v7 = vld [vmem:[#allocation2 + $0x1d78] sm:$0xff]  ;;  %v2183_v36 = vld [vmem:[#allocation2 + $0x1e68] sm:$0xff] }
 0x205   :  { %v1298_v54 = vsel %vm1297_vm12, %v2643_v35, %v1294_v3  ;;  %2409 = vmatpush.msra.mxu0 %v1979_v44  ;;  %2428 = vmatpush.msra.mxu1 %v2013_v27  ;;  %v2123_v35 = vld [vmem:[#allocation2 + $0x1c88] sm:$0xff]  ;;  %v2217_v13 = vld [vmem:[#allocation2 + $0x1f78] sm:$0xff] }
 0x206   :  { %v1303_v59 = vsel %vm1300_vm13, %v1302_v8, %v1298_v54  ;;  %2449 = vmatpush.msra.mxu2 %v2043_v45  ;;  %2468 = vmatpush.msra.mxu3 %v2077_v49  ;;  %v2117_v38 = vld [vmem:[#allocation2 + $0x1c58] sm:$0xff]  ;;  %v2151_v39 = vld [vmem:[#allocation2 + $0x1d68] sm:$0xff] }
 0x207   :  { %1320 = vst [vmem:[%s3051_s2 + $0x10] sm:$0xff] %v1303_v59  ;;  %2474 = vmatpush.msrb.mxu0 %v2137_v50  ;;  %2429 = vmatpush.msra.mxu1 %v2011_v56  ;;  %v2181_v44 = vld [vmem:[#allocation2 + $0x1e58] sm:$0xff]  ;;  %v2215_v27 = vld [vmem:[#allocation2 + $0x1f68] sm:$0xff] }
 0x208   :  { %2514 = vmatpush.msrb.mxu2 %v2201_v53  ;;  %2469 = vmatpush.msra.mxu3 %v2075_v58  ;;  %v2115_v3 = vld [vmem:[#allocation2 + $0x1c48] sm:$0xff]  ;;  %v2149_v49 = vld [vmem:[#allocation2 + $0x1d58] sm:$0xff] }
 0x209   :  { %2475 = vmatpush.msrb.mxu0 %v2135_v61  ;;  %2494 = vmatpush.msrb.mxu1 %v2169_v28  ;;  %v2179_v8 = vld [vmem:[#allocation2 + $0x1e48] sm:$0xff]  ;;  %v2213_v53 = vld [vmem:[#allocation2 + $0x1f58] sm:$0xff] }
 0x20a   :  { %2515 = vmatpush.msrb.mxu2 %v2199_v62  ;;  %2534 = vmatpush.msrb.mxu3 %v2233_v63  ;;  %v2113_v56 = vld [vmem:[#allocation2 + $0x1c38] sm:$0xff]  ;;  %v2147_v58 = vld [vmem:[#allocation2 + $0x1d48] sm:$0xff] }
 0x20b   :  { %2476 = vmatpush.msrb.mxu0 %v2133_v0  ;;  %2495 = vmatpush.msrb.mxu1 %v2167_v1  ;;  %v2177_v59 = vld [vmem:[#allocation2 + $0x1e38] sm:$0xff]  ;;  %v2211_v28 = vld [vmem:[#allocation2 + $0x1f48] sm:$0xff] }
 0x20c   :  { %2516 = vmatpush.msrb.mxu2 %v2197_v60  ;;  %2535 = vmatpush.msrb.mxu3 %v2231_v15  ;;  %v2111_v63 = vld [vmem:[#allocation2 + $0x1c28] sm:$0xff]  ;;  %v2145_v0 = vld [vmem:[#allocation2 + $0x1d38] sm:$0xff] }
 0x20d   :  { %2477 = vmatpush.msrb.mxu0 %v2131_v4  ;;  %2496 = vmatpush.msrb.mxu1 %v2165_v5  ;;  %v2209_v1 = vld [vmem:[#allocation2 + $0x1f38] sm:$0xff]  ;;  %v2143_v4 = vld [vmem:[#allocation2 + $0x1d28] sm:$0xff] }
 0x20e   :  { %2517 = vmatpush.msrb.mxu2 %v2195_v6  ;;  %2536 = vmatpush.msrb.mxu3 %v2229_v10  ;;  %v2109_v15 = vld [vmem:[#allocation2 + $0x1c18] sm:$0xff] }
 0x20f   :  { %2478 = vmatpush.msrb.mxu0 %v2129_v52  ;;  %2497 = vmatpush.msrb.mxu1 %v2163_v16  ;;  %v2173_v10 = vld [vmem:[#allocation2 + $0x1e18] sm:$0xff] }
 0x210   :  { %2518 = vmatpush.msrb.mxu2 %v2193_v46  ;;  %2537 = vmatpush.msrb.mxu3 %v2227_v18  ;;  %v2107_v18 = vld [vmem:[#allocation2 + $0x1c08] sm:$0xff] }
 0x211   :  { %2479 = vmatpush.msrb.mxu0 %v2127_v19  ;;  %2498 = vmatpush.msrb.mxu1 %v2161_v2  ;;  %v2141_v19 = vld [vmem:[#allocation2 + $0x1d18] sm:$0xff] }
 0x212   :  { %2519 = vmatpush.msrb.mxu2 %v2191_v51  ;;  %2538 = vmatpush.msrb.mxu3 %v2225_v57  ;;  %v2205_v51 = vld [vmem:[#allocation2 + $0x1f18] sm:$0xff] }
 0x213   :  { %2480 = vmatpush.msrb.mxu0 %v2125_v34  ;;  %2499 = vmatpush.msrb.mxu1 %v2159_v17 }
 0x214   :  { %2520 = vmatpush.msrb.mxu2 %v2189_v23  ;;  %2539 = vmatpush.msrb.mxu3 %v2223_v24  ;;  %v1764_v30 = vpop.f32.mrf.mxu0  ;;  %v2139_v24 = vld [vmem:[#allocation2 + $0x1d08] sm:$0xff] }
 0x215   :  { %2481 = vmatpush.msrb.mxu0 %v2123_v35  ;;  %2500 = vmatpush.msrb.mxu1 %v2157_v25  ;;  %v2203_v35 = vld [vmem:[#allocation2 + $0x1f08] sm:$0xff] }
 0x216   :  { %2521 = vmatpush.msrb.mxu2 %v2187_v26  ;;  %2540 = vmatpush.msrb.mxu3 %v2221_v12 }
 0x217   :  { %2482 = vmatpush.msrb.mxu0 %v2121_v40  ;;  %2501 = vmatpush.msrb.mxu1 %v2155_v29  ;;  %v1784_v37 = vpop.f32.mrf.mxu1 }
 0x218   :  { %2522 = vmatpush.msrb.mxu2 %v2185_v31  ;;  %2541 = vmatpush.msrb.mxu3 %v2219_v32  ;;  %v1785_v41 = vadd.f32 %v1784_v37, %v1764_v30  ;;  %v1804_v42 = vpop.f32.mrf.mxu2 }
 0x219   :  { %2483 = vmatpush.msrb.mxu0 %v2119_v20  ;;  %2502 = vmatpush.msrb.mxu1 %v2153_v7 }
 0x21a   :  { %2523 = vmatpush.msrb.mxu2 %v2183_v36  ;;  %2542 = vmatpush.msrb.mxu3 %v2217_v13  ;;  %v1805_v45 = vadd.f32 %v1804_v42, %v1785_v41 }
 0x21b   :  { %2484 = vmatpush.msrb.mxu0 %v2117_v38  ;;  %2503 = vmatpush.msrb.mxu1 %v2151_v39  ;;  %v1824_v50 = vpop.f32.mrf.mxu3 }
 0x21c   :  { %2524 = vmatpush.msrb.mxu2 %v2181_v44  ;;  %2543 = vmatpush.msrb.mxu3 %v2215_v27  ;;  %v1825_v54 = vadd.f32 %v1824_v50, %v1805_v45 }
 0x21d   :  { %2450 = vmatmul.f32.vlgmr.msra.gmra.mxu2 %v2934_v48  ;;  %2485 = vmatpush.msrb.mxu0 %v2115_v3  ;;  %v2175_v48 = vld [vmem:[#allocation2 + $0x1e28] sm:$0xff] }
 0x21e   :  { %2504 = vmatpush.msrb.mxu1 %v2149_v49  ;;  %2525 = vmatpush.msrb.mxu2 %v2179_v8  ;;  %v1844_v61 = vpop.f32.mrf.mxu0 }
 0x21f   :  { %2544 = vmatpush.msrb.mxu3 %v2213_v53  ;;  %2410 = vmatmul.f32.vlgmr.msra.gmra.mxu0 %v2939_v33  ;;  %v1845_v62 = vadd.f32 %v1844_v61, %v1825_v54 }
 0x220   :  { %2470 = vmatmul.f32.vlgmr.msra.gmra.mxu3 %v2945_v55  ;;  %2486 = vmatpush.msrb.mxu0 %v2113_v56  ;;  %v2207_v55 = vld [vmem:[#allocation2 + $0x1f28] sm:$0xff] }
 0x221   :  { %2505 = vmatpush.msrb.mxu1 %v2147_v58  ;;  %2526 = vmatpush.msrb.mxu2 %v2177_v59  ;;  %v1864_v60 = vpop.f32.mrf.mxu1 }
 0x222   :  { %2545 = vmatpush.msrb.mxu3 %v2211_v28  ;;  %2430 = vmatmul.f32.vlgmr.msra.gmra.mxu1 %v2951_v9  ;;  %v1277_v5 = vpop.xlane.xlu1 %1276  ;;  %v1272_v6 = vpop.xlane.xlu0 %1271  ;;  %v1865_v33 = vadd.f32 %v1864_v60, %v1845_v62  ;;  %v2171_v9 = vld [vmem:[#allocation2 + $0x1e08] sm:$0xff] }
 0x223   :  { %2487 = vmatpush.msrb.mxu0 %v2111_v63  ;;  %2506 = vmatpush.msrb.mxu1 %v2145_v0  ;;  %v1278_v52 = vmul.f32 0.5, %v1277_v5  ;;  %v1273_v16 = vmul.f32 0.5, %v1272_v6  ;;  %v1884_v46 = vpop.f32.mrf.mxu2 }
 0x224   :  { %2527 = vmatpush.msrb.mxu2 %v2175_v48  ;;  %2546 = vmatpush.msrb.mxu3 %v2209_v1  ;;  %v1885_v2 = vadd.f32 %v1884_v46, %v1865_v33 }
 0x225   :  { %2488 = vmatpush.msrb.mxu0 %v2109_v15  ;;  %2507 = vmatpush.msrb.mxu1 %v2143_v4  ;;  %v1279_v57 = vsub.f32 %v2914_v43, %v1278_v52  ;;  %v1274_v34 = vsub.f32 %v2914_v43, %v1273_v16  ;;  %v1904_v17 = vpop.f32.mrf.mxu3 }
 0x226   :  { %2528 = vmatpush.msrb.mxu2 %v2173_v10  ;;  %2547 = vmatpush.msrb.mxu3 %v2207_v55  ;;  %v3005_v23 = vadd.f32 %v1904_v17, %v1885_v2 }
 0x227   :  { %2489 = vmatpush.msrb.mxu0 %v2107_v18  ;;  %2508 = vmatpush.msrb.mxu1 %v2141_v19  ;;  %v1281_v25 = vsel %vm611_vm0, %v1274_v34, %v1279_v57 }
 0x228   :  { %2529 = vmatpush.msrb.mxu2 %v2171_v9  ;;  %2548 = vmatpush.msrb.mxu3 %v2205_v51  ;;  %v2624_v26 = vmul.f32 -1.442695, %v1281_v25  ;;  %v1922_v43 = vsel %vm617_vm1, %v3005_v23, -inf  ;;  %v1917_v12 = vsel %vm611_vm0, %v3005_v23, -inf }
 0x229   :  { %2490 = vmatmul.f32.vlgmr.msrb.gmra.mxu0 %v2963_v21  ;;  %2530 = vmatmul.f32.vlgmr.msrb.gmra.mxu2 %v2958_v14 }
 0x22a   :  { %2509 = vmatpush.msrb.mxu1 %v2139_v24  ;;  %2549 = vmatpush.msrb.mxu3 %v2203_v35  ;;  %2644 = vpow2.f32 %v2624_v26 }
 0x22b   :  { %2510 = vmatmul.f32.vlgmr.msrb.gmra.mxu1 %v2975_v11  ;;  %2550 = vmatmul.f32.vlgmr.msrb.gmra.mxu3 %v2969_v22 }
 0x22c   :  { %1923 = vmax.xlane.f32.xlu2 %v1922_v43  ;;  %1918 = vmax.xlane.f32.xlu1 %v1917_v12 }
 0x230   :  { %v2645_v40 = vpop.eup %2644 }
 0x231   :  { %v1289_v29 = vadd.f32 1.0, %v2645_v40 }
 0x233   :  { %2646 = vrcp.f32 %v1289_v29  ;;  %v1316_v31 = vand.u32 2147483648, %v1289_v29  ;;  %v1314_v20 = vand.u32 2147483647, %v1289_v29  ;;  %vm1310_vm15 = vweird.f32 %v1289_v29 }
 0x235   :  { %v1317_v36 = vor.u32 1.1754944e-38, %v1316_v31  ;;  %vm1315_vm3 = vcmp.eq.f32.partialorder %v1314_v20, 8.507059e+37 }
 0x239   :  { %v2647_v21 = vpop.eup %2646 }
 0x23a   :  { %v1306_v14 = vmul.f32 %v2647_v21, %v1289_v29  ;;  %vm1311_vm14 = vweird.f32 %v2647_v21 }
 0x23b   :  { %vm1312_vm2 = vmor %vm1310_vm15, %vm1311_vm14 }
 0x23c   :  { %v1307_v30 = vsub.f32 1.0, %v1306_v14 }
 0x23e   :  { %v1308_v32 = vmul.f32 %v2647_v21, %v1307_v30 }
 0x240   :  { %v1309_v7 = vadd.f32 %v2647_v21, %v1308_v32 }
 0x242   :  { %v1313_v13 = vsel %vm1312_vm2, %v2647_v21, %v1309_v7 }
 0x243   :  { %v1318_v11 = vsel %vm1315_vm3, %v1317_v36, %v1313_v13 }
 0x244   :  { %1321 = vst [vmem:[%s3051_s2 + $0x18] sm:$0xff] %v1318_v11 }
 0x259   :  { %v2251_v22 = vpop.f32.mrf.mxu0 }
 0x25c   :  { %v2271_v37 = vpop.f32.mrf.mxu1 }
 0x25d   :  { %v2272_v38 = vadd.f32 %v2271_v37, %v2251_v22  ;;  %v2291_v39 = vpop.f32.mrf.mxu2 }
 0x25f   :  { %v2292_v41 = vadd.f32 %v2291_v39, %v2272_v38 }
 0x260   :  { %v2311_v42 = vpop.f32.mrf.mxu3 }
 0x261   :  { %v2312_v44 = vadd.f32 %v2311_v42, %v2292_v41 }
 0x263   :  { %v2331_v27 = vpop.f32.mrf.mxu0 }
 0x264   :  { %v2332_v3 = vadd.f32 %v2331_v27, %v2312_v44 }
 0x266   :  { %v2351_v45 = vpop.f32.mrf.mxu1 }
 0x267   :  { %v1909_v49 = vpop.xlane.xlu2 %1908  ;;  %v1914_v8 = vpop.xlane.xlu0 %1913  ;;  %v2352_v50 = vadd.f32 %v2351_v45, %v2332_v3 }
 0x268   :  { %v1910_v53 = vmul.f32 0.5, %v1909_v49  ;;  %v1915_v54 = vmul.f32 0.5, %v1914_v8  ;;  %v2371_v56 = vpop.f32.mrf.mxu2 }
 0x269   :  { %v2372_v58 = vadd.f32 %v2371_v56, %v2352_v50 }
 0x26a   :  { %v1911_v59 = vsub.f32 %v2982_v47, %v1910_v53  ;;  %v1916_v61 = vsub.f32 %v2982_v47, %v1915_v54  ;;  %v2391_v28 = vpop.f32.mrf.mxu3 }
 0x26b   :  { %v3021_v62 = vadd.f32 %v2391_v28, %v2372_v58 }
 0x26c   :  { %v1927_v63 = vsel %vm611_vm0, %v1911_v59, %v1916_v61 }
 0x26d   :  { %v2625_v0 = vmul.f32 -1.442695, %v1927_v63  ;;  %v2559_v48 = vsel %vm617_vm1, %v3021_v62, -inf  ;;  %v2554_v1 = vsel %vm611_vm0, %v3021_v62, -inf }
 0x26e   :  { %2560 = vmax.xlane.f32.xlu1 %v2559_v48  ;;  %2555 = vmax.xlane.f32.xlu0 %v2554_v1 }
 0x26f   :  { %2648 = vpow2.f32 %v2625_v0 }
 0x275   :  { %v2649_v60 = vpop.eup %2648 }
 0x276   :  { %v1935_v15 = vadd.f32 1.0, %v2649_v60 }
 0x278   :  { %2650 = vrcp.f32 %v1935_v15  ;;  %v1948_v6 = vand.u32 2147483648, %v1935_v15  ;;  %v1946_v10 = vand.u32 2147483647, %v1935_v15  ;;  %vm1942_vm5 = vweird.f32 %v1935_v15 }
 0x27a   :  { %v1949_v52 = vor.u32 1.1754944e-38, %v1948_v6  ;;  %vm1947_vm7 = vcmp.eq.f32.partialorder %v1946_v10, 8.507059e+37 }
 0x27e   :  { %v2651_v4 = vpop.eup %2650 }
 0x27f   :  { %v1938_v47 = vmul.f32 %v2651_v4, %v1935_v15  ;;  %vm1943_vm4 = vweird.f32 %v2651_v4 }
 0x280   :  { %vm1944_vm6 = vmor %vm1942_vm5, %vm1943_vm4 }
 0x281   :  { %v1939_v5 = vsub.f32 1.0, %v1938_v47 }
 0x283   :  { %v1940_v33 = vmul.f32 %v2651_v4, %v1939_v5 }
 0x285   :  { %v1941_v55 = vadd.f32 %v2651_v4, %v1940_v33 }
 0x287   :  { %v1945_v16 = vsel %vm1944_vm6, %v2651_v4, %v1941_v55 }
 0x288   :  { %v1950_v46 = vsel %vm1947_vm7, %v1949_v52, %v1945_v16 }
 0x289   :  { %1967 = vst [vmem:[%s3051_s2 + $0x20] sm:$0xff] %v1950_v46 }
 0x29c   :  { %v2411_v18 = vpop.f32.mrf.mxu0 }
 0x29f   :  { %v2431_v19 = vpop.f32.mrf.mxu1  ;;  %v1924_v2 = vpop.xlane.xlu2 %1923 }
 0x2a0   :  { %v2432_v9 = vadd.f32 %v2431_v19, %v2411_v18  ;;  %v2451_v51 = vpop.f32.mrf.mxu2  ;;  %v1925_v57 = vmul.f32 0.5, %v1924_v2  ;;  %v1919_v34 = vpop.xlane.xlu1 %1918 }
 0x2a1   :  { %v1920_v17 = vmul.f32 0.5, %v1919_v34 }
 0x2a2   :  { %v2452_v24 = vadd.f32 %v2451_v51, %v2432_v9  ;;  %v1926_v35 = vsub.f32 %v3005_v23, %v1925_v57 }
 0x2a3   :  { %v2471_v25 = vpop.f32.mrf.mxu3  ;;  %v1921_v26 = vsub.f32 %v3005_v23, %v1920_v17 }
 0x2a4   :  { %v2472_v43 = vadd.f32 %v2471_v25, %v2452_v24 }
 0x2a5   :  { %v1928_v12 = vsel %vm611_vm0, %v1921_v26, %v1926_v35 }
 0x2a6   :  { %v2491_v40 = vpop.f32.mrf.mxu0  ;;  %v2626_v29 = vmul.f32 -1.442695, %v1928_v12 }
 0x2a7   :  { %v2492_v21 = vadd.f32 %v2491_v40, %v2472_v43 }
 0x2a8   :  { %v2511_v14 = vpop.f32.mrf.mxu1  ;;  %2652 = vpow2.f32 %v2626_v29 }
 0x2a9   :  { %v2512_v30 = vadd.f32 %v2511_v14, %v2492_v21 }
 0x2ac   :  { %v2531_v31 = vpop.f32.mrf.mxu2 }
 0x2ad   :  { %v2532_v32 = vadd.f32 %v2531_v31, %v2512_v30 }
 0x2ae   :  { %v2653_v20 = vpop.eup %2652  ;;  %v2551_v7 = vpop.f32.mrf.mxu3 }
 0x2af   :  { %v1936_v36 = vadd.f32 1.0, %v2653_v20  ;;  %v2552_v13 = vadd.f32 %v2551_v7, %v2532_v32 }
 0x2b1   :  { %2654 = vrcp.f32 %v1936_v36  ;;  %v2564_v11 = vsel %vm611_vm0, %v2552_v13, -inf  ;;  %v2569_v23 = vsel %vm617_vm1, %v2552_v13, -inf  ;;  %v1963_v39 = vand.u32 2147483648, %v1936_v36 }
 0x2b2   :  { %2565 = vmax.xlane.f32.xlu2 %v2564_v11  ;;  %2570 = vmax.xlane.f32.xlu0 %v2569_v23  ;;  %v1961_v42 = vand.u32 2147483647, %v1936_v36  ;;  %vm1957_vm9 = vweird.f32 %v1936_v36 }
 0x2b3   :  { %v1964_v27 = vor.u32 1.1754944e-38, %v1963_v39 }
 0x2b4   :  { %vm1962_vm11 = vcmp.eq.f32.partialorder %v1961_v42, 8.507059e+37 }
 0x2b7   :  { %v2655_v22 = vpop.eup %2654 }
 0x2b8   :  { %v1953_v37 = vmul.f32 %v2655_v22, %v1936_v36  ;;  %vm1958_vm8 = vweird.f32 %v2655_v22 }
 0x2b9   :  { %vm1959_vm10 = vmor %vm1957_vm9, %vm1958_vm8 }
 0x2ba   :  { %v1954_v38 = vsub.f32 1.0, %v1953_v37 }
 0x2bc   :  { %v1955_v41 = vmul.f32 %v2655_v22, %v1954_v38 }
 0x2be   :  { %v1956_v44 = vadd.f32 %v2655_v22, %v1955_v41 }
 0x2c0   :  { %v1960_v3 = vsel %vm1959_vm10, %v2655_v22, %v1956_v44 }
 0x2c1   :  { %v1965_v45 = vsel %vm1962_vm11, %v1964_v27, %v1960_v3 }
 0x2c2   :  { %1968 = vst [vmem:[%s3051_s2 + $0x28] sm:$0xff] %v1965_v45 }
 0x2e1   :  { %v2561_v49 = vpop.xlane.xlu1 %2560  ;;  %v2556_v8 = vpop.xlane.xlu0 %2555 }
 0x2e2   :  { %v2562_v50 = vmul.f32 0.5, %v2561_v49  ;;  %v2557_v53 = vmul.f32 0.5, %v2556_v8 }
 0x2e4   :  { %v2563_v54 = vsub.f32 %v3021_v62, %v2562_v50  ;;  %v2558_v56 = vsub.f32 %v3021_v62, %v2557_v53 }
 0x2e6   :  { %v2574_v58 = vsel %vm611_vm0, %v2558_v56, %v2563_v54 }
 0x2e7   :  { %v2627_v59 = vmul.f32 -1.442695, %v2574_v58 }
 0x2e9   :  { %2656 = vpow2.f32 %v2627_v59 }
 0x2ef   :  { %v2657_v61 = vpop.eup %2656 }
 0x2f0   :  { %v2582_v28 = vadd.f32 1.0, %v2657_v61 }
 0x2f2   :  { %2658 = vrcp.f32 %v2582_v28  ;;  %v2595_v1 = vand.u32 2147483648, %v2582_v28  ;;  %v2593_v15 = vand.u32 2147483647, %v2582_v28  ;;  %vm2589_vm12 = vweird.f32 %v2582_v28 }
 0x2f4   :  { %v2596_v47 = vor.u32 1.1754944e-38, %v2595_v1  ;;  %vm2594_vm14 = vcmp.eq.f32.partialorder %v2593_v15, 8.507059e+37 }
 0x2f8   :  { %v2659_v63 = vpop.eup %2658 }
 0x2f9   :  { %v2585_v0 = vmul.f32 %v2659_v63, %v2582_v28  ;;  %vm2590_vm1 = vweird.f32 %v2659_v63 }
 0x2fa   :  { %vm2591_vm13 = vmor %vm2589_vm12, %vm2590_vm1 }
 0x2fb   :  { %v2586_v48 = vsub.f32 1.0, %v2585_v0 }
 0x2fd   :  { %v2587_v60 = vmul.f32 %v2659_v63, %v2586_v48 }
 0x2ff   :  { %v2588_v4 = vadd.f32 %v2659_v63, %v2587_v60 }
 0x301   :  { %v2592_v5 = vsel %vm2591_vm13, %v2659_v63, %v2588_v4 }
 0x302   :  { %v2597_v62 = vsel %vm2594_vm14, %v2596_v47, %v2592_v5 }
 0x303   :  { %2614 = vst [vmem:[%s3051_s2 + $0x30] sm:$0xff] %v2597_v62 }
 0x325   :  { %v2566_v6 = vpop.xlane.xlu2 %2565  ;;  %v2571_v33 = vpop.xlane.xlu0 %2570 }
 0x326   :  { %v2567_v10 = vmul.f32 0.5, %v2566_v6  ;;  %v2572_v55 = vmul.f32 0.5, %v2571_v33 }
 0x328   :  { %v2568_v52 = vsub.f32 %v2552_v13, %v2567_v10  ;;  %v2573_v16 = vsub.f32 %v2552_v13, %v2572_v55 }
 0x32a   :  { %v2575_v46 = vsel %vm611_vm0, %v2568_v52, %v2573_v16 }
 0x32b   :  { %v2628_v18 = vmul.f32 -1.442695, %v2575_v46 }
 0x32d   :  { %2660 = vpow2.f32 %v2628_v18 }
 0x333   :  { %v2661_v19 = vpop.eup %2660 }
 0x334   :  { %v2583_v2 = vadd.f32 1.0, %v2661_v19 }
 0x336   :  { %2662 = vrcp.f32 %v2583_v2  ;;  %v2610_v34 = vand.u32 2147483648, %v2583_v2  ;;  %v2608_v24 = vand.u32 2147483647, %v2583_v2  ;;  %vm2604_vm2 = vweird.f32 %v2583_v2 }
 0x338   :  { %v2611_v25 = vor.u32 1.1754944e-38, %v2610_v34  ;;  %vm2609_vm4 = vcmp.eq.f32.partialorder %v2608_v24, 8.507059e+37 }
 0x33c   :  { %v2663_v9 = vpop.eup %2662 }
 0x33d   :  { %v2600_v51 = vmul.f32 %v2663_v9, %v2583_v2  ;;  %vm2605_vm15 = vweird.f32 %v2663_v9 }
 0x33e   :  { %vm2606_vm3 = vmor %vm2604_vm2, %vm2605_vm15 }
 0x33f   :  { %v2601_v57 = vsub.f32 1.0, %v2600_v51 }
 0x341   :  { %v2602_v17 = vmul.f32 %v2663_v9, %v2601_v57 }
 0x343   :  { %v2603_v35 = vadd.f32 %v2663_v9, %v2602_v17 }
 0x345   :  { %v2607_v26 = vsel %vm2606_vm3, %v2663_v9, %v2603_v35 }
 0x346   :  { %v2612_v43 = vsel %vm2609_vm4, %v2611_v25, %v2607_v26 }
 0x347   :  { %2615 = vst [vmem:[%s3051_s2 + $0x38] sm:$0xff] %v2612_v43 }
 0x348   :  { %2620 = vsyncpa [#allocation3], 1 }

</bundles_post_ra>
